<compile_context>
chip_gen: v7x
topology: tpu7x:2x2x1
jax: 0.10.0
libtpu: 0.0.40
codegen_flags: <defaults>
</compile_context>

<pallas_src>
import functools

import jax
import jax.numpy as jnp
from jax.experimental import pallas as pl
from jax.experimental.pallas import tpu as pltpu


# ---------------------------------------------------------------------------
# pltpu.roll convention probe (robustness guard).  The kernel shifts the
# flattened (H*W, Cp) activation by +/-1 along the sublane axis; the roll
# direction is determined once with a tiny probe kernel, with a jnp.roll
# fallback if pltpu.roll is unusable.
# ---------------------------------------------------------------------------
_ROLL_JNP_LIKE = 1      # pltpu.roll(x, s, 0)[i] == x[i - s]   (jnp.roll convention)
_ROLL_REVERSED = -1     # pltpu.roll(x, s, 0)[i] == x[i + s]
_ROLL_FALLBACK = 0      # use jnp.roll inside the kernel (correct but slower)


@functools.lru_cache(maxsize=None)
def _roll_convention() -> int:
    def probe(o_ref):
        idx = jax.lax.broadcasted_iota(jnp.int32, (256, 128), 0)
        o_ref[...] = pltpu.roll(idx, 17, 0)

    try:
        res = pl.pallas_call(
            probe, out_shape=jax.ShapeDtypeStruct((256, 128), jnp.int32))()
        res = jax.block_until_ready(res)
        first = int(res[17, 0])
    except Exception:                                     # pragma: no cover
        print("WARNING: pltpu.roll probe failed; falling back to jnp.roll "
              "(slower slice+concat path).", flush=True)
        return _ROLL_FALLBACK
    if first == 0:
        return _ROLL_JNP_LIKE
    if first == 34:
        return _ROLL_REVERSED
    print("WARNING: pltpu.roll convention not recognized; falling back to "
          "jnp.roll (slower slice+concat path).", flush=True)
    return _ROLL_FALLBACK


def _shift_flat(x, delta, roll_mode):
    """result[f] = x[(f + delta) mod n] along axis 0."""
    n = x.shape[0]
    if delta % n == 0:
        return x
    if roll_mode == _ROLL_JNP_LIKE:
        return pltpu.roll(x, (-delta) % n, 0)
    if roll_mode == _ROLL_REVERSED:
        return pltpu.roll(x, delta % n, 0)
    return jnp.roll(x, -delta, axis=0)


def basic_block_kernel(x_ref, w1_ref, b1_ref, w2_ref, b2_ref, o_ref, col_ref,
                       *, W, roll_mode):
    """One grid step == one batch element; activations are lane-dense (HW, Cp)."""
    HW, Cp = x_ref.shape[1], x_ref.shape[2]
    x = x_ref[0]                                            # (HW, Cp) f32

    # Column-boundary masks: in-kernel, full lane width, hoisted out of both
    # convs (no lane-width-1 operands, no HBM mask traffic).
    col = jax.lax.broadcasted_iota(jnp.int32, (HW, Cp), 0) % W
    mask_l = (col >= 1).astype(jnp.float32)        # tap reads column c-1
    mask_r = (col <= W - 2).astype(jnp.float32)    # tap reads column c+1

    # Always-zero row strips of the im2col scratch (top rows of the oh=-1 tap
    # blocks, bottom rows of the oh=+1 tap blocks).  Re-zeroed every grid step
    # so the kernel is independent of scratch history / megacore scheduling.
    zstrip = jnp.zeros((W, Cp), jnp.bfloat16)
    for ow in (-1, 0, 1):
        t_up = ow + 1                  # tap (oh=-1, ow)
        t_dn = 6 + ow + 1              # tap (oh=+1, ow)
        col_ref[0:W, t_up * Cp:(t_up + 1) * Cp] = zstrip
        col_ref[HW - W:HW, t_dn * Cp:(t_dn + 1) * Cp] = zstrip

    def conv3x3(act_f32, w_ref):
        # Horizontal taps: two single-step rolls (XLU) + column mask, then one
        # bf16 cast per variant (3 casts per conv instead of 9).
        a_l = (_shift_flat(act_f32, -1, roll_mode) * mask_l).astype(jnp.bfloat16)
        a_c = act_f32.astype(jnp.bfloat16)
        a_r = (_shift_flat(act_f32, +1, roll_mode) * mask_r).astype(jnp.bfloat16)
        horiz = (a_l, a_c, a_r)
        # Vertical taps are realized by the write offset into the im2col
        # scratch (no +/-W rolls, no row masks).
        for oh in (-1, 0, 1):
            for ow in (-1, 0, 1):
                t = (oh + 1) * 3 + (ow + 1)
                c0 = t * Cp
                src = horiz[ow + 1]
                if oh == 0:
                    col_ref[:, c0:c0 + Cp] = src
                elif oh == -1:
                    col_ref[W:HW, c0:c0 + Cp] = src[0:HW - W]
                else:  # oh == +1
                    col_ref[0:HW - W, c0:c0 + Cp] = src[W:HW]
        # Single big-K MXU matmul with f32 accumulation (BN scale is already
        # folded into w_ref on the wrapper side).
        return jnp.dot(col_ref[...], w_ref[...],
                       preferred_element_type=jnp.float32)

    # conv1 -> (folded BN) bias -> relu
    y = jnp.maximum(conv3x3(x, w1_ref) + b1_ref[...], 0.0)
    # conv2 -> (folded BN) bias
    y = conv3x3(y, w2_ref) + b2_ref[...]
    # residual add (straight from the unpadded input block) + relu
    o_ref[0] = jnp.maximum(y + x, 0.0).astype(o_ref.dtype)


def _round_up(v, m):
    return -(-v // m) * m


def _vmem_limit_bytes(default=64 * 1024 * 1024):
    """Generation-aware scoped-VMEM limit with headroom.

    v7x has only 64 MiB physical VMEM per TensorCore (-> ~48 MiB budget);
    v5e/v6e have 128 MiB (-> ~96-100 MiB budget)."""
    try:
        cap = int(pltpu.get_tpu_info().vmem_capacity_bytes)
    except Exception:
        return default
    if cap <= 0:
        return default
    return min((cap * 3) // 4, 100 * 1024 * 1024)


def basic_block_pallas(x_nhwc, w1, s1, b1, w2, s2, b2):
    """HRNet BasicBlock forward (stride=1, no downsample).

    x_nhwc: (N, H, W, C) f32.  w1, w2: (3, 3, C, C) HWIO conv weights.
    s*, b*: (C,) folded BatchNorm scale / bias.  Returns (N, H, W, C) f32.
    """
    N, H, W, C = x_nhwc.shape
    HW = H * W
    Cp = _round_up(C, 128)          # lane-dense channel padding
    roll_mode = _roll_convention()

    def cpad(a, axes):
        if Cp == C:
            return a
        pads = [(0, 0)] * a.ndim
        for ax in axes:
            pads[ax] = (0, Cp - C)
        return jnp.pad(a, pads)

    # Fold the BN scale into the conv weights (bias stays):
    #   bn(conv_w(x)) = conv_{w*s}(x) + b     -- pure wrapper-side prep.
    w1f = w1.astype(jnp.float32) * s1.astype(jnp.float32)[None, None, None, :]
    w2f = w2.astype(jnp.float32) * s2.astype(jnp.float32)[None, None, None, :]

    # Layout plumbing: channel-pad to Cp, flatten spatial dims, pre-pack the
    # 3x3 weights tap-major as a single (9*Cp, Cp) bf16 matrix (matches the
    # im2col K layout used inside the kernel).
    x2d = cpad(x_nhwc.astype(jnp.float32), (3,)).reshape(N, HW, Cp)
    w1p = cpad(w1f, (2, 3)).reshape(9 * Cp, Cp).astype(jnp.bfloat16)
    w2p = cpad(w2f, (2, 3)).reshape(9 * Cp, Cp).astype(jnp.bfloat16)
    b1p = cpad(b1.reshape(1, C).astype(jnp.float32), (1,))
    b2p = cpad(b2.reshape(1, C).astype(jnp.float32), (1,))

    const = lambda shape: pl.BlockSpec(shape, lambda n: (0,) * len(shape))

    out2d = pl.pallas_call(
        functools.partial(basic_block_kernel, W=W, roll_mode=roll_mode),
        out_shape=jax.ShapeDtypeStruct((N, HW, Cp), jnp.float32),
        grid_spec=pltpu.PrefetchScalarGridSpec(
            num_scalar_prefetch=0,
            grid=(N,),
            in_specs=[
                pl.BlockSpec((1, HW, Cp), lambda n: (n, 0, 0)),  # x
                const((9 * Cp, Cp)),                             # w1 (BN folded)
                const((1, Cp)),                                  # bias1
                const((9 * Cp, Cp)),                             # w2 (BN folded)
                const((1, Cp)),                                  # bias2
            ],
            out_specs=pl.BlockSpec((1, HW, Cp), lambda n: (n, 0, 0)),
            scratch_shapes=[pltpu.VMEM((HW, 9 * Cp), jnp.bfloat16)],  # im2col LHS
        ),
        compiler_params=pltpu.CompilerParams(
            dimension_semantics=("parallel",),        # megacore-shardable batch
            vmem_limit_bytes=_vmem_limit_bytes(),
        ),
    )(x2d, w1p, b1p, w2p, b2p)

    out = out2d.reshape(N, H, W, Cp)
    return out[..., :C] if Cp != C else out


# ---------------------------------------------------------------------------
# Reference + test harness
# ---------------------------------------------------------------------------
def _fold_bn(gamma, beta, mean, var, eps=1e-5):
    scale = gamma / jnp.sqrt(var + eps)
    bias = beta - mean * scale
    return scale, bias


def _reference(x_nhwc, w1, s1, b1, w2, s2, b2):
    dn = jax.lax.conv_dimension_numbers(x_nhwc.shape, w1.shape,
                                        ('NHWC', 'HWIO', 'NHWC'))
    y = jax.lax.conv_general_dilated(x_nhwc, w1, (1, 1), 'SAME',
                                     dimension_numbers=dn)
    y = jnp.maximum(y * s1 + b1, 0.0)
    y = jax.lax.conv_general_dilated(y, w2, (1, 1), 'SAME',
                                     dimension_numbers=dn)
    y = y * s2 + b2 + x_nhwc
    return jnp.maximum(y, 0.0)


if __name__ == "__main__":
    N, C, H, W = 2, 4, 16, 16          # inplanes == planes, stride=1
    key = jax.random.PRNGKey(0)
    (kx, kw1, kw2, kg1, kb1, kg2, kb2,
     km1, kv1, km2, kv2) = jax.random.split(key, 11)

    # PyTorch-style NCHW input, transposed to NHWC for the kernel wrapper.
    x_nchw = jax.random.normal(kx, (N, C, H, W), jnp.float32)
    x_nhwc = jnp.transpose(x_nchw, (0, 2, 3, 1))

    # conv weights (HWIO), no bias (matches conv3x3(bias=False)).
    w1 = 0.1 * jax.random.normal(kw1, (3, 3, C, C), jnp.float32)
    w2 = 0.1 * jax.random.normal(kw2, (3, 3, C, C), jnp.float32)

    # Deterministic BatchNorm parameters / running stats (eval semantics).
    gamma1 = 1.0 + 0.1 * jax.random.normal(kg1, (C,), jnp.float32)
    beta1 = 0.1 * jax.random.normal(kb1, (C,), jnp.float32)
    mean1 = 0.05 * jax.random.normal(km1, (C,), jnp.float32)
    var1 = 1.0 + 0.1 * jax.random.uniform(kv1, (C,), jnp.float32)
    gamma2 = 1.0 + 0.1 * jax.random.normal(kg2, (C,), jnp.float32)
    beta2 = 0.1 * jax.random.normal(kb2, (C,), jnp.float32)
    mean2 = 0.05 * jax.random.normal(km2, (C,), jnp.float32)
    var2 = 1.0 + 0.1 * jax.random.uniform(kv2, (C,), jnp.float32)

    s1, b1 = _fold_bn(gamma1, beta1, mean1, var1)
    s2, b2 = _fold_bn(gamma2, beta2, mean2, var2)

    out = jax.block_until_ready(basic_block_pallas(x_nhwc, w1, s1, b1, w2, s2, b2))
    ref = _reference(x_nhwc, w1, s1, b1, w2, s2, b2)

    assert out.shape == (N, H, W, C)
    # bf16 MXU operands with f32 accumulation -> relaxed tolerance vs f32 ref.
    assert jnp.allclose(out, ref, atol=5e-2, rtol=5e-2), "mismatch vs reference"

    print("KERNEL_OK")
</pallas_src>

<mosaic_0001>
module attributes {stable_mosaic.version = 11 : i64} {
  func.func @basic_block_kernel(%arg0: i32, %arg1: memref<1x256x128xf32, #tpu.memory_space<vmem>>, %arg2: memref<1152x128xbf16, #tpu.memory_space<vmem>>, %arg3: memref<1x128xf32, #tpu.memory_space<vmem>>, %arg4: memref<1152x128xbf16, #tpu.memory_space<vmem>>, %arg5: memref<1x128xf32, #tpu.memory_space<vmem>>, %arg6: memref<1x256x128xf32, #tpu.memory_space<vmem>>, %arg7: memref<256x1152xbf16, #tpu.memory_space<vmem>>) attributes {dimension_semantics = [#tpu.dimension_semantics<parallel>], iteration_bounds = array<i64: 2>, scalar_prefetch = 0 : i64, scratch_operands = 1 : i64, tpu.core_type = #tpu.core_type<tc>, window_params = [{transform_indices = @transform_0, window_bounds = array<i64: 1, 256, 128>}, {pipeline_mode = #tpu.pipeline_mode<synchronous>, transform_indices = @transform_1, window_bounds = array<i64: 1152, 128>}, {pipeline_mode = #tpu.pipeline_mode<synchronous>, transform_indices = @transform_2, window_bounds = array<i64: 1, 128>}, {pipeline_mode = #tpu.pipeline_mode<synchronous>, transform_indices = @transform_3, window_bounds = array<i64: 1152, 128>}, {pipeline_mode = #tpu.pipeline_mode<synchronous>, transform_indices = @transform_4, window_bounds = array<i64: 1, 128>}, {transform_indices = @transform_5, window_bounds = array<i64: 1, 256, 128>}]} {
    %c0 = arith.constant 0 : index
    %c0_0 = arith.constant 0 : index
    %c0_1 = arith.constant 0 : index
    %0 = vector.load %arg1[%c0, %c0_0, %c0_1] : memref<1x256x128xf32, #tpu.memory_space<vmem>>, vector<1x256x128xf32>
    %1 = vector.shape_cast %0 : vector<1x256x128xf32> to vector<256x128xf32>
    %2 = tpu.iota {dimensions = array<i32: 0>} : vector<256x128xi32>
    %c16_i32 = arith.constant 16 : i32
    %c0_i32 = arith.constant 0 : i32
    %3 = arith.cmpi eq, %c16_i32, %c0_i32 : i32
    %c1_i32 = arith.constant 1 : i32
    %4 = arith.select %3, %c1_i32, %c16_i32 : i32
    %5 = vector.broadcast %4 : i32 to vector<256x128xi32>
    %6 = arith.remsi %2, %5 : vector<256x128xi32>
    %c0_i32_2 = arith.constant 0 : i32
    %7 = vector.broadcast %c0_i32_2 : i32 to vector<256x128xi32>
    %8 = arith.cmpi ne, %6, %7 : vector<256x128xi32>
    %c0_i32_3 = arith.constant 0 : i32
    %9 = vector.broadcast %c0_i32_3 : i32 to vector<256x128xi32>
    %10 = arith.cmpi slt, %6, %9 : vector<256x128xi32>
    %c0_i32_4 = arith.constant 0 : i32
    %11 = arith.cmpi slt, %4, %c0_i32_4 : i32
    %12 = vector.broadcast %11 : i1 to vector<256x128xi1>
    %13 = vector.broadcast %12 : vector<256x128xi1> to vector<256x128xi1>
    %14 = arith.xori %10, %13 : vector<256x128xi1>
    %15 = arith.andi %14, %8 : vector<256x128xi1>
    %16 = vector.broadcast %4 : i32 to vector<256x128xi32>
    %17 = arith.addi %6, %16 : vector<256x128xi32>
    %18 = arith.select %15, %17, %6 : vector<256x128xi1>, vector<256x128xi32>
    %c1_i32_5 = arith.constant 1 : i32
    %19 = vector.broadcast %c1_i32_5 : i32 to vector<256x128xi32>
    %20 = arith.cmpi sge, %18, %19 : vector<256x128xi32>
    %21 = arith.extui %20 : vector<256x128xi1> to vector<256x128xi32>
    %22 = arith.sitofp %21 : vector<256x128xi32> to vector<256x128xf32>
    %c14_i32 = arith.constant 14 : i32
    %23 = vector.broadcast %c14_i32 : i32 to vector<256x128xi32>
    %24 = arith.cmpi sle, %18, %23 : vector<256x128xi32>
    %25 = arith.extui %24 : vector<256x128xi1> to vector<256x128xi32>
    %26 = arith.sitofp %25 : vector<256x128xi32> to vector<256x128xf32>
    %cst = arith.constant 0.000000e+00 : bf16
    %27 = vector.broadcast %cst : bf16 to vector<16x128xbf16>
    %c0_6 = arith.constant 0 : index
    %c0_7 = arith.constant 0 : index
    %28 = vector.load %arg7[%c0_6, %c0_7] : memref<256x1152xbf16, #tpu.memory_space<vmem>>, vector<16x128xbf16>
    tpu.vector_store %arg7[%c0_6, %c0_7], %27 {strides = array<i32>} : memref<256x1152xbf16, #tpu.memory_space<vmem>>, vector<16x128xbf16>,
    %c240 = arith.constant 240 : index
    %c768 = arith.constant 768 : index
    %29 = vector.load %arg7[%c240, %c768] : memref<256x1152xbf16, #tpu.memory_space<vmem>>, vector<16x128xbf16>
    tpu.vector_store %arg7[%c240, %c768], %27 {strides = array<i32>} : memref<256x1152xbf16, #tpu.memory_space<vmem>>, vector<16x128xbf16>,
    %c0_8 = arith.constant 0 : index
    %c128 = arith.constant 128 : index
    %30 = vector.load %arg7[%c0_8, %c128] : memref<256x1152xbf16, #tpu.memory_space<vmem>>, vector<16x128xbf16>
    tpu.vector_store %arg7[%c0_8, %c128], %27 {strides = array<i32>} : memref<256x1152xbf16, #tpu.memory_space<vmem>>, vector<16x128xbf16>,
    %c240_9 = arith.constant 240 : index
    %c896 = arith.constant 896 : index
    %31 = vector.load %arg7[%c240_9, %c896] : memref<256x1152xbf16, #tpu.memory_space<vmem>>, vector<16x128xbf16>
    tpu.vector_store %arg7[%c240_9, %c896], %27 {strides = array<i32>} : memref<256x1152xbf16, #tpu.memory_space<vmem>>, vector<16x128xbf16>,
    %c0_10 = arith.constant 0 : index
    %c256 = arith.constant 256 : index
    %32 = vector.load %arg7[%c0_10, %c256] : memref<256x1152xbf16, #tpu.memory_space<vmem>>, vector<16x128xbf16>
    tpu.vector_store %arg7[%c0_10, %c256], %27 {strides = array<i32>} : memref<256x1152xbf16, #tpu.memory_space<vmem>>, vector<16x128xbf16>,
    %c240_11 = arith.constant 240 : index
    %c1024 = arith.constant 1024 : index
    %33 = vector.load %arg7[%c240_11, %c1024] : memref<256x1152xbf16, #tpu.memory_space<vmem>>, vector<16x128xbf16>
    tpu.vector_store %arg7[%c240_11, %c1024], %27 {strides = array<i32>} : memref<256x1152xbf16, #tpu.memory_space<vmem>>, vector<16x128xbf16>,
    %34 = vector.extract_strided_slice %1 {offsets = [255, 0], sizes = [1, 128], strides = [1, 1]} : vector<256x128xf32> to vector<1x128xf32>
    %35 = vector.extract_strided_slice %1 {offsets = [0, 0], sizes = [255, 128], strides = [1, 1]} : vector<256x128xf32> to vector<255x128xf32>
    %36 = tpu.concatenate %34, %35 in 0 : vector<1x128xf32>, vector<255x128xf32> -> vector<256x128xf32>
    %37 = arith.mulf %36, %22 : vector<256x128xf32>
    %38 = arith.truncf %37 : vector<256x128xf32> to vector<256x128xbf16>
    %39 = arith.truncf %1 : vector<256x128xf32> to vector<256x128xbf16>
    %40 = vector.extract_strided_slice %1 {offsets = [1, 0], sizes = [255, 128], strides = [1, 1]} : vector<256x128xf32> to vector<255x128xf32>
    %41 = vector.extract_strided_slice %1 {offsets = [0, 0], sizes = [1, 128], strides = [1, 1]} : vector<256x128xf32> to vector<1x128xf32>
    %42 = tpu.concatenate %40, %41 in 0 : vector<255x128xf32>, vector<1x128xf32> -> vector<256x128xf32>
    %43 = arith.mulf %42, %26 : vector<256x128xf32>
    %44 = arith.truncf %43 : vector<256x128xf32> to vector<256x128xbf16>
    %45 = vector.extract_strided_slice %38 {offsets = [0, 0], sizes = [240, 128], strides = [1, 1]} : vector<256x128xbf16> to vector<240x128xbf16>
    %c16 = arith.constant 16 : index
    %c0_12 = arith.constant 0 : index
    %46 = vector.load %arg7[%c16, %c0_12] : memref<256x1152xbf16, #tpu.memory_space<vmem>>, vector<240x128xbf16>
    tpu.vector_store %arg7[%c16, %c0_12], %45 {strides = array<i32>} : memref<256x1152xbf16, #tpu.memory_space<vmem>>, vector<240x128xbf16>,
    %47 = vector.extract_strided_slice %39 {offsets = [0, 0], sizes = [240, 128], strides = [1, 1]} : vector<256x128xbf16> to vector<240x128xbf16>
    %c16_13 = arith.constant 16 : index
    %c128_14 = arith.constant 128 : index
    %48 = vector.load %arg7[%c16_13, %c128_14] : memref<256x1152xbf16, #tpu.memory_space<vmem>>, vector<240x128xbf16>
    tpu.vector_store %arg7[%c16_13, %c128_14], %47 {strides = array<i32>} : memref<256x1152xbf16, #tpu.memory_space<vmem>>, vector<240x128xbf16>,
    %49 = vector.extract_strided_slice %44 {offsets = [0, 0], sizes = [240, 128], strides = [1, 1]} : vector<256x128xbf16> to vector<240x128xbf16>
    %c16_15 = arith.constant 16 : index
    %c256_16 = arith.constant 256 : index
    %50 = vector.load %arg7[%c16_15, %c256_16] : memref<256x1152xbf16, #tpu.memory_space<vmem>>, vector<240x128xbf16>
    tpu.vector_store %arg7[%c16_15, %c256_16], %49 {strides = array<i32>} : memref<256x1152xbf16, #tpu.memory_space<vmem>>, vector<240x128xbf16>,
    %c0_17 = arith.constant 0 : index
    %c384 = arith.constant 384 : index
    %51 = vector.load %arg7[%c0_17, %c384] : memref<256x1152xbf16, #tpu.memory_space<vmem>>, vector<256x128xbf16>
    tpu.vector_store %arg7[%c0_17, %c384], %38 {strides = array<i32>} : memref<256x1152xbf16, #tpu.memory_space<vmem>>, vector<256x128xbf16>,
    %c0_18 = arith.constant 0 : index
    %c512 = arith.constant 512 : index
    %52 = vector.load %arg7[%c0_18, %c512] : memref<256x1152xbf16, #tpu.memory_space<vmem>>, vector<256x128xbf16>
    tpu.vector_store %arg7[%c0_18, %c512], %39 {strides = array<i32>} : memref<256x1152xbf16, #tpu.memory_space<vmem>>, vector<256x128xbf16>,
    %c0_19 = arith.constant 0 : index
    %c640 = arith.constant 640 : index
    %53 = vector.load %arg7[%c0_19, %c640] : memref<256x1152xbf16, #tpu.memory_space<vmem>>, vector<256x128xbf16>
    tpu.vector_store %arg7[%c0_19, %c640], %44 {strides = array<i32>} : memref<256x1152xbf16, #tpu.memory_space<vmem>>, vector<256x128xbf16>,
    %54 = vector.extract_strided_slice %38 {offsets = [16, 0], sizes = [240, 128], strides = [1, 1]} : vector<256x128xbf16> to vector<240x128xbf16>
    %c0_20 = arith.constant 0 : index
    %c768_21 = arith.constant 768 : index
    %55 = vector.load %arg7[%c0_20, %c768_21] : memref<256x1152xbf16, #tpu.memory_space<vmem>>, vector<240x128xbf16>
    tpu.vector_store %arg7[%c0_20, %c768_21], %54 {strides = array<i32>} : memref<256x1152xbf16, #tpu.memory_space<vmem>>, vector<240x128xbf16>,
    %56 = vector.extract_strided_slice %39 {offsets = [16, 0], sizes = [240, 128], strides = [1, 1]} : vector<256x128xbf16> to vector<240x128xbf16>
    %c0_22 = arith.constant 0 : index
    %c896_23 = arith.constant 896 : index
    %57 = vector.load %arg7[%c0_22, %c896_23] : memref<256x1152xbf16, #tpu.memory_space<vmem>>, vector<240x128xbf16>
    tpu.vector_store %arg7[%c0_22, %c896_23], %56 {strides = array<i32>} : memref<256x1152xbf16, #tpu.memory_space<vmem>>, vector<240x128xbf16>,
    %58 = vector.extract_strided_slice %44 {offsets = [16, 0], sizes = [240, 128], strides = [1, 1]} : vector<256x128xbf16> to vector<240x128xbf16>
    %c0_24 = arith.constant 0 : index
    %c1024_25 = arith.constant 1024 : index
    %59 = vector.load %arg7[%c0_24, %c1024_25] : memref<256x1152xbf16, #tpu.memory_space<vmem>>, vector<240x128xbf16>
    tpu.vector_store %arg7[%c0_24, %c1024_25], %58 {strides = array<i32>} : memref<256x1152xbf16, #tpu.memory_space<vmem>>, vector<240x128xbf16>,
    %c0_26 = arith.constant 0 : index
    %c0_27 = arith.constant 0 : index
    %60 = vector.load %arg7[%c0_26, %c0_27] : memref<256x1152xbf16, #tpu.memory_space<vmem>>, vector<256x1152xbf16>
    %c0_28 = arith.constant 0 : index
    %c0_29 = arith.constant 0 : index
    %61 = vector.load %arg2[%c0_28, %c0_29] : memref<1152x128xbf16, #tpu.memory_space<vmem>>, vector<1152x128xbf16>
    %cst_30 = arith.constant dense<0.000000e+00> : vector<256x128xf32>
    %62 = tpu.matmul %60, %61, %cst_30 {dimension_numbers = #tpu.dot_dimension_numbers<[1], [0], [0], [1], [0, 0, 1, 1], [], []>} : vector<256x1152xbf16>, vector<1152x128xbf16>, vector<256x128xf32> -> vector<256x128xf32>
    %c0_31 = arith.constant 0 : index
    %c0_32 = arith.constant 0 : index
    %63 = vector.load %arg3[%c0_31, %c0_32] : memref<1x128xf32, #tpu.memory_space<vmem>>, vector<1x128xf32>
    %64 = vector.broadcast %63 : vector<1x128xf32> to vector<256x128xf32>
    %65 = arith.addf %62, %64 : vector<256x128xf32>
    %cst_33 = arith.constant 0.000000e+00 : f32
    %66 = vector.broadcast %cst_33 : f32 to vector<256x128xf32>
    %67 = arith.maximumf %65, %66 : vector<256x128xf32>
    %68 = vector.extract_strided_slice %67 {offsets = [255, 0], sizes = [1, 128], strides = [1, 1]} : vector<256x128xf32> to vector<1x128xf32>
    %69 = vector.extract_strided_slice %67 {offsets = [0, 0], sizes = [255, 128], strides = [1, 1]} : vector<256x128xf32> to vector<255x128xf32>
    %70 = tpu.concatenate %68, %69 in 0 : vector<1x128xf32>, vector<255x128xf32> -> vector<256x128xf32>
    %71 = arith.mulf %70, %22 : vector<256x128xf32>
    %72 = arith.truncf %71 : vector<256x128xf32> to vector<256x128xbf16>
    %73 = arith.truncf %67 : vector<256x128xf32> to vector<256x128xbf16>
    %74 = vector.extract_strided_slice %67 {offsets = [1, 0], sizes = [255, 128], strides = [1, 1]} : vector<256x128xf32> to vector<255x128xf32>
    %75 = vector.extract_strided_slice %67 {offsets = [0, 0], sizes = [1, 128], strides = [1, 1]} : vector<256x128xf32> to vector<1x128xf32>
    %76 = tpu.concatenate %74, %75 in 0 : vector<255x128xf32>, vector<1x128xf32> -> vector<256x128xf32>
    %77 = arith.mulf %76, %26 : vector<256x128xf32>
    %78 = arith.truncf %77 : vector<256x128xf32> to vector<256x128xbf16>
    %79 = vector.extract_strided_slice %72 {offsets = [0, 0], sizes = [240, 128], strides = [1, 1]} : vector<256x128xbf16> to vector<240x128xbf16>
    %c16_34 = arith.constant 16 : index
    %c0_35 = arith.constant 0 : index
    %80 = vector.load %arg7[%c16_34, %c0_35] : memref<256x1152xbf16, #tpu.memory_space<vmem>>, vector<240x128xbf16>
    tpu.vector_store %arg7[%c16_34, %c0_35], %79 {strides = array<i32>} : memref<256x1152xbf16, #tpu.memory_space<vmem>>, vector<240x128xbf16>,
    %81 = vector.extract_strided_slice %73 {offsets = [0, 0], sizes = [240, 128], strides = [1, 1]} : vector<256x128xbf16> to vector<240x128xbf16>
    %c16_36 = arith.constant 16 : index
    %c128_37 = arith.constant 128 : index
    %82 = vector.load %arg7[%c16_36, %c128_37] : memref<256x1152xbf16, #tpu.memory_space<vmem>>, vector<240x128xbf16>
    tpu.vector_store %arg7[%c16_36, %c128_37], %81 {strides = array<i32>} : memref<256x1152xbf16, #tpu.memory_space<vmem>>, vector<240x128xbf16>,
    %83 = vector.extract_strided_slice %78 {offsets = [0, 0], sizes = [240, 128], strides = [1, 1]} : vector<256x128xbf16> to vector<240x128xbf16>
    %c16_38 = arith.constant 16 : index
    %c256_39 = arith.constant 256 : index
    %84 = vector.load %arg7[%c16_38, %c256_39] : memref<256x1152xbf16, #tpu.memory_space<vmem>>, vector<240x128xbf16>
    tpu.vector_store %arg7[%c16_38, %c256_39], %83 {strides = array<i32>} : memref<256x1152xbf16, #tpu.memory_space<vmem>>, vector<240x128xbf16>,
    %c0_40 = arith.constant 0 : index
    %c384_41 = arith.constant 384 : index
    %85 = vector.load %arg7[%c0_40, %c384_41] : memref<256x1152xbf16, #tpu.memory_space<vmem>>, vector<256x128xbf16>
    tpu.vector_store %arg7[%c0_40, %c384_41], %72 {strides = array<i32>} : memref<256x1152xbf16, #tpu.memory_space<vmem>>, vector<256x128xbf16>,
    %c0_42 = arith.constant 0 : index
    %c512_43 = arith.constant 512 : index
    %86 = vector.load %arg7[%c0_42, %c512_43] : memref<256x1152xbf16, #tpu.memory_space<vmem>>, vector<256x128xbf16>
    tpu.vector_store %arg7[%c0_42, %c512_43], %73 {strides = array<i32>} : memref<256x1152xbf16, #tpu.memory_space<vmem>>, vector<256x128xbf16>,
    %c0_44 = arith.constant 0 : index
    %c640_45 = arith.constant 640 : index
    %87 = vector.load %arg7[%c0_44, %c640_45] : memref<256x1152xbf16, #tpu.memory_space<vmem>>, vector<256x128xbf16>
    tpu.vector_store %arg7[%c0_44, %c640_45], %78 {strides = array<i32>} : memref<256x1152xbf16, #tpu.memory_space<vmem>>, vector<256x128xbf16>,
    %88 = vector.extract_strided_slice %72 {offsets = [16, 0], sizes = [240, 128], strides = [1, 1]} : vector<256x128xbf16> to vector<240x128xbf16>
    %c0_46 = arith.constant 0 : index
    %c768_47 = arith.constant 768 : index
    %89 = vector.load %arg7[%c0_46, %c768_47] : memref<256x1152xbf16, #tpu.memory_space<vmem>>, vector<240x128xbf16>
    tpu.vector_store %arg7[%c0_46, %c768_47], %88 {strides = array<i32>} : memref<256x1152xbf16, #tpu.memory_space<vmem>>, vector<240x128xbf16>,
    %90 = vector.extract_strided_slice %73 {offsets = [16, 0], sizes = [240, 128], strides = [1, 1]} : vector<256x128xbf16> to vector<240x128xbf16>
    %c0_48 = arith.constant 0 : index
    %c896_49 = arith.constant 896 : index
    %91 = vector.load %arg7[%c0_48, %c896_49] : memref<256x1152xbf16, #tpu.memory_space<vmem>>, vector<240x128xbf16>
    tpu.vector_store %arg7[%c0_48, %c896_49], %90 {strides = array<i32>} : memref<256x1152xbf16, #tpu.memory_space<vmem>>, vector<240x128xbf16>,
    %92 = vector.extract_strided_slice %78 {offsets = [16, 0], sizes = [240, 128], strides = [1, 1]} : vector<256x128xbf16> to vector<240x128xbf16>
    %c0_50 = arith.constant 0 : index
    %c1024_51 = arith.constant 1024 : index
    %93 = vector.load %arg7[%c0_50, %c1024_51] : memref<256x1152xbf16, #tpu.memory_space<vmem>>, vector<240x128xbf16>
    tpu.vector_store %arg7[%c0_50, %c1024_51], %92 {strides = array<i32>} : memref<256x1152xbf16, #tpu.memory_space<vmem>>, vector<240x128xbf16>,
    %c0_52 = arith.constant 0 : index
    %c0_53 = arith.constant 0 : index
    %94 = vector.load %arg7[%c0_52, %c0_53] : memref<256x1152xbf16, #tpu.memory_space<vmem>>, vector<256x1152xbf16>
    %c0_54 = arith.constant 0 : index
    %c0_55 = arith.constant 0 : index
    %95 = vector.load %arg4[%c0_54, %c0_55] : memref<1152x128xbf16, #tpu.memory_space<vmem>>, vector<1152x128xbf16>
    %cst_56 = arith.constant dense<0.000000e+00> : vector<256x128xf32>
    %96 = tpu.matmul %94, %95, %cst_56 {dimension_numbers = #tpu.dot_dimension_numbers<[1], [0], [0], [1], [0, 0, 1, 1], [], []>} : vector<256x1152xbf16>, vector<1152x128xbf16>, vector<256x128xf32> -> vector<256x128xf32>
    %c0_57 = arith.constant 0 : index
    %c0_58 = arith.constant 0 : index
    %97 = vector.load %arg5[%c0_57, %c0_58] : memref<1x128xf32, #tpu.memory_space<vmem>>, vector<1x128xf32>
    %98 = vector.broadcast %97 : vector<1x128xf32> to vector<256x128xf32>
    %99 = arith.addf %96, %98 : vector<256x128xf32>
    %100 = arith.addf %99, %1 : vector<256x128xf32>
    %cst_59 = arith.constant 0.000000e+00 : f32
    %101 = vector.broadcast %cst_59 : f32 to vector<256x128xf32>
    %102 = arith.maximumf %100, %101 : vector<256x128xf32>
    %c0_60 = arith.constant 0 : index
    %c0_61 = arith.constant 0 : index
    %c0_62 = arith.constant 0 : index
    %103 = vector.load %arg6[%c0_60, %c0_61, %c0_62] : memref<1x256x128xf32, #tpu.memory_space<vmem>>, vector<1x256x128xf32>
    %104 = vector.shape_cast %103 : vector<1x256x128xf32> to vector<256x128xf32>
    %105 = vector.shape_cast %102 : vector<256x128xf32> to vector<1x256x128xf32>
    tpu.vector_store %arg6[%c0_60, %c0_61, %c0_62], %105 {strides = array<i32>} : memref<1x256x128xf32, #tpu.memory_space<vmem>>, vector<1x256x128xf32>,
    return
  }
  func.func @transform_0(%arg0: i32) -> (i32, i32, i32) {
    %c0_i32 = arith.constant 0 : i32
    %c0_i32_0 = arith.constant 0 : i32
    %c0_i32_1 = arith.constant 0 : i32
    return %arg0, %c0_i32, %c0_i32_0 : i32, i32, i32
  }
  func.func @transform_1(%arg0: i32) -> (i32, i32) {
    %c0_i32 = arith.constant 0 : i32
    %c0_i32_0 = arith.constant 0 : i32
    %c0_i32_1 = arith.constant 0 : i32
    return %c0_i32, %c0_i32_0 : i32, i32
  }
  func.func @transform_2(%arg0: i32) -> (i32, i32) {
    %c0_i32 = arith.constant 0 : i32
    %c0_i32_0 = arith.constant 0 : i32
    %c0_i32_1 = arith.constant 0 : i32
    return %c0_i32, %c0_i32_0 : i32, i32
  }
  func.func @transform_3(%arg0: i32) -> (i32, i32) {
    %c0_i32 = arith.constant 0 : i32
    %c0_i32_0 = arith.constant 0 : i32
    %c0_i32_1 = arith.constant 0 : i32
    return %c0_i32, %c0_i32_0 : i32, i32
  }
  func.func @transform_4(%arg0: i32) -> (i32, i32) {
    %c0_i32 = arith.constant 0 : i32
    %c0_i32_0 = arith.constant 0 : i32
    %c0_i32_1 = arith.constant 0 : i32
    return %c0_i32, %c0_i32_0 : i32, i32
  }
  func.func @transform_5(%arg0: i32) -> (i32, i32, i32) {
    %c0_i32 = arith.constant 0 : i32
    %c0_i32_0 = arith.constant 0 : i32
    %c0_i32_1 = arith.constant 0 : i32
    return %arg0, %c0_i32, %c0_i32_0 : i32, i32, i32
  }
}

</mosaic_0001>

<bundles_post_ra>
// kernel: tpu_custom_call.1
= control target key start
LH: loop header
LB: loop body
LE: loop exit
PB: predicated region body
PF: predicated region fallthrough
CT: control target
= control target key end

     0   :  { %10 = vsyncpa [#allocation4], 0  ;;  %s9205_s0 = inlined_call_operand.hbm [shape: f32[2,256,128], index: 0, kind: input, shape index: {}]   ;;  %s9206_s1 = inlined_call_operand.hbm [shape: bf16[1152,128], index: 1, kind: input, shape index: {}]   ;;  %s9207_s2 = inlined_call_operand.hbm [shape: f32[1,128], index: 2, kind: input, shape index: {}]   ;;  %s9208_s3 = inlined_call_operand.hbm [shape: bf16[1152,128], index: 3, kind: input, shape index: {}]   ;;  %s9209_s4 = inlined_call_operand.hbm [shape: f32[1,128], index: 4, kind: input, shape index: {}]   ;;  %s9210_s5 = inlined_call_operand.hbm [shape: f32[2,256,128], index: 5, kind: output, shape index: {}]  }
   0x1   :  { %12 = vsyncpa [#allocation4 + $0x1], 0 }
   0x2   :  { %13 = vsyncpa [#allocation7], 0 }
   0x3   :  { %14 = vsyncpa [#allocation10], 0 }
   0x4   :  { %15 = vsyncpa [#allocation5], 0 }
   0x5   :  { %17 = vsyncpa [#allocation5 + $0x1], 0  ;;  %s6992_s18 = smov 0   ;;  %s6994_s19 = smov 0  }
   0x6   :  { %s6996_s20 = smov 0   ;;  %s6998_s21 = smov 0  }
   0x7 LB: > { %s7013_s22 = sadd.s32 4294967295, %s6946_s21   ;;  %s5216_s23 = sadd.s32 4294967294, %s6946_s21   ;;  %s6946_s21 = sphi %s6998_s21, %s9509_s21   ;;  %s6942_s20 = sphi %s6996_s20, %s9508_s20   ;;  %s6938_s19 = sphi %s6994_s19, %s9507_s19   ;;  %s6934_s18 = sphi %s6992_s18, %s9506_s18  }
   0x8   : > { %p43_p0 = scmp.ne.s32.totalorder %s6938_s19, %s6934_s18  ;;  %p9211_p1 = scmp.eq.s32.totalorder %s7013_s22, 0 }
   0x9   : > { %p157_p3 = scmp.eq.s32.totalorder %s5216_s23, 1  ;;  %p5217_p5 = scmp.ge.s32.totalorder %s6946_s21, 1 }
   0xa   : > { %p7022_p4 = por %p9211_p1, %p43_p0  ;;  %p164_p7 = scmp.lt.s32.totalorder %s6946_s21, 3 }
   0xb   : > { %p7027_p6 = por %p157_p3, %p43_p0  ;;  %s6948_s27 = smov [#allocation6]  }
   0xc   : > { %s9272_s24 = scalar_select %p7022_p4, 1, 0 }
   0xd   : > { %s9273_s25 = scalar_select %p7027_p6, 1, 0 }
   0xe   : > { %p7032_p8 = pnand %p5217_p5, %p164_p7  ;;  %s176_s28 = sshll.u32 %s6948_s27, 4  ;;  %s7036_s28 = int_to_ptr.vmem [resolvable:$true] %s176_s28 }
   0xf   : > { %s6949_s30 = smov [#allocation9]   ;;  %s6950_s7 = smov [#allocation8]  }
  0x10   : > { %s9274_s26 = scalar_select %p7032_p8, 1, 0 }
  0x11   : > { %p6478_p9 = pneg %p7032_p8  ;;  %s200_s6 = sshll.u32 %s6949_s30, 4  ;;  %s7047_s6 = int_to_ptr.vmem [resolvable:$true] %s200_s6 }
  0x12   : > { %s7049_s8 = sshll.u32 %s6950_s7, 4  ;;  %s6730_s11 = scalar_lea.hbm %s9206_s1, 9216  ;;  %s191_s8 = int_to_ptr.vmem [resolvable:$true] %s7049_s8 }
  0x13   : > { %p7043_p11 = pnand %p6478_p9, %p9211_p1  ;;  %p6731_p12 = scmp.ne.s32.totalorder %s9206_s1, %s6730_s11 }
  0x14   : > { %p6737_p5 = scmp.lt.u32.totalorder %s6730_s11, %s9206_s1 }
  0x15   : > { %p7059_p13 = pneg %p7043_p11 }
  0x17   : > { %p6733_p0 = pnand %p7059_p13, %p6731_p12 }
  0x19   : > { %p6734_p3 = pneg %p6733_p0 }
  0x1b   : > { %p6739_p7 = pnand %p6737_p5, %p6734_p3 }
  0x1d   : > { %6742 = shalt.err (!%p6739_p7)
}
  0x1e   : > { %s6743_s17 = scalar_lea.vmem %s7036_s28, 9216  ;;  %p6751_p2 = scmp.lt.s32.totalorder %s7036_s28, %s7036_s28 }
  0x1f   : > { %p6744_p9 = scmp.ne.s32.totalorder %s7036_s28, %s6743_s17  ;;  %p6752_p6 = scmp.lt.s32.totalorder %s6743_s17, %s6743_s17 }
  0x21   : > { %p6746_p10 = pnand %p6744_p9, %p7059_p13  ;;  %p6753_p12 = por %p6752_p6, %p6751_p2 }
  0x23   : > { %p6747_p1 = pneg %p6746_p10 }
  0x25   : > { %p6754_p0 = pnand %p6753_p12, %p6747_p1 }
  0x27   : > { %6757 = shalt.err (!%p6754_p0)
}
  0x28   : > { %s6951_s23 = smov 64   ;;  %s6952_s27 = smov 4  }
  0x29   : > { %6481 = dma.hbm_to_vmem [thread:$0]  (!%p7043_p11), %s9206_s1, 9216, %s7036_s28, [#allocation7], %s6951_s23, %s6951_s23, %s6952_s27  }
  0x2a   : > { %s6758_s11 = scalar_lea.hbm %s9208_s3, 9216 }
  0x2b   : > { %p6759_p2 = scmp.ne.s32.totalorder %s9208_s3, %s6758_s11  ;;  %p6765_p10 = scmp.lt.u32.totalorder %s6758_s11, %s9208_s3 }
  0x2d   : > { %p6761_p1 = pnand %p6759_p2, %p7059_p13 }
  0x2f   : > { %p6762_p6 = pneg %p6761_p1 }
  0x31   : > { %p6767_p3 = pnand %p6765_p10, %p6762_p6 }
  0x33   : > { %6770 = shalt.err (!%p6767_p3)
}
  0x34   : > { %s6771_s28 = scalar_lea.vmem %s7047_s6, 9216  ;;  %p6779_p12 = scmp.lt.s32.totalorder %s7047_s6, %s7047_s6 }
  0x35   : > { %p6772_p5 = scmp.ne.s32.totalorder %s7047_s6, %s6771_s28  ;;  %p6780_p0 = scmp.lt.s32.totalorder %s6771_s28, %s6771_s28 }
  0x37   : > { %p6774_p7 = pnand %p6772_p5, %p7059_p13  ;;  %p6781_p2 = por %p6780_p0, %p6779_p12 }
  0x39   : > { %p6775_p9 = pneg %p6774_p7 }
  0x3b   : > { %p6782_p1 = pnand %p6781_p2, %p6775_p9 }
  0x3d   : > { %6785 = shalt.err (!%p6782_p1)
}
  0x3e   : > { %6487 = dma.hbm_to_vmem [thread:$0]  (!%p7043_p11), %s9208_s3, 9216, %s7047_s6, [#allocation10], %s6951_s23, %s6951_s23, %s6952_s27  }
  0x3f   : > { %s6786_s10 = scalar_lea.hbm %s9207_s2, 16 }
  0x40   : > { %p6787_p6 = scmp.ne.s32.totalorder %s9207_s2, %s6786_s10  ;;  %p6793_p5 = scmp.lt.u32.totalorder %s6786_s10, %s9207_s2 }
  0x42   : > { %p6789_p10 = pnand %p6787_p6, %p7059_p13 }
  0x44   : > { %p6790_p3 = pneg %p6789_p10 }
  0x46   : > { %p6795_p7 = pnand %p6793_p5, %p6790_p3 }
  0x48   : > { %6798 = shalt.err (!%p6795_p7)
}
  0x49   : > { %s6799_s16 = scalar_lea.vmem %s191_s8, 16  ;;  %s6806_s6 = scalar_lea.vmem %s191_s8, 32 }
  0x4a   : > { %p6800_p9 = scmp.ne.s32.totalorder %s191_s8, %s6799_s16  ;;  %p6807_p2 = scmp.lt.s32.totalorder %s191_s8, %s191_s8 }
  0x4b   : > { %p6808_p1 = scmp.lt.s32.totalorder %s6806_s6, %s6799_s16 }
  0x4c   : > { %p6802_p12 = pnand %p6800_p9, %p7059_p13 }
  0x4d   : > { %p6809_p4 = por %p6808_p1, %p6807_p2 }
  0x4e   : > { %p6803_p0 = pneg %p6802_p12 }
  0x50   : > { %p6810_p8 = pnand %p6809_p4, %p6803_p0 }
  0x52   : > { %6813 = shalt.err (!%p6810_p8)
}
  0x53   : > { %6484 = dma.hbm_to_vmem [thread:$0]  (!%p7043_p11), %s9207_s2, 16, %s191_s8, [#allocation7]  }
  0x54   : > { %s6953_s28 = smov [#allocation11]   ;;  %s6814_s9 = scalar_lea.hbm %s9209_s4, 16 }
  0x55   : > { %s214_s17 = sshll.u32 %s6953_s28, 4  ;;  %p6815_p6 = scmp.ne.s32.totalorder %s9209_s4, %s6814_s9  ;;  %s215_s17 = int_to_ptr.vmem [resolvable:$true] %s214_s17 }
  0x56   : > { %p6821_p10 = scmp.lt.u32.totalorder %s6814_s9, %s9209_s4 }
  0x57   : > { %p6817_p4 = pnand %p6815_p6, %p7059_p13 }
  0x59   : > { %p6818_p8 = pneg %p6817_p4 }
  0x5b   : > { %p6823_p3 = pnand %p6821_p10, %p6818_p8 }
  0x5d   : > { %6826 = shalt.err (!%p6823_p3)
}
  0x5e   : > { %s6827_s8 = scalar_lea.vmem %s215_s17, 16  ;;  %s6834_s15 = scalar_lea.vmem %s215_s17, 32 }
  0x5f   : > { %p6828_p5 = scmp.ne.s32.totalorder %s215_s17, %s6827_s8  ;;  %p6835_p12 = scmp.lt.s32.totalorder %s215_s17, %s215_s17 }
  0x60   : > { %p6836_p0 = scmp.lt.s32.totalorder %s6834_s15, %s6827_s8 }
  0x61   : > { %p6830_p7 = pnand %p6828_p5, %p7059_p13 }
  0x62   : > { %p6837_p2 = por %p6836_p0, %p6835_p12 }
  0x63   : > { %p6831_p9 = pneg %p6830_p7 }
  0x65   : > { %p6838_p1 = pnand %p6837_p2, %p6831_p9 }
  0x67   : > { %6841 = shalt.err (!%p6838_p1)
}
  0x68   : > { %6490 = dma.hbm_to_vmem [thread:$0]  (!%p7043_p11), %s9209_s4, 16, %s215_s17, [#allocation10]  }
  0x69   : > { %s7141_s14 = sadd.s32 1, %s6946_s21   ;;  %s30_s23 = sadd.s32 1, %s6942_s20 }
  0x6a   : > { %s27_s29 = ssub.s32 %s6946_s21, %s7141_s14  ;;  %p37_p13 = scmp.ne.s32.totalorder %s6942_s20, %s6938_s19 }
  0x6b   : > { %p28_p6 = scmp.eq.s32.totalorder %s27_s29, 0  ;;  %p38_p4 = scmp.eq.s32.totalorder %s6946_s21, 0 }
  0x6c   : > { %p9277_p8 = scmp.eq.s32.totalorder %s7013_s22, 1  ;;  %p6503_p3 = scmp.lt.s32.totalorder %s6946_s21, 2 }
  0x6d   : > { %s7157_s28 = scalar_select %p28_p6, %s6942_s20, %s30_s23  }
  0x6e   : > { %p7151_p10 = por %p9277_p8, %p37_p13  ;;  %p39_p5 = por %p38_p4, %p37_p13 }
  0x6f   : > { %s225_s30 = sand.u32 1, %s6942_s20   ;;  %s5416_s17 = sshll.u32 %s6946_s21, 12 }
  0x70   : > { %s5223_s7 = sshll.u32 %s225_s30, 8  ;;  %s7164_s11 = scalar_lea.hbm %s9205_s0, %s5416_s17 }
  0x71   : > { %s229_s12 = scalar_lea.vmem [#allocation3], %s5223_s7  ;;  %p7168_p11 = pnand %p6503_p3, %p39_p5 }
  0x72   : > { %s236_s13 = sshll.u32 %s229_s12, 4  ;;  %s7172_s15 = scalar_lea.sflag [#allocation4], %s225_s30  ;;  %s7166_s13 = int_to_ptr.vmem [resolvable:$true] %s236_s13 }
  0x73   : > { %s6842_s16 = scalar_lea.hbm %s7164_s11, 4096  ;;  %p6844_p9 = pneg %p7168_p11 }
  0x74   : > { %p6843_p7 = scmp.ne.s32.totalorder %s7164_s11, %s6842_s16  ;;  %s6847_s29 = scalar_lea.hbm %s9205_s0, 8192 }
  0x75   : > { %p6848_p2 = scmp.lt.u32.totalorder %s7164_s11, %s9205_s0  ;;  %p6849_p1 = scmp.lt.u32.totalorder %s6847_s29, %s6842_s16 }
  0x76   : > { %p6845_p12 = pnand %p6844_p9, %p6843_p7  ;;  %p6851_p6 = scmp.lt.u32.totalorder %s6842_s16, %s7164_s11 }
  0x77   : > { %p6850_p13 = por %p6849_p1, %p6848_p2 }
  0x78   : > { %p6846_p0 = pneg %p6845_p12 }
  0x79   : > { %p6852_p4 = por %p6851_p6, %p6850_p13 }
  0x7b   : > { %p6853_p8 = pnand %p6852_p4, %p6846_p0 }
  0x7d   : > { %6856 = shalt.err (!%p6853_p8)
}
  0x7e   : > { %s6857_s30 = scalar_lea.vmem %s7166_s13, 4096  ;;  %s6954_s9 = smov [#allocation3]  }
  0x7f   : > { %p6858_p3 = scmp.ne.s32.totalorder %s7166_s13, %s6857_s30  ;;  %s6862_s10 = sshll.u32 %s6954_s9, 4  ;;  %s6863_s10 = int_to_ptr.vmem [resolvable:$false] %s6862_s10 }
  0x80   : > { %s6864_s12 = scalar_lea.vmem %s6863_s10, 8192  ;;  %p6865_p12 = scmp.lt.s32.totalorder %s7166_s13, %s6863_s10 }
  0x81   : > { %p6860_p5 = pnand %p6858_p3, %p6844_p9  ;;  %p6866_p2 = scmp.lt.s32.totalorder %s6864_s12, %s6857_s30 }
  0x83   : > { %p6861_p7 = pneg %p6860_p5  ;;  %p6867_p1 = por %p6866_p2, %p6865_p12 }
  0x85   : > { %p6868_p13 = pnand %p6867_p1, %p6861_p7 }
  0x87   : > { %6871 = shalt.err (!%p6868_p13)
}
  0x88   : > { %s6955_s16 = smov 128   ;;  %s6956_s6 = smov 8  }
  0x89   : > { %6494 = dma.hbm_to_vmem [thread:$0]  (!%p7168_p11), %s7164_s11, 4096, %s7166_s13, %s7172_s15, %s6955_s16, %s6955_s16, %s6956_s6  }
  0x8a   : > { %p9280_p9 = scmp.ne.s32.totalorder %s9274_s26, 0 }
  0x8c   : > { %248 = sbr.rel (%p9280_p9) target bundleno = 1271 (0x4f7), region = 40 }
  0x93   : > { %s7203_s23 = sand.u32 1, %s6938_s19   ;;  %p9281_p0 = scmp.ne.s32.totalorder %s9272_s24, 0 }
  0x94   : > { %s5227_s29 = sshll.u32 %s7203_s23, 8  ;;  %s251_s7 = scalar_lea.sflag [#allocation4], %s7203_s23 }
  0x95   : > { %s7209_s17 = scalar_lea.vmem [#allocation3], %s5227_s29 }
  0x96   : > { %6917 = dma.done.wait (%p9281_p0), %s251_s7, 4096  }
  0x97   : > { %6919 = vsyncadd (%p9281_p0), %s251_s7, 4294963200  ;;  %p9282_p11 = scmp.eq.s32.totalorder %s7013_s22, 0 }
  0x99   : > { %6921 = dma.done.wait (%p9282_p11), [#allocation7], 9232   ;;  %p9283_p6 = pmov %p9282_p11 }
  0x9b   : > { %6923 = vsyncadd (%p9283_p6), [#allocation7], 4294958064  ;;  %p9284_p4 = pmov %p9283_p6 }
  0x9d   : > { %6925 = dma.done.wait (%p9284_p4), [#allocation10], 9232   ;;  %p9285_p8 = pmov %p9284_p4 }
  0x9e   : > { %v9214_v0 = vmov 0   ;;  %v6553_v1 = vld [vmem:[#allocation6 + $0x40] sm:$0xff]   ;;  %v6557_v5 = vld [vmem:[#allocation6 + $0x48] sm:$0xff]   ;;  %v6561_v9 = vld [vmem:[#allocation6 + $0x50] sm:$0xff]   ;;  %v330_v14 = vlaneseq  ;;  %vm979_vm0 = vcmask 1040384   ;;  %vm1139_vm2 = vcmask 1046528  }
  0x9f   : > { %6927 = vsyncadd (%p9285_p8), [#allocation10], 4294958064  ;;  %2182 = vmatprep.mubr.bf16.mxu0 %v9214_v0  ;;  %v6554_v2 = vld [vmem:[#allocation6] sm:$0xff]   ;;  %5418 = vmatprep.subr.bf16.mxu0 %v6553_v1  ;;  %v6558_v6 = vld [vmem:[#allocation6 + $0x8] sm:$0xff]   ;;  %v9220_v51 = vmov 0.0   ;;  %s9062_s24 = scalar_lea.vmem [#allocation12], %s5227_s29 }
  0xa0   : > { %v6555_v3 = vld [vmem:[#allocation6 + $0xc0] sm:$0xff]   ;;  %5419 = vmatpush3.bf16.msra.mxu0 %v6554_v2  ;;  %v6559_v7 = vld [vmem:[#allocation6 + $0xc8] sm:$0xff]   ;;  %v6562_v10 = vld [vmem:[#allocation6 + $0x10] sm:$0xff]   ;;  %v7224_v19 = vshrl.u32 %v330_v14, 7  ;;  %s5417_s26 = sshll.u32 %s7013_s22, 12  ;;  %s5105_s11 = sshll.u32 %s9062_s24, 4  ;;  %s9158_s11 = int_to_ptr.vmem [resolvable:$true] %s5105_s11 }
  0xa1   : > { %v6556_v4 = vld [vmem:[#allocation6 + $0x80] sm:$0xff]   ;;  %5530 = vmatprep.subr.bf16.mxu1 %v6555_v3  ;;  %5420 = vmatprep.subr.bf16.mxu0 %v6557_v5  ;;  %v6560_v8 = vld [vmem:[#allocation6 + $0x88] sm:$0xff]   ;;  %v6563_v11 = vld [vmem:[#allocation6 + $0xd0] sm:$0xff]   ;;  %s9156_s15 = scalar_lea.hbm %s9210_s5, %s5417_s26  ;;  %s5092_s22 = scalar_lea.sflag [#allocation5], %s7203_s23 }
  0xa2   : > { %5531 = vmatpush3.bf16.msra.mxu1 %v6556_v4  ;;  %v6564_v12 = vld [vmem:[#allocation6 + $0x90] sm:$0xff]   ;;  %v6565_v13 = vld [vmem:[#allocation6 + $0x58] sm:$0xff]   ;;  %v6569_v18 = vld [vmem:[#allocation6 + $0x60] sm:$0xff]   ;;  %v367_v24 = vand.u32 15, %v7224_v19  ;;  %v333_v26 = vadd.s32 16, %v7224_v19  ;;  %v332_v28 = vadd.s32 8, %v7224_v19 }
  0xa3   : > { %5532 = vmatprep.subr.bf16.mxu1 %v6559_v7  ;;  %v6566_v15 = vld [vmem:[#allocation6 + $0x18] sm:$0xff]   ;;  %v6570_v20 = vld [vmem:[#allocation6 + $0x20] sm:$0xff]   ;;  %v6573_v23 = vld [vmem:[#allocation6 + $0x68] sm:$0xff]   ;;  %v335_v30 = vadd.s32 32, %v7224_v19  ;;  %v7231_v32 = vadd.s32 24, %v7224_v19  ;;  %v337_v45 = vadd.s32 48, %v7224_v19 }
  0xa4   : > { %5421 = vmatpush3.bf16.msra.mxu0 %v6558_v6  ;;  %v6567_v16 = vld [vmem:[#allocation6 + $0xd8] sm:$0xff]   ;;  %v6571_v21 = vld [vmem:[#allocation6 + $0xe0] sm:$0xff]   ;;  %v6574_v25 = vld [vmem:[#allocation6 + $0x28] sm:$0xff]   ;;  %v381_v34 = vand.u32 15, %v333_v26  ;;  %v374_v36 = vand.u32 15, %v332_v28  ;;  %vm7233_vm1 = vcmp.ge.s32.totalorder %v367_v24, 1 }
  0xa5   : > { %5422 = vmatprep.subr.bf16.mxu0 %v6561_v9  ;;  %v6568_v17 = vld [vmem:[#allocation6 + $0x98] sm:$0xff]   ;;  %v6572_v22 = vld [vmem:[#allocation6 + $0xa0] sm:$0xff]   ;;  %v6575_v27 = vld [vmem:[#allocation6 + $0xe8] sm:$0xff]   ;;  %v395_v40 = vand.u32 15, %v335_v30  ;;  %v7256_v52 = vsel %vm7233_vm1, 1.0, %v9220_v51  ;;  %v339_v30 = vadd.s32 64, %v7224_v19 }
  0xa6   : > { %5533 = vmatpush3.bf16.msra.mxu1 %v6560_v8  ;;  %v6576_v29 = vld [vmem:[#allocation6 + $0xa8] sm:$0xff]   ;;  %v6577_v31 = vld [vmem:[#allocation6 + $0x70] sm:$0xff]   ;;  %v6581_v39 = vld [vmem:[#allocation6 + $0x78] sm:$0xff]   ;;  %vm7237_vm3 = vcmp.ge.s32.totalorder %v381_v34, 1  ;;  %vm844_vm4 = vcmp.le.s32.totalorder %v374_v36, 14  ;;  %9293 = vst [vmem:[#allocation18_spill] sm:$0xff] %v7256_v52 }
  0xa7   : > { %5534 = vmatprep.subr.bf16.mxu1 %v6563_v11  ;;  %v6578_v33 = vld [vmem:[#allocation6 + $0x30] sm:$0xff]   ;;  %v6582_v41 = vld [vmem:[#allocation6 + $0x38] sm:$0xff]   ;;  %v6585_v46 = vld [vmem:[#allocation6 + $0x140] sm:$0xff]   ;;  %vm7242_vm5 = vcmp.ge.s32.totalorder %v395_v40, 1  ;;  %v7261_v53 = vsel %vm7237_vm3, 1.0, %v9220_v51  ;;  %v7264_v54 = vsel %vm844_vm4, 1.0, %v9220_v51 }
  0xa8   : > { %5423 = vmatpush3.bf16.msra.mxu0 %v6562_v10  ;;  %v6579_v35 = vld [vmem:[#allocation6 + $0xf0] sm:$0xff]   ;;  %v6583_v43 = vld [vmem:[#allocation6 + $0xf8] sm:$0xff]   ;;  %v7247_v48 = vld [vmem:[%s7209_s17] sm:$0xff]  ;;  %9294 = vst [vmem:[#allocation19_spill] sm:$0xff] %v7261_v53  ;;  %v7281_v63 = vsel %vm7242_vm5, 1.0, %v9220_v51  ;;  %v388_v10 = vand.u32 15, %v7231_v32 }
  0xa9   : > { %5424 = vmatprep.subr.bf16.mxu0 %v6565_v13  ;;  %v6580_v37 = vld [vmem:[#allocation6 + $0xb0] sm:$0xff]   ;;  %v6584_v44 = vld [vmem:[#allocation6 + $0xb8] sm:$0xff]   ;;  %9292 = vst [vmem:[#allocation17_spill] sm:$0xff] %v7247_v48  ;;  %v299_v49 = vld [vmem:[%s7209_s17 + $0x8] sm:$0xff]  ;;  %v980_v56 = vrot.slane %v7247_v48, 7  ;;  %v409_v11 = vand.u32 15, %v337_v45 }
  0xaa   : > { %5535 = vmatpush3.bf16.msra.mxu1 %v6564_v12  ;;  %v7251_v50 = vld [vmem:[%s7209_s17 + $0xf8] sm:$0xff]  ;;  %9295 = vst [vmem:[#allocation20_spill] sm:$0xff] %v7264_v54  ;;  %v981_v57 = vrot.slane %v299_v49, 7  ;;  %v6586_v58 = vld [vmem:[#allocation6 + $0x100] sm:$0xff]   ;;  %v7270_v59 = vpack.c.bf16 %v299_v49, %v7247_v48  ;;  %v7273_v60 = vld [vmem:[%s7209_s17 + $0x10] sm:$0xff]  ;;  %v1141_v62 = vrot.slane %v299_v49, 1 }
  0xab   : > { %5536 = vmatprep.subr.bf16.mxu1 %v6567_v16  ;;  %v9217_v55 = vrot.slane %v7251_v50, 7  ;;  %v7276_v61 = vld [vmem:[%s7209_s17 + $0x18] sm:$0xff]  ;;  %9296 = vst [vmem:[#allocation21_spill] sm:$0xff] %v7281_v63  ;;  %v983_v3 = vrot.slane %v7273_v60, 7  ;;  %v1143_v6 = vrot.slane %v7273_v60, 1  ;;  %v6587_v7 = vld [vmem:[#allocation6 + $0x148] sm:$0xff]  }
  0xac   : > { %5425 = vmatpush3.bf16.msra.mxu0 %v6566_v15  ;;  %v982_v1 = vsel %vm979_vm0, %v980_v56, %v981_v57  ;;  %v985_v4 = vrot.slane %v7276_v61, 7  ;;  %v7293_v8 = vld [vmem:[%s7209_s17 + $0x20] sm:$0xff]  ;;  %v7296_v9 = vld [vmem:[%s7209_s17 + $0x28] sm:$0xff]  ;;  %v9216_v14 = vrot.slane %v7247_v48, 1  ;;  %v6589_v24 = vld [vmem:[#allocation6 + $0x150] sm:$0xff]   ;;  %vm846_vm6 = vcmp.le.s32.totalorder %v388_v10, 14 }
  0xad   : > { %5426 = vmatprep.subr.bf16.mxu0 %v6569_v18  ;;  %v1074_v2 = vsel %vm979_vm0, %v9217_v55, %v980_v56  ;;  %v984_v12 = vsel %vm979_vm0, %v981_v57, %v983_v3  ;;  %v987_v15 = vrot.slane %v7293_v8, 7  ;;  %v1144_v18 = vsel %vm1139_vm2, %v1141_v62, %v1143_v6  ;;  %v7316_v26 = vld [vmem:[%s7209_s17 + $0x30] sm:$0xff]  ;;  %v6591_v38 = vld [vmem:[#allocation6 + $0x158] sm:$0xff]   ;;  %v6593_v57 = vld [vmem:[#allocation6 + $0x1c0] sm:$0xff]   ;;  %s6872_s30 = scalar_lea.vmem %s9158_s11, 4096  ;;  %s6959_s9 = smov [#allocation12]  }
  0xae   : > { %5537 = vmatpush3.bf16.msra.mxu1 %v6568_v17  ;;  %v1075_v5 = vmul.f32 %v7256_v52, %v1074_v2  ;;  %v986_v13 = vsel %vm979_vm0, %v983_v3, %v985_v4  ;;  %v1077_v17 = vmul.f32 %v7261_v53, %v984_v12  ;;  %v1238_v28 = vmul.f32 %v7264_v54, %v1144_v18  ;;  %v7340_v40 = vld [vmem:[%s7209_s17 + $0x38] sm:$0xff]  ;;  %v7536_v55 = vld [vmem:[%s7209_s17 + $0x80] sm:$0xff]  ;;  %p6873_p3 = scmp.ne.s32.totalorder %s9158_s11, %s6872_s30  ;;  %s6876_s10 = sshll.u32 %s6959_s9, 4  ;;  %s6877_s10 = int_to_ptr.vmem [resolvable:$false] %s6876_s10 }
  0xaf   : > { %5538 = vmatprep.subr.bf16.mxu1 %v6571_v21  ;;  %v6588_v21 = vld [vmem:[#allocation6 + $0x108] sm:$0xff]   ;;  %vm7321_vm7 = vcmp.ge.s32.totalorder %v409_v11, 1  ;;  %v1142_v32 = vsel %vm1139_vm2, %v9216_v14, %v1141_v62  ;;  %v1145_v34 = vrot.slane %v7276_v61, 1  ;;  %v6592_v45 = vld [vmem:[#allocation6 + $0x118] sm:$0xff]   ;;  %v7356_v49 = vpack.c.bf16 %v7296_v9, %v7293_v8  ;;  %v6594_v62 = vld [vmem:[#allocation6 + $0x180] sm:$0xff]   ;;  %s6878_s12 = scalar_lea.vmem %s6877_s10, 8192  ;;  %p6879_p12 = scmp.lt.s32.totalorder %s9158_s11, %s6877_s10 }
  0xb0   : > { %5427 = vmatpush3.bf16.msra.mxu0 %v6570_v20  ;;  %v1107_v16 = vpack.c.bf16 %v982_v1, %v1075_v5  ;;  %v7309_v20 = vpack.c.bf16 %v7276_v61, %v7273_v60  ;;  %v7347_v42 = vsel %vm7321_vm7, 1.0, %v9220_v51  ;;  %v338_v56 = vadd.s32 56, %v7224_v19  ;;  %v7362_v1 = vld [vmem:[%s7209_s17 + $0x40] sm:$0xff]  ;;  %p6874_p5 = pnand %p6873_p3, %p7151_p10  ;;  %p6880_p2 = scmp.lt.s32.totalorder %s6878_s12, %s6872_s30 }
  0xb1   : > { %5428 = vmatprep.subr.bf16.mxu0 %v6573_v23  ;;  %v989_v23 = vrot.slane %v7296_v9, 7  ;;  %9300 = vst [vmem:[#allocation23_spill] sm:$0xff] %v7347_v42  ;;  %v993_v61 = vrot.slane %v7340_v40, 7  ;;  %v341_v2 = vadd.s32 80, %v7224_v19  ;;  %v1149_v5 = vrot.slane %v7296_v9, 1  ;;  %v7774_v48 = vld [vmem:[%s7209_s17 + $0xe0] sm:$0xff] }
  0xb2   : > { %5539 = vmatpush3.bf16.msra.mxu1 %v6572_v22  ;;  %v988_v22 = vsel %vm979_vm0, %v985_v4, %v987_v15  ;;  %2343 = vmatprep.mubr.bf16.mxu1 %v1107_v16  ;;  %v1146_v10 = vsel %vm1139_vm2, %v1143_v6, %v1145_v34  ;;  %v1151_v12 = vrot.slane %v7316_v26, 1  ;;  %v416_v60 = vand.u32 15, %v338_v56  ;;  %v7430_v56 = vld [vmem:[%s7209_s17 + $0x58] sm:$0xff]  ;;  %v6602_v4 = vld [vmem:[#allocation6 + $0x190] sm:$0xff]   ;;  %p6875_p7 = pneg %p6874_p5  ;;  %p6881_p1 = por %p6880_p2, %p6879_p12 }
  0xb3   : > { %5540 = vmatprep.subr.bf16.mxu1 %v6575_v27  ;;  %v336_v27 = vadd.s32 40, %v7224_v19  ;;  %v990_v36 = vsel %vm979_vm0, %v987_v15, %v989_v23  ;;  %v437_v6 = vand.u32 15, %v341_v2  ;;  %v340_v18 = vadd.s32 72, %v7224_v19 }
  0xb4   : > { %5429 = vmatpush3.bf16.msra.mxu0 %v6574_v25  ;;  %v7313_v25 = vpack.c.bf16 %v986_v13, %v1077_v17  ;;  %v6596_v13 = vld [vmem:[#allocation6 + $0x120] sm:$0xff]   ;;  %v995_v17 = vrot.slane %v7362_v1, 7  ;;  %vm7417_vm10 = vcmp.le.s32.totalorder %v416_v60, 14  ;;  %v1155_v2 = vrot.slane %v7362_v1, 1  ;;  %p6882_p13 = pnand %p6881_p1, %p6875_p7 }
  0xb5   : > { %5430 = vmatprep.subr.bf16.mxu0 %v6577_v31  ;;  %v6590_v31 = vld [vmem:[#allocation6 + $0x110] sm:$0xff]   ;;  %vm7421_vm11 = vcmp.ge.s32.totalorder %v437_v6, 1  ;;  %v1001_v6 = vrot.slane %v7430_v56, 7  ;;  %v9328_v52 = vmov 0.0  }
  0xb6   : > { %5541 = vmatpush3.bf16.msra.mxu1 %v6576_v29 }
  0xb7   : > { %5542 = vmatprep.subr.bf16.mxu1 %v6579_v35  ;;  %v1147_v35 = vrot.slane %v7293_v8, 1  ;;  %v7450_v8 = vsel %vm7421_vm11, 1.0, %v9220_v51 }
  0xb8   : > { %5431 = vmatpush3.bf16.msra.mxu0 %v6578_v33  ;;  %v1079_v33 = vmul.f32 %v7281_v63, %v988_v22  ;;  %v6598_v22 = vld [vmem:[#allocation6 + $0x188] sm:$0xff]   ;;  %9312 = vst [vmem:[#allocation27_spill] sm:$0xff] %v7450_v8 }
  0xb9   : > { %5432 = vmatprep.subr.bf16.mxu0 %v6581_v39  ;;  %v7337_v39 = vsel %vm846_vm6, 1.0, %v9220_v51  ;;  %v1148_v47 = vsel %vm1139_vm2, %v1145_v34, %v1147_v35 }
  0xba   : > { %5543 = vmatpush3.bf16.msra.mxu1 %v6580_v37  ;;  %v991_v37 = vrot.slane %v7316_v26, 7  ;;  %9299 = vst [vmem:[#allocation22_spill] sm:$0xff] %v7337_v39  ;;  %v1240_v3 = vmul.f32 %v7337_v39, %v1148_v47  ;;  %v1153_v47 = vrot.slane %v7340_v40, 1 }
  0xbb   : > { %5544 = vmatprep.subr.bf16.mxu1 %v6583_v43  ;;  %v402_v43 = vand.u32 15, %v336_v27  ;;  %v6599_v27 = vld [vmem:[#allocation6 + $0x168] sm:$0xff]  }
  0xbc   : > { %5433 = vmatpush3.bf16.msra.mxu0 %v6582_v41  ;;  %v7342_v41 = vpack.c.bf16 %v1238_v28, %v1142_v32  ;;  %v994_v15 = vsel %vm979_vm0, %v991_v37, %v993_v61 }
  0xbd   : > { %5642 = vmatprep.subr.bf16.mxu0 %v6585_v46  ;;  %v7349_v46 = vpack.c.bf16 %v990_v36, %v1079_v33  ;;  %vm7368_vm8 = vcmp.le.s32.totalorder %v402_v43, 14  ;;  %v996_v33 = vsel %vm979_vm0, %v993_v61, %v995_v17  ;;  %v7415_v36 = vld [vmem:[%s7209_s17 + $0x50] sm:$0xff]  ;;  %v430_v43 = vand.u32 15, %v340_v18 }
  0xbe   : > { %5545 = vmatpush3.bf16.msra.mxu1 %v6584_v44  ;;  %v423_v44 = vand.u32 15, %v339_v30  ;;  %v7398_v29 = vsel %vm7368_vm8, 1.0, %v9220_v51  ;;  %v1152_v30 = vsel %vm1139_vm2, %v1149_v5, %v1151_v12  ;;  %v1150_v61 = vsel %vm1139_vm2, %v1147_v35, %v1149_v5  ;;  %v6604_v18 = vld [vmem:[#allocation6 + $0x130] sm:$0xff]  }
  0xbf   : > { %2183 = vmatmul.mubr.bf16.vlgmr.msra.gmra.mrb[0].mxu0 %v9214_v0  ;;  %5754 = vmatprep.subr.bf16.mxu1 %v6593_v57  ;;  %9305 = vst [vmem:[#allocation24_spill] sm:$0xff] %v7398_v29  ;;  %vm852_vm12 = vcmp.le.s32.totalorder %v430_v43, 14 }
  0xc0   : > { %5643 = vmatpush3.bf16.msra.mxu0 %v6586_v58  ;;  %2190 = vmatprep.mubr.bf16.mxu0 %v7270_v59  ;;  %v992_v58 = vsel %vm979_vm0, %v989_v23, %v991_v37  ;;  %vm7384_vm9 = vcmp.ge.s32.totalorder %v423_v44, 1  ;;  %v7390_v23 = vpack.c.bf16 %v1240_v3, %v1146_v10  ;;  %v6600_v44 = vld [vmem:[#allocation6 + $0x128] sm:$0xff]   ;;  %v999_v3 = vrot.slane %v7415_v36, 7  ;;  %v6605_v37 = vld [vmem:[#allocation6 + $0x1d8] sm:$0xff]  }
  0xc1   : > { %5644 = vmatprep.subr.bf16.mxu0 %v6587_v7  ;;  %2344 = vmatmul.mubr.bf16.vlgmr.msra.gmra.mrb[0].mxu1 %v9214_v0  ;;  %v6595_v7 = vld [vmem:[#allocation6 + $0x160] sm:$0xff]   ;;  %v1081_v11 = vmul.f32 %v7347_v42, %v992_v58  ;;  %v7410_v32 = vsel %vm7384_vm9, 1.0, %v9220_v51  ;;  %v342_v58 = vadd.s32 88, %v7224_v19  ;;  %v7445_v10 = vsel %vm7417_vm10, 1.0, %v9220_v51 }
  0xc2   : > { %2351 = vmatprep.mubr.bf16.mxu1 %v7313_v25  ;;  %5755 = vmatpush3.bf16.msra.mxu1 %v6594_v62  ;;  %9306 = vst [vmem:[#allocation25_spill] sm:$0xff] %v7410_v32  ;;  %v1083_v62 = vmul.f32 %v7410_v32, %v996_v33  ;;  %9311 = vst [vmem:[#allocation26_spill] sm:$0xff] %v7445_v10  ;;  %v9218_v33 = vrot.slane %v7415_v36, 1  ;;  %v346_v0 = vadd.s32 120, %v7224_v19  ;;  %v7706_v32 = vld [vmem:[%s7209_s17 + $0xc0] sm:$0xff] }
  0xc3   : > { %v7393_v28 = vpack.c.bf16 %v994_v15, %v1081_v11  ;;  %v444_v11 = vand.u32 15, %v342_v58  ;;  %v6603_v15 = vld [vmem:[#allocation6 + $0x170] sm:$0xff]   ;;  %v1154_v58 = vsel %vm1139_vm2, %v1151_v12, %v1153_v47 }
  0xc4   : > { %5645 = vmatpush3.bf16.msra.mxu0 %v6588_v21  ;;  %v6597_v21 = vld [vmem:[#allocation6 + $0x1c8] sm:$0xff]  }
  0xc5   : > { %5646 = vmatprep.subr.bf16.mxu0 %v6589_v24  ;;  %v343_v24 = vadd.s32 96, %v7224_v19  ;;  %5756 = vmatprep.subr.bf16.mxu1 %v6597_v21  ;;  %v7467_v21 = vsel %vm852_vm12, 1.0, %v9220_v51  ;;  %vm7486_vm14 = vcmp.le.s32.totalorder %v444_v11, 14 }
  0xc6   : > { %5757 = vmatpush3.bf16.msra.mxu1 %v6598_v22  ;;  %9313 = vst [vmem:[#allocation28_spill] sm:$0xff] %v7467_v21  ;;  %v7470_v22 = vld [vmem:[%s7209_s17 + $0x60] sm:$0xff] }
  0xc7   : > { %2191 = vmatmul.mubr.bf16.gmra.mrb[4].mxu0 %v1107_v16  ;;  %v7382_v16 = vld [vmem:[%s7209_s17 + $0x48] sm:$0xff]  ;;  %v451_v57 = vand.u32 15, %v343_v24  ;;  %v9353_v42 = vrot.slane %v7470_v22, 1 }
  0xc8   : > { %2198 = vmatprep.mubr.bf16.mxu0 %v7309_v20  ;;  %5647 = vmatpush3.bf16.msra.mxu0 %v6590_v31  ;;  %v7405_v31 = vpack.c.bf16 %v7340_v40, %v7316_v26  ;;  %v997_v34 = vrot.slane %v7382_v16, 7  ;;  %v6601_v40 = vld [vmem:[#allocation6 + $0x1d0] sm:$0xff]   ;;  %v7456_v5 = vpack.c.bf16 %v7382_v16, %v7362_v1  ;;  %v7473_v24 = vld [vmem:[%s7209_s17 + $0x68] sm:$0xff] }
  0xc9   : > { %5648 = vmatprep.subr.bf16.mxu0 %v6591_v38  ;;  %2352 = vmatmul.mubr.bf16.gmra.mrb[4].mxu1 %v7342_v41  ;;  %vm7475_vm13 = vcmp.ge.s32.totalorder %v451_v57, 1  ;;  %v6606_v57 = vld [vmem:[#allocation6 + $0x198] sm:$0xff]   ;;  %v1005_v12 = vrot.slane %v7473_v24, 7 }
  0xca   : > { %2359 = vmatprep.mubr.bf16.mxu1 %v7349_v46  ;;  %5758 = vmatprep.subr.bf16.mxu1 %v6601_v40  ;;  %v1000_v60 = vsel %vm979_vm0, %v997_v34, %v999_v3  ;;  %v7501_v40 = vld [vmem:[%s7209_s17 + $0x78] sm:$0xff]  ;;  %v7511_v26 = vsel %vm7475_vm13, 1.0, %v9220_v51 }
  0xcb   : > { %5759 = vmatpush3.bf16.msra.mxu1 %v6602_v4  ;;  %v1085_v43 = vmul.f32 %v7450_v8, %v1000_v60  ;;  %v347_v4 = vadd.s32 128, %v7224_v19  ;;  %9318 = vst [vmem:[#allocation29_spill] sm:$0xff] %v7511_v26  ;;  %v6608_v60 = vld [vmem:[#allocation6 + $0x138] sm:$0xff]   ;;  %v9337_v8 = vrot.slane %v7501_v40, 7 }
  0xcc   : > { %5649 = vmatpush3.bf16.msra.mxu0 %v6592_v45  ;;  %v1242_v45 = vmul.f32 %v7398_v29, %v1152_v30  ;;  %v1157_v30 = vrot.slane %v7382_v16, 1  ;;  %v7491_v16 = vld [vmem:[%s7209_s17 + $0x70] sm:$0xff]  ;;  %5760 = vmatprep.subr.bf16.mxu1 %v6605_v37  ;;  %v6611_v37 = vld [vmem:[#allocation6 + $0x1e8] sm:$0xff]   ;;  %v9352_v29 = vrot.slane %v7473_v24, 1 }
  0xcd   : > { %5650 = vmatprep.subr.bf16.mxu0 %v6595_v7  ;;  %v998_v7 = vsel %vm979_vm0, %v995_v17, %v997_v34  ;;  %v1156_v17 = vsel %vm1139_vm2, %v1153_v47, %v1155_v2  ;;  %v344_v34 = vadd.s32 104, %v7224_v19  ;;  %v1007_v14 = vrot.slane %v7491_v16, 7 }
  0xce   : > { %v7452_v35 = vpack.c.bf16 %v1242_v45, %v1150_v61  ;;  %v7459_v9 = vpack.c.bf16 %v998_v7, %v1083_v62  ;;  %v1244_v38 = vmul.f32 %v7445_v10, %v1156_v17  ;;  %v1002_v61 = vsel %vm979_vm0, %v999_v3, %v1001_v6  ;;  %v6607_v3 = vld [vmem:[#allocation6 + $0x178] sm:$0xff]  }
  0xcf   : > { %2199 = vmatmul.mubr.bf16.gmra.mrb[8].mxu0 %v7313_v25  ;;  %v1003_v62 = vrot.slane %v7470_v22, 7  ;;  %v7506_v7 = vpack.c.bf16 %v7430_v56, %v7415_v36  ;;  %v1160_v11 = vsel %vm1139_vm2, %v1157_v30, %v9218_v33  ;;  %v458_v17 = vand.u32 15, %v344_v34  ;;  %5761 = vmatpush3.bf16.msra.mxu1 %v6606_v57  ;;  %v7539_v34 = vld [vmem:[%s7209_s17 + $0x88] sm:$0xff] }
  0xd0   : > { %2206 = vmatprep.mubr.bf16.mxu0 %v7356_v49  ;;  %5651 = vmatpush3.bf16.msra.mxu0 %v6596_v13  ;;  %v345_v13 = vadd.s32 112, %v7224_v19  ;;  %v1246_v57 = vmul.f32 %v7467_v21, %v1160_v11  ;;  %v1158_v33 = vsel %vm1139_vm2, %v1155_v2, %v1157_v30  ;;  %v9325_v2 = vrot.slane %v7430_v56, 1  ;;  %v7622_v11 = vld [vmem:[%s7209_s17 + $0xa0] sm:$0xff] }
  0xd1   : > { %5652 = vmatprep.subr.bf16.mxu0 %v6599_v27  ;;  %2360 = vmatmul.mubr.bf16.gmra.mrb[8].mxu1 %v7390_v23  ;;  %v7526_v27 = vpack.c.bf16 %v1002_v61, %v1085_v43  ;;  %v349_v43 = vadd.s32 144, %v7224_v19  ;;  %v1006_v47 = vsel %vm979_vm0, %v1003_v62, %v1005_v12  ;;  %vm7555_vm1 = vcmp.le.s32.totalorder %v458_v17, 14 }
  0xd2   : > { %2367 = vmatprep.mubr.bf16.mxu1 %v7393_v28  ;;  %v465_v45 = vand.u32 15, %v345_v13  ;;  %v7521_v13 = vsel %vm7486_vm14, 1.0, %v9220_v51  ;;  %v472_v17 = vand.u32 15, %v346_v0  ;;  %v348_v61 = vadd.s32 136, %v7224_v19  ;;  %v6613_v0 = vld [vmem:[#allocation6 + $0x1f0] sm:$0xff]  }
  0xd3   : > { %9319 = vst [vmem:[#allocation30_spill] sm:$0xff] %v7521_v13  ;;  %v7746_v53 = vpack.c.bf16 %v7539_v34, %v7536_v55 }
  0xd4   : > { %5653 = vmatpush3.bf16.msra.mxu0 %v6600_v44  ;;  %vm7528_vm15 = vcmp.ge.s32.totalorder %v465_v45, 1  ;;  %v1004_v44 = vsel %vm979_vm0, %v1001_v6, %v1003_v62  ;;  %v6609_v45 = vld [vmem:[#allocation6 + $0x1e0] sm:$0xff]   ;;  %v7572_v62 = vpack.c.bf16 %v7473_v24, %v7470_v22  ;;  %vm7607_vm4 = vcmp.le.s32.totalorder %v472_v17, 14  ;;  %v7625_v17 = vld [vmem:[%s7209_s17 + $0xa8] sm:$0xff] }
  0xd5   : > { %5654 = vmatprep.subr.bf16.mxu0 %v6603_v15  ;;  %v9219_v15 = vrot.slane %v7470_v22, 1  ;;  %5762 = vmatprep.subr.bf16.mxu1 %v6609_v45  ;;  %v1087_v1 = vmul.f32 %v7511_v26, %v1004_v44  ;;  %v493_v44 = vand.u32 15, %v349_v43  ;;  %v7591_v43 = vsel %vm7555_vm1, 1.0, %v9328_v52  ;;  %9362 = vst [vmem:[#allocation40_spill] sm:$0xff] %v7746_v53 }
  0xd6   : > { %9329 = vst [vmem:[#allocation32_spill] sm:$0xff] %v7591_v43 }
  0xd7   : > { %2207 = vmatmul.mubr.bf16.gmra.mrb[12].mxu0 %v7349_v46  ;;  %v1164_v30 = vsel %vm1139_vm2, %v9325_v2, %v9219_v15  ;;  %v351_v2 = vadd.s32 160, %v7224_v19  ;;  %v7582_v15 = vpack.c.bf16 %v1246_v57, %v1158_v33  ;;  %v7596_v57 = vld [vmem:[%s7209_s17 + $0x98] sm:$0xff]  ;;  %v7598_v6 = vpack.c.bf16 %v1006_v47, %v1087_v1 }
  0xd8   : > { %2214 = vmatprep.mubr.bf16.mxu0 %v7405_v31  ;;  %5655 = vmatpush3.bf16.msra.mxu0 %v6604_v18  ;;  %v7524_v18 = vpack.c.bf16 %v1244_v38, %v1154_v58  ;;  %v479_v38 = vand.u32 15, %v347_v4  ;;  %v7553_v4 = vsel %vm7528_vm15, 1.0, %v9220_v51  ;;  %v350_v58 = vadd.s32 152, %v7224_v19  ;;  %v6612_v51 = vld [vmem:[#allocation6 + $0x1a8] sm:$0xff]  }
  0xd9   : > { %2368 = vmatmul.mubr.bf16.gmra.mrb[12].mxu1 %v7452_v35  ;;  %5656 = vmatprep.subr.bf16.mxu0 %v6607_v3  ;;  %v6610_v3 = vld [vmem:[#allocation6 + $0x1a0] sm:$0xff]   ;;  %9322 = vst [vmem:[#allocation31_spill] sm:$0xff] %v7553_v4  ;;  %vm7611_vm5 = vcmp.ge.s32.totalorder %v493_v44, 1  ;;  %v507_v47 = vand.u32 15, %v351_v2  ;;  %v9335_v1 = vrot.slane %v7430_v56, 1  ;;  %v6614_v44 = vld [vmem:[#allocation6 + $0x1b0] sm:$0xff]  }
  0xda   : > { %2375 = vmatprep.mubr.bf16.mxu1 %v7459_v9  ;;  %vm7576_vm3 = vcmp.ge.s32.totalorder %v479_v38, 1  ;;  %5763 = vmatpush3.bf16.msra.mxu1 %v6610_v3  ;;  %v1008_v38 = vsel %vm979_vm0, %v1005_v12, %v1007_v14  ;;  %v1248_v3 = vmul.f32 %v7521_v13, %v1164_v30  ;;  %v9336_v30 = vrot.slane %v7415_v36, 1  ;;  %v6615_v36 = vld [vmem:[#allocation6 + $0x1f8] sm:$0xff]  }
  0xdb   : > { %5764 = vmatprep.subr.bf16.mxu1 %v6611_v37  ;;  %v7604_v12 = vsel %vm7576_vm3, 1.0, %v9328_v52  ;;  %v486_v37 = vand.u32 15, %v348_v61  ;;  %v1089_v13 = vmul.f32 %v7553_v4, %v1008_v38  ;;  %v500_v21 = vand.u32 15, %v350_v58  ;;  %v7664_v58 = vld [vmem:[#allocation6 + $0x200] sm:$0xff]  }
  0xdc   : > { %5657 = vmatpush3.bf16.msra.mxu0 %v6608_v60  ;;  %v7560_v60 = vld [vmem:[%s7209_s17 + $0x90] sm:$0xff]  ;;  %9330 = vst [vmem:[#allocation33_spill] sm:$0xff] %v7604_v12  ;;  %v1162_v45 = vsel %vm1139_vm2, %v9336_v30, %v9335_v1  ;;  %v1010_v61 = vsel %vm979_vm0, %v1007_v14, %v9337_v8  ;;  %v353_v56 = vadd.s32 176, %v7224_v19  ;;  %v7636_v2 = vsel %vm7607_vm4, 1.0, %v9328_v52  ;;  %v7662_v30 = vld [vmem:[%s7209_s17 + $0xb8] sm:$0xff] }
  0xdd   : > { %9338 = vst [vmem:[#allocation34_spill] sm:$0xff] %v7636_v2  ;;  %v7642_v8 = vld [vmem:[%s7209_s17 + $0xb0] sm:$0xff]  ;;  %v7651_v26 = vsel %vm7611_vm5, 1.0, %v9328_v52  ;;  %vm7653_vm6 = vcmp.le.s32.totalorder %v486_v37, 14  ;;  %vm7657_vm7 = vcmp.ge.s32.totalorder %v507_v47, 1  ;;  %v9346_v33 = vrot.slane %v7473_v24, 1  ;;  %6362 = vmatprep.subr.bf16.mxu0 %v7664_v58 }
  0xde   : > { %5765 = vmatpush3.bf16.msra.mxu1 %v6612_v51  ;;  %9339 = vst [vmem:[#allocation35_spill] sm:$0xff] %v7651_v26  ;;  %v7675_v37 = vpack.c.bf16 %v7501_v40, %v7491_v16  ;;  %vm862_vm8 = vcmp.le.s32.totalorder %v500_v21, 14  ;;  %v6616_v47 = vld [vmem:[#allocation6 + $0x1b8] sm:$0xff]   ;;  %v354_v38 = vadd.s32 184, %v7224_v19  ;;  %v9350_v51 = vrot.slane %v7536_v55, 7 }
  0xdf   : > { %2215 = vmatmul.mubr.bf16.gmra.mrb[16].mxu0 %v7393_v28  ;;  %5766 = vmatprep.subr.bf16.mxu1 %v6613_v0  ;;  %v7645_v0 = vpack.c.bf16 %v1248_v3, %v1162_v45  ;;  %v7666_v3 = vpack.c.bf16 %v1010_v61, %v1089_v13  ;;  %v9345_v45 = vrot.slane %v7491_v16, 1  ;;  %v521_v13 = vand.u32 15, %v353_v56 }
  0xe0   : > { %2222 = vmatprep.mubr.bf16.mxu0 %v7456_v5  ;;  %9347 = vst [vmem:[#allocation37_spill] sm:$0xff] %v7675_v37  ;;  %v352_v61 = vadd.s32 168, %v7224_v19  ;;  %v7692_v56 = vsel %vm7657_vm7, 1.0, %v9328_v52  ;;  %v9351_v21 = vrot.slane %v7501_v40, 7  ;;  %v357_v1 = vadd.s32 208, %v7224_v19 }
  0xe1   : > { %2376 = vmatmul.mubr.bf16.gmra.mrb[16].mxu1 %v7524_v18  ;;  %9344 = vst [vmem:[#allocation36_spill] sm:$0xff] %v7666_v3  ;;  %v1168_v14 = vsel %vm1139_vm2, %v9346_v33, %v9345_v45  ;;  %v7684_v45 = vsel %vm7653_vm6, 1.0, %v9328_v52  ;;  %v355_v33 = vadd.s32 192, %v7224_v19  ;;  %v1166_v4 = vsel %vm1139_vm2, %v9353_v42, %v9352_v29 }
  0xe2   : > { %2383 = vmatprep.mubr.bf16.mxu1 %v7526_v27  ;;  %5767 = vmatpush3.bf16.msra.mxu1 %v6614_v44  ;;  %9348 = vst [vmem:[#allocation38_spill] sm:$0xff] %v7684_v45  ;;  %v1012_v44 = vsel %vm979_vm0, %v9351_v21, %v9350_v51  ;;  %vm7714_vm9 = vcmp.ge.s32.totalorder %v521_v13, 1  ;;  %v514_v63 = vand.u32 15, %v352_v61  ;;  %v1250_v51 = vmul.f32 %v7591_v43, %v1168_v14  ;;  %v7727_v21 = vld [vmem:[%s7209_s17 + $0xc8] sm:$0xff] }
  0xe3   : > { %5768 = vmatprep.subr.bf16.mxu1 %v6615_v36  ;;  %v7695_v36 = vsel %vm862_vm8, 1.0, %v9328_v52  ;;  %v9357_v24 = vrot.slane %v7536_v55, 7  ;;  %v535_v42 = vand.u32 15, %v355_v33  ;;  %v356_v29 = vadd.s32 200, %v7224_v19 }
  0xe4   : > { %9349 = vst [vmem:[#allocation39_spill] sm:$0xff] %v7695_v36  ;;  %v1091_v13 = vmul.f32 %v7604_v12, %v1012_v44  ;;  %v9358_v14 = vrot.slane %v7501_v40, 1  ;;  %v9359_v61 = vrot.slane %v7491_v16, 1  ;;  %v9360_v33 = vrot.slane %v7536_v55, 1  ;;  %v7750_v12 = vld [vmem:[%s7209_s17 + $0xd0] sm:$0xff] }
  0xe5   : > { %v549_v16 = vand.u32 15, %v357_v1  ;;  %vm864_vm10 = vcmp.le.s32.totalorder %v514_v63, 14  ;;  %vm771_vm11 = vcmp.ge.s32.totalorder %v535_v42, 1  ;;  %v542_v44 = vand.u32 15, %v356_v29 }
  0xe6   : > { %5769 = vmatpush3.bf16.msra.mxu1 %v6616_v47  ;;  %v9356_v47 = vrot.slane %v7539_v34, 7  ;;  %v1170_v10 = vsel %vm1139_vm2, %v9359_v61, %v9358_v14  ;;  %v9361_v43 = vmov %v9358_v14  ;;  %v359_v14 = vadd.s32 224, %v7224_v19 }
  0xe7   : > { %2223 = vmatmul.mubr.bf16.gmra.mrb[20].mxu0 %v7459_v9  ;;  %v1172_v54 = vsel %vm1139_vm2, %v9361_v43, %v9360_v33  ;;  %v7759_v43 = vld [vmem:[%s7209_s17 + $0xd8] sm:$0xff]  ;;  %v7762_v61 = vpack.c.bf16 %v1250_v51, %v1166_v4  ;;  %v9364_v33 = vrot.slane %v7560_v60, 7  ;;  %v7780_v4 = vsel %vm864_vm10, 1.0, %v9328_v52 }
  0xe8   : > { %2230 = vmatprep.mubr.bf16.mxu0 %v7506_v7  ;;  %v1014_v22 = vsel %vm979_vm0, %v9357_v24, %v9356_v47  ;;  %v528_v24 = vand.u32 15, %v354_v38  ;;  %v7755_v38 = vsel %vm7714_vm9, 1.0, %v9328_v52  ;;  %v1252_v63 = vmul.f32 %v7636_v2, %v1172_v54  ;;  %9366 = vst [vmem:[#allocation43_spill] sm:$0xff] %v7780_v4 }
  0xe9   : > { %2384 = vmatmul.mubr.bf16.gmra.mrb[20].mxu1 %v7582_v15  ;;  %9363 = vst [vmem:[#allocation41_spill] sm:$0xff] %v7755_v38  ;;  %v1016_v1 = vsel %vm979_vm0, %v9356_v47, %v9364_v33  ;;  %v7769_v39 = vpack.c.bf16 %v1014_v22, %v1091_v13  ;;  %vm7783_vm13 = vcmp.ge.s32.totalorder %v549_v16, 1  ;;  %v358_v22 = vadd.s32 216, %v7224_v19 }
  0xea   : > { %2391 = vmatprep.mubr.bf16.mxu1 %v7598_v6  ;;  %vm866_vm12 = vcmp.le.s32.totalorder %v528_v24, 14  ;;  %v7789_v54 = vsel %vm771_vm11, 1.0, %v9328_v52  ;;  %v563_v13 = vand.u32 15, %v359_v14  ;;  %vm868_vm14 = vcmp.le.s32.totalorder %v542_v44, 14 }
  0xeb   : > { %9365 = vst [vmem:[#allocation42_spill] sm:$0xff] %v7769_v39  ;;  %9369 = vst [vmem:[#allocation44_spill] sm:$0xff] %v7789_v54  ;;  %v7796_v24 = vsel %vm866_vm12, 1.0, %v9328_v52  ;;  %v9370_v51 = vrot.slane %v7596_v57, 7  ;;  %v9371_v14 = vmov %v9364_v33  ;;  %v1093_v42 = vmul.f32 %v7651_v26, %v1016_v1 }
  0xec   : > { %v7811_v40 = vsel %vm7783_vm13, 1.0, %v9328_v52  ;;  %v556_v2 = vand.u32 15, %v358_v22  ;;  %vm775_vm15 = vcmp.ge.s32.totalorder %v563_v13, 1  ;;  %v7824_v1 = vpack.c.bf16 %v7596_v57, %v7560_v60 }
  0xed   : > { %v1018_v29 = vsel %vm979_vm0, %v9371_v14, %v9370_v51  ;;  %9372 = vst [vmem:[#allocation45_spill] sm:$0xff] %v7811_v40  ;;  %v7820_v51 = vpack.c.bf16 %v1252_v63, %v1170_v10  ;;  %v9373_v14 = vrot.slane %v7560_v60, 1  ;;  %v9374_v16 = vrot.slane %v7539_v34, 1 }
  0xee   : > { %v7826_v47 = vpack.c.bf16 %v1018_v29, %v1093_v42  ;;  %v361_v33 = vadd.s32 240, %v7224_v19  ;;  %v9375_v10 = vrot.slane %v7622_v11, 7  ;;  %v9376_v63 = vrot.slane %v7596_v57, 7 }
  0xef   : > { %2231 = vmatmul.mubr.bf16.gmra.mrb[24].mxu0 %v7526_v27  ;;  %v1176_v22 = vsel %vm1139_vm2, %v9374_v16, %v9373_v14  ;;  %v7841_v44 = vsel %vm775_vm15, 1.0, %v9328_v52  ;;  %vm7843_vm1 = vcmp.le.s32.totalorder %v556_v2, 14  ;;  %v9380_v14 = vrot.slane %v7536_v55, 1 }
  0xf0   : > { %2238 = vmatprep.mubr.bf16.mxu0 %v7572_v62  ;;  %v1020_v13 = vsel %vm979_vm0, %v9376_v63, %v9375_v10  ;;  %9377 = vst [vmem:[#allocation46_spill] sm:$0xff] %v7841_v44  ;;  %v1254_v29 = vmul.f32 %v7684_v45, %v1176_v22  ;;  %v9381_v63 = vrot.slane %v7625_v17, 7  ;;  %v9383_v55 = vrot.slane %v7622_v11, 1 }
  0xf1   : > { %2392 = vmatmul.mubr.bf16.gmra.mrb[24].mxu1 %v7645_v0  ;;  %v1174_v10 = vsel %vm1139_vm2, %v9380_v14, %v9374_v16  ;;  %v1095_v2 = vmul.f32 %v7692_v56, %v1020_v13  ;;  %v9384_v34 = vrot.slane %v7596_v57, 1  ;;  %v7877_v13 = vpack.c.bf16 %v7625_v17, %v7622_v11 }
  0xf2   : > { %2399 = vmatprep.mubr.bf16.mxu1 %v7666_v3  ;;  %v7866_v22 = vpack.c.bf16 %v1254_v29, %v1174_v10  ;;  %v9385_v14 = vrot.slane %v7642_v8, 7  ;;  %v7890_v29 = vsel %vm7843_vm1, 1.0, %v9328_v52  ;;  %v9390_v42 = vrot.slane %v7642_v8, 7 }
  0xf3   : > { %v1180_v16 = vsel %vm1139_vm2, %v9384_v34, %v9383_v55  ;;  %v9388_v55 = vrot.slane %v7560_v60, 1  ;;  %v9391_v57 = vrot.slane %v7642_v8, 1  ;;  %v9392_v60 = vrot.slane %v7625_v17, 1 }
  0xf7   : > { %2239 = vmatmul.mubr.bf16.gmra.mrb[28].mxu0 %v7598_v6 }
  0xf8   : > { %2246 = vmatprep.mubr.bf16.mxu0 %v7675_v37  ;;  %v7777_v37 = vld [vmem:[%s7209_s17 + $0xe8] sm:$0xff] }
  0xf9   : > { %2400 = vmatmul.mubr.bf16.gmra.mrb[28].mxu1 %v7762_v61 }
  0xfa   : > { %2407 = vmatprep.mubr.bf16.mxu1 %v7769_v39 }
  0xff   : > { %2247 = vmatmul.mubr.bf16.gmra.mrb[32].mxu0 %v7666_v3  ;;  %v7818_v3 = vsel %vm868_vm14, 1.0, %v9328_v52 }
 0x100   : > { %2254 = vmatprep.mubr.bf16.mxu0 %v7746_v53  ;;  %v9382_v53 = vrot.slane %v7622_v11, 7 }
 0x101   : > { %2408 = vmatmul.mubr.bf16.gmra.mrb[32].mxu1 %v7820_v51 }
 0x102   : > { %2415 = vmatprep.mubr.bf16.mxu1 %v7826_v47  ;;  %v1022_v26 = vsel %vm979_vm0, %v9382_v53, %v9381_v63  ;;  %v9386_v53 = vmov %v9381_v63 }
 0x103   : > { %v7868_v45 = vpack.c.bf16 %v1022_v26, %v1095_v2  ;;  %v1024_v63 = vsel %vm979_vm0, %v9386_v53, %v9385_v14  ;;  %v1256_v26 = vmul.f32 %v7695_v36, %v1180_v16  ;;  %v9387_v2 = vmov %v9384_v34 }
 0x104   : > { %v1178_v34 = vsel %vm1139_vm2, %v9388_v55, %v9387_v2  ;;  %v1097_v14 = vmul.f32 %v7755_v38, %v1024_v63  ;;  %v9389_v16 = vrot.slane %v7662_v30, 7  ;;  %v1184_v2 = vsel %vm1139_vm2, %v9392_v60, %v9391_v57 }
 0x105   : > { %v7906_v36 = vpack.c.bf16 %v1256_v26, %v1178_v34  ;;  %v7917_v55 = vpack.c.bf16 %v7662_v30, %v7642_v8  ;;  %v9393_v63 = vrot.slane %v7706_v32, 7  ;;  %v1258_v26 = vmul.f32 %v7780_v4, %v1184_v2 }
 0x106   : > { %v1026_v53 = vsel %vm979_vm0, %v9390_v42, %v9389_v16  ;;  %v9394_v38 = vmov %v9389_v16  ;;  %v577_v34 = vand.u32 15, %v361_v33  ;;  %v9395_v42 = vmov %v9392_v60 }
 0x107   : > { %2255 = vmatmul.mubr.bf16.gmra.mrb[36].mxu0 %v7769_v39  ;;  %v7864_v39 = vld [vmem:[%s7209_s17 + $0xf0] sm:$0xff]  ;;  %v7908_v10 = vpack.c.bf16 %v1026_v53, %v1097_v14  ;;  %v1028_v16 = vsel %vm979_vm0, %v9394_v38, %v9393_v63  ;;  %v360_v14 = vadd.s32 232, %v7224_v19  ;;  %v9396_v53 = vrot.slane %v7622_v11, 1 }
 0x108   : > { %2262 = vmatprep.mubr.bf16.mxu0 %v7824_v1  ;;  %v1099_v38 = vmul.f32 %v7789_v54, %v1028_v16  ;;  %v9397_v60 = vrot.slane %v7727_v21, 7  ;;  %vm7943_vm3 = vcmp.ge.s32.totalorder %v577_v34, 1  ;;  %v9400_v11 = vrot.slane %v7706_v32, 1 }
 0x109   : > { %2416 = vmatmul.mubr.bf16.gmra.mrb[36].mxu1 %v7866_v22  ;;  %v1182_v57 = vsel %vm1139_vm2, %v9396_v53, %v9395_v42  ;;  %v9401_v42 = vrot.slane %v7662_v30, 1  ;;  %v7956_v53 = vpack.c.bf16 %v7727_v21, %v7706_v32  ;;  %v9407_v30 = vrot.slane %v7750_v12, 1 }
 0x10a   : > { %2423 = vmatprep.mubr.bf16.mxu1 %v7868_v45  ;;  %v1030_v33 = vsel %vm979_vm0, %v9393_v63, %v9397_v60  ;;  %v7941_v2 = vpack.c.bf16 %v1258_v26, %v1182_v57  ;;  %v9402_v60 = vrot.slane %v7750_v12, 7  ;;  %v9403_v26 = vrot.slane %v7727_v21, 7 }
 0x10b   : > { %v7947_v17 = vpack.c.bf16 %v1030_v33, %v1099_v38  ;;  %v1188_v16 = vsel %vm1139_vm2, %v9401_v42, %v9400_v11  ;;  %v9404_v38 = vmov %v9401_v42  ;;  %v9405_v63 = vrot.slane %v7642_v8, 1 }
 0x10c   : > { %v1032_v34 = vsel %vm979_vm0, %v9403_v26, %v9402_v60  ;;  %v1260_v57 = vmul.f32 %v7796_v24, %v1188_v16  ;;  %v9406_v42 = vrot.slane %v7759_v43, 7  ;;  %v9408_v8 = vrot.slane %v7727_v21, 1 }
 0x10d   : > { %v1186_v33 = vsel %vm1139_vm2, %v9405_v63, %v9404_v38  ;;  %v1101_v11 = vmul.f32 %v7811_v40, %v1032_v34  ;;  %v7990_v63 = vpack.c.bf16 %v7759_v43, %v7750_v12  ;;  %v9409_v34 = vrot.slane %v7774_v48, 7 }
 0x10e   : > { %v1034_v26 = vsel %vm979_vm0, %v9402_v60, %v9406_v42  ;;  %v7979_v54 = vpack.c.bf16 %v1260_v57, %v1186_v33  ;;  %v1192_v38 = vsel %vm1139_vm2, %v9408_v8, %v9407_v30  ;;  %v9410_v40 = vmov %v9406_v42 }
 0x10f   : > { %2263 = vmatmul.mubr.bf16.gmra.mrb[40].mxu0 %v7826_v47  ;;  %v7981_v16 = vpack.c.bf16 %v1034_v26, %v1101_v11  ;;  %v1036_v42 = vsel %vm979_vm0, %v9410_v40, %v9409_v34  ;;  %v8000_v57 = vsel %vm7943_vm3, 1.0, %v9328_v52  ;;  %v570_v33 = vand.u32 15, %v360_v14 }
 0x110   : > { %2270 = vmatprep.mubr.bf16.mxu0 %v7877_v13  ;;  %v1262_v11 = vmul.f32 %v7818_v3, %v1192_v38  ;;  %v9411_v60 = vmov %v9408_v8  ;;  %v9412_v26 = vrot.slane %v7706_v32, 1  ;;  %v1103_v4 = vmul.f32 %v7841_v44, %v1036_v42 }
 0x111   : > { %2424 = vmatmul.mubr.bf16.gmra.mrb[40].mxu1 %v7906_v36  ;;  %v9413_v14 = vrot.slane %v7777_v37, 7  ;;  %v9414_v30 = vmov %v9409_v34  ;;  %v9415_v21 = vrot.slane %v7774_v48, 1  ;;  %v9416_v32 = vrot.slane %v7759_v43, 1 }
 0x112   : > { %2431 = vmatprep.mubr.bf16.mxu1 %v7908_v10  ;;  %v1190_v40 = vsel %vm1139_vm2, %v9412_v26, %v9411_v60  ;;  %v8029_v26 = vpack.c.bf16 %v7777_v37, %v7774_v48  ;;  %v9417_v42 = vrot.slane %v7864_v39, 7  ;;  %vm872_vm4 = vcmp.le.s32.totalorder %v570_v33, 14 }
 0x113   : > { %v1038_v8 = vsel %vm979_vm0, %v9414_v30, %v9413_v14  ;;  %v8018_v34 = vpack.c.bf16 %v1262_v11, %v1190_v40  ;;  %v1196_v60 = vsel %vm1139_vm2, %v9416_v32, %v9415_v21  ;;  %v9418_v44 = vmov %v9413_v14 }
 0x114   : > { %v8020_v38 = vpack.c.bf16 %v1038_v8, %v1103_v4  ;;  %v1040_v14 = vsel %vm979_vm0, %v9418_v44, %v9417_v42  ;;  %v1264_v11 = vmul.f32 %v7890_v29, %v1196_v60  ;;  %v9419_v40 = vmov %v9416_v32 }
 0x115   : > { %v9420_v4 = vrot.slane %v7750_v12, 1  ;;  %v1105_v8 = vmul.f32 %v8000_v57, %v1040_v14  ;;  %v1197_v44 = vrot.slane %v7777_v37, 1  ;;  %v1199_v21 = vrot.slane %v7864_v39, 1 }
 0x116   : > { %v9421_v32 = vrot.slane %v7251_v50, 7  ;;  %v9422_v60 = vmov %v9417_v42  ;;  %v9423_v33 = vrot.slane %v7774_v48, 1  ;;  %v6620_v48 = vld [vmem:[#allocation6 + $0x218] sm:$0xff]  }
 0x117   : > { %2271 = vmatmul.mubr.bf16.gmra.mrb[44].mxu0 %v7868_v45  ;;  %v1194_v30 = vsel %vm1139_vm2, %v9420_v4, %v9419_v40  ;;  %v8059_v40 = vsel %vm872_vm4, 1.0, %v9328_v52  ;;  %v1200_v37 = vsel %vm1139_vm2, %v1197_v44, %v1199_v21  ;;  %v6618_v4 = vld [vmem:[#allocation6 + $0x208] sm:$0xff]  }
 0x118   : > { %2278 = vmatprep.mubr.bf16.mxu0 %v7917_v55  ;;  %v1041_v42 = vsel %vm979_vm0, %v9422_v60, %v9421_v32  ;;  %v8054_v43 = vpack.c.bf16 %v1264_v11, %v1194_v30  ;;  %v1266_v50 = vmul.f32 %v8059_v40, %v1200_v37  ;;  %v1198_v14 = vsel %vm1139_vm2, %v9423_v33, %v1197_v44  ;;  %v6619_v30 = vld [vmem:[#allocation6 + $0x210] sm:$0xff]  }
 0x119   : > { %2432 = vmatmul.mubr.bf16.gmra.mrb[44].mxu1 %v7941_v2  ;;  %v8056_v12 = vpack.c.bf16 %v1041_v42, %v1105_v8 }
 0x11a   : > { %2439 = vmatprep.mubr.bf16.mxu1 %v7947_v17  ;;  %v8072_v11 = vpack.c.bf16 %v1266_v50, %v1198_v14 }
 0x11f   : > { %2279 = vmatmul.mubr.bf16.gmra.mrb[48].mxu0 %v7908_v10 }
 0x120   : > { %2286 = vmatprep.mubr.bf16.mxu0 %v7956_v53 }
 0x121   : > { %2440 = vmatmul.mubr.bf16.gmra.mrb[48].mxu1 %v7979_v54 }
 0x122   : > { %2447 = vmatprep.mubr.bf16.mxu1 %v7981_v16 }
 0x127   : > { %2287 = vmatmul.mubr.bf16.gmra.mrb[52].mxu0 %v7947_v17 }
 0x128   : > { %2294 = vmatprep.mubr.bf16.mxu0 %v7990_v63 }
 0x129   : > { %2448 = vmatmul.mubr.bf16.gmra.mrb[52].mxu1 %v8018_v34 }
 0x12a   : > { %2455 = vmatprep.mubr.bf16.mxu1 %v8020_v38 }
 0x12f   : > { %2295 = vmatmul.mubr.bf16.gmra.mrb[56].mxu0 %v7981_v16 }
 0x130   : > { %2302 = vmatprep.mubr.bf16.mxu0 %v8029_v26 }
 0x131   : > { %2456 = vmatmul.mubr.bf16.gmra.mrb[56].mxu1 %v8054_v43 }
 0x132   : > { %2463 = vmatprep.mubr.bf16.mxu1 %v8056_v12 }
 0x137   : > { %2303 = vmatmul.mubr.bf16.gmra.mrb[60].mxu0 %v8020_v38 }
 0x138   : > { %2504 = vmatprep.mubr.bf16.mxu0 %v7342_v41  ;;  %v6622_v41 = vld [vmem:[#allocation6 + $0x228] sm:$0xff]  }
 0x139   : > { %2464 = vmatmul.mubr.bf16.gmra.mrb[60].mxu1 %v8072_v11 }
 0x13a   : > { %2665 = vmatprep.mubr.bf16.mxu1 %v7309_v20 }
 0x13f   : > { %2505 = vmatmul.mubr.bf16.vlgmr.msra.gmra.mrb[64].mxu0 %v7270_v59  ;;  %v6621_v59 = vld [vmem:[#allocation6 + $0x220] sm:$0xff]  }
 0x140   : > { %6363 = vmatpush3.bf16.msra.mxu0 %v7664_v58  ;;  %2512 = vmatprep.mubr.bf16.mxu0 %v7390_v23  ;;  %v8120_v58 = vld [vmem:[#allocation8] ss:$0 sm:$0xff] }
 0x141   : > { %6364 = vmatprep.subr.bf16.mxu0 %v6618_v4  ;;  %2666 = vmatmul.mubr.bf16.vlgmr.msra.gmra.mrb[64].mxu1 %v7313_v25  ;;  %v6624_v25 = vld [vmem:[#allocation6 + $0x238] sm:$0xff]  }
 0x142   : > { %2673 = vmatprep.mubr.bf16.mxu1 %v7356_v49 }
 0x144   : > { %6365 = vmatpush3.bf16.msra.mxu0 %v6618_v4 }
 0x145   : > { %6366 = vmatprep.subr.bf16.mxu0 %v6619_v30 }
 0x147   : > { %2513 = vmatmul.mubr.bf16.gmra.mrb[68].mxu0 %v7309_v20  ;;  %v6623_v20 = vld [vmem:[#allocation6 + $0x230] sm:$0xff]  }
 0x148   : > { %2520 = vmatprep.mubr.bf16.mxu0 %v7452_v35  ;;  %6367 = vmatpush3.bf16.msra.mxu0 %v6619_v30 }
 0x149   : > { %6368 = vmatprep.subr.bf16.mxu0 %v6620_v48  ;;  %2674 = vmatmul.mubr.bf16.gmra.mrb[68].mxu1 %v7349_v46  ;;  %v9424_v46 = vld [vmem:[#allocation37_spill] sm:$0xff] }
 0x14a   : > { %2681 = vmatprep.mubr.bf16.mxu1 %v7405_v31 }
 0x14c   : > { %6369 = vmatpush3.bf16.msra.mxu0 %v6620_v48  ;;  %v6697_v48 = vld [vmem:[%s7209_s17 + $0xf8] sm:$0xff] }
 0x14d   : > { %6370 = vmatprep.subr.bf16.mxu0 %v6621_v59 }
 0x14f   : > { %2521 = vmatmul.mubr.bf16.gmra.mrb[72].mxu0 %v7356_v49  ;;  %v9425_v49 = vld [vmem:[#allocation36_spill] sm:$0xff] }
 0x150   : > { %2528 = vmatprep.mubr.bf16.mxu0 %v7524_v18  ;;  %6371 = vmatpush3.bf16.msra.mxu0 %v6621_v59  ;;  %v1201_v59 = vrot.slane %v6697_v48, 1 }
 0x151   : > { %6372 = vmatprep.subr.bf16.mxu0 %v6622_v41  ;;  %2682 = vmatmul.mubr.bf16.gmra.mrb[72].mxu1 %v7393_v28  ;;  %v9426_v28 = vld [vmem:[#allocation40_spill] sm:$0xff] }
 0x152   : > { %2689 = vmatprep.mubr.bf16.mxu1 %v7456_v5 }
 0x154   : > { %6373 = vmatpush3.bf16.msra.mxu0 %v6622_v41 }
 0x155   : > { %6374 = vmatprep.subr.bf16.mxu0 %v6623_v20 }
 0x157   : > { %2529 = vmatmul.mubr.bf16.gmra.mrb[76].mxu0 %v7405_v31  ;;  %v9427_v31 = vld [vmem:[#allocation42_spill] sm:$0xff] }
 0x158   : > { %2536 = vmatprep.mubr.bf16.mxu0 %v7582_v15  ;;  %6375 = vmatpush3.bf16.msra.mxu0 %v6623_v20 }
 0x159   : > { %6376 = vmatprep.subr.bf16.mxu0 %v6624_v25  ;;  %2690 = vmatmul.mubr.bf16.gmra.mrb[76].mxu1 %v7459_v9 }
 0x15a   : > { %2697 = vmatprep.mubr.bf16.mxu1 %v7506_v7 }
 0x15c   : > { %6377 = vmatpush3.bf16.msra.mxu0 %v6624_v25 }
 0x15f   : > { %2537 = vmatmul.mubr.bf16.gmra.mrb[80].mxu0 %v7456_v5 }
 0x160   : > { %2544 = vmatprep.mubr.bf16.mxu0 %v7645_v0 }
 0x161   : > { %2698 = vmatmul.mubr.bf16.gmra.mrb[80].mxu1 %v7526_v27 }
 0x162   : > { %2705 = vmatprep.mubr.bf16.mxu1 %v7572_v62 }
 0x167   : > { %2545 = vmatmul.mubr.bf16.gmra.mrb[84].mxu0 %v7506_v7 }
 0x168   : > { %2552 = vmatprep.mubr.bf16.mxu0 %v7762_v61 }
 0x169   : > { %2706 = vmatmul.mubr.bf16.gmra.mrb[84].mxu1 %v7598_v6 }
 0x16a   : > { %2713 = vmatprep.mubr.bf16.mxu1 %v9424_v46 }
 0x16f   : > { %2553 = vmatmul.mubr.bf16.gmra.mrb[88].mxu0 %v7572_v62 }
 0x170   : > { %2560 = vmatprep.mubr.bf16.mxu0 %v7820_v51 }
 0x171   : > { %2714 = vmatmul.mubr.bf16.gmra.mrb[88].mxu1 %v9425_v49 }
 0x172   : > { %2721 = vmatprep.mubr.bf16.mxu1 %v9426_v28 }
 0x177   : > { %2561 = vmatmul.mubr.bf16.gmra.mrb[92].mxu0 %v9424_v46 }
 0x178   : > { %2568 = vmatprep.mubr.bf16.mxu0 %v7866_v22 }
 0x179   : > { %2722 = vmatmul.mubr.bf16.gmra.mrb[92].mxu1 %v9427_v31 }
 0x17a   : > { %2729 = vmatprep.mubr.bf16.mxu1 %v7824_v1 }
 0x17f   : > { %2569 = vmatmul.mubr.bf16.gmra.mrb[96].mxu0 %v9426_v28 }
 0x180   : > { %2576 = vmatprep.mubr.bf16.mxu0 %v7906_v36 }
 0x181   : > { %2730 = vmatmul.mubr.bf16.gmra.mrb[96].mxu1 %v7826_v47 }
 0x182   : > { %2737 = vmatprep.mubr.bf16.mxu1 %v7877_v13 }
 0x187   : > { %2577 = vmatmul.mubr.bf16.gmra.mrb[100].mxu0 %v7824_v1 }
 0x188   : > { %2584 = vmatprep.mubr.bf16.mxu0 %v7941_v2 }
 0x189   : > { %2738 = vmatmul.mubr.bf16.gmra.mrb[100].mxu1 %v7868_v45 }
 0x18a   : > { %2745 = vmatprep.mubr.bf16.mxu1 %v7917_v55 }
 0x18f   : > { %2585 = vmatmul.mubr.bf16.gmra.mrb[104].mxu0 %v7877_v13  ;;  %v362_v13 = vadd.s32 248, %v7224_v19 }
 0x190   : > { %2592 = vmatprep.mubr.bf16.mxu0 %v7979_v54 }
 0x191   : > { %2746 = vmatmul.mubr.bf16.gmra.mrb[104].mxu1 %v7908_v10  ;;  %v584_v4 = vand.u32 15, %v362_v13 }
 0x192   : > { %v5434_v5 = vpop.f32.mrb[0].mxu0  ;;  %2753 = vmatprep.mubr.bf16.mxu1 %v7956_v53 }
 0x193   : > { %v5435_v9 = vpop.f32.mrb[1].mxu0  ;;  %vm874_vm5 = vcmp.le.s32.totalorder %v584_v4, 14 }
 0x194   : > { %v5436_v7 = vadd.f32 %v5435_v9, %v5434_v5  ;;  %v5437_v27 = vpop.f32.mrb[2].mxu0  ;;  %v5546_v1 = vpop.f32.mrb[0].mxu1 }
 0x195   : > { %v5438_v6 = vpop.f32.mrb[3].mxu0  ;;  %v5547_v8 = vpop.f32.mrb[1].mxu1 }
 0x196   : > { %v5439_v62 = vadd.f32 %v5438_v6, %v5437_v27  ;;  %v2185_v45 = vadd.f32 %v5436_v7, %v8120_v58  ;;  %v5548_v10 = vadd.f32 %v5547_v8, %v5546_v1  ;;  %v5549_v60 = vpop.f32.mrb[2].mxu1  ;;  %v8140_v27 = vsel %vm874_vm5, 1.0, %v9328_v52  ;;  %v9428_v6 = vld [vmem:[#allocation17_spill] sm:$0xff] }
 0x197   : > { %2593 = vmatmul.mubr.bf16.gmra.mrb[108].mxu0 %v7917_v55  ;;  %v5550_v55 = vpop.f32.mrb[3].mxu1 }
 0x198   : > { %2600 = vmatprep.mubr.bf16.mxu0 %v8018_v34  ;;  %v2188_v32 = vadd.f32 %v5439_v62, %v8120_v58  ;;  %v5551_v33 = vadd.f32 %v5550_v55, %v5549_v60  ;;  %v8128_v30 = vadd.f32 %v5548_v10, %v2185_v45  ;;  %v9429_v62 = vrot.slane %v9428_v6, 1 }
 0x199   : > { %2754 = vmatmul.mubr.bf16.gmra.mrb[108].mxu1 %v7947_v17 }
 0x19a   : > { %v5440_v47 = vpop.f32.mrb[4].mxu0  ;;  %2761 = vmatprep.mubr.bf16.mxu1 %v7990_v63  ;;  %v8134_v19 = vadd.f32 %v5551_v33, %v2188_v32  ;;  %v1236_v45 = vsel %vm1139_vm2, %v1201_v59, %v9429_v62 }
 0x19b   : > { %v5441_v44 = vpop.f32.mrb[5].mxu0  ;;  %v1268_v8 = vmul.f32 %v8140_v27, %v1236_v45 }
 0x19c   : > { %v5442_v42 = vadd.f32 %v5441_v44, %v5440_v47  ;;  %v5443_v37 = vpop.f32.mrb[6].mxu0  ;;  %v5552_v20 = vpop.f32.mrb[4].mxu1  ;;  %v1202_v44 = vsel %vm1139_vm2, %v1199_v21, %v1201_v59 }
 0x19d   : > { %v5444_v50 = vpop.f32.mrb[7].mxu0  ;;  %v5553_v46 = vpop.f32.mrb[5].mxu1  ;;  %v8160_v4 = vpack.c.bf16 %v1268_v8, %v1202_v44 }
 0x19e   : > { %v5445_v14 = vadd.f32 %v5444_v50, %v5443_v37  ;;  %v2193_v41 = vadd.f32 %v5442_v42, %v8120_v58  ;;  %v5554_v17 = vadd.f32 %v5553_v46, %v5552_v20  ;;  %v5555_v31 = vpop.f32.mrb[6].mxu1 }
 0x19f   : > { %2601 = vmatmul.mubr.bf16.gmra.mrb[112].mxu0 %v7956_v53  ;;  %v5556_v9 = vpop.f32.mrb[7].mxu1 }
 0x1a0   : > { %2608 = vmatprep.mubr.bf16.mxu0 %v8054_v43  ;;  %v2196_v28 = vadd.f32 %v5445_v14, %v8120_v58  ;;  %v5557_v1 = vadd.f32 %v5556_v9, %v5555_v31  ;;  %v8145_v13 = vadd.f32 %v5554_v17, %v2193_v41 }
 0x1a1   : > { %2762 = vmatmul.mubr.bf16.gmra.mrb[112].mxu1 %v7981_v16 }
 0x1a2   : > { %v5446_v25 = vpop.f32.mrb[8].mxu0  ;;  %2769 = vmatprep.mubr.bf16.mxu1 %v8029_v26  ;;  %v8152_v52 = vadd.f32 %v5557_v1, %v2196_v28  ;;  %v9430_v1 = vmov 0  }
 0x1a3   : > { %v5447_v49 = vpop.f32.mrb[9].mxu0 }
 0x1a4   : > { %v5448_v53 = vadd.f32 %v5447_v49, %v5446_v25  ;;  %v5449_v5 = vpop.f32.mrb[10].mxu0  ;;  %v5558_v10 = vpop.f32.mrb[8].mxu1 }
 0x1a5   : > { %v5450_v7 = vpop.f32.mrb[11].mxu0  ;;  %v5559_v42 = vpop.f32.mrb[9].mxu1 }
 0x1a6   : > { %v5451_v47 = vadd.f32 %v5450_v7, %v5449_v5  ;;  %v2201_v32 = vadd.f32 %v5448_v53, %v8120_v58  ;;  %v5560_v55 = vadd.f32 %v5559_v42, %v5558_v10  ;;  %v5561_v50 = vpop.f32.mrb[10].mxu1 }
 0x1a7   : > { %2609 = vmatmul.mubr.bf16.gmra.mrb[116].mxu0 %v7990_v63  ;;  %v1138_v63 = vpack.c.bf16 %v6697_v48, %v7864_v39  ;;  %v5562_v41 = vpop.f32.mrb[11].mxu1 }
 0x1a8   : > { %2616 = vmatprep.mubr.bf16.mxu0 %v8072_v11  ;;  %v2204_v37 = vadd.f32 %v5451_v47, %v8120_v58  ;;  %v5563_v25 = vadd.f32 %v5562_v41, %v5561_v50  ;;  %v8162_v59 = vadd.f32 %v5560_v55, %v2201_v32 }
 0x1a9   : > { %2770 = vmatmul.mubr.bf16.gmra.mrb[116].mxu1 %v8020_v38 }
 0x1aa   : > { %v5452_v60 = vpop.f32.mrb[12].mxu0  ;;  %2777 = vmatprep.mubr.bf16.mxu1 %v1138_v63  ;;  %v8167_v39 = vadd.f32 %v5563_v25, %v2204_v37 }
 0x1ab   : > { %v5453_v16 = vpop.f32.mrb[13].mxu0 }
 0x1ac   : > { %v5454_v33 = vadd.f32 %v5453_v16, %v5452_v60  ;;  %v5455_v14 = vpop.f32.mrb[14].mxu0  ;;  %v5564_v46 = vpop.f32.mrb[12].mxu1 }
 0x1ad   : > { %v5456_v20 = vpop.f32.mrb[15].mxu0  ;;  %v5565_v28 = vpop.f32.mrb[13].mxu1 }
 0x1ae   : > { %v5457_v21 = vadd.f32 %v5456_v20, %v5455_v14  ;;  %v2209_v48 = vadd.f32 %v5454_v33, %v8120_v58  ;;  %v5566_v53 = vadd.f32 %v5565_v28, %v5564_v46  ;;  %v5567_v5 = vpop.f32.mrb[14].mxu1 }
 0x1af   : > { %2617 = vmatmul.mubr.bf16.gmra.mrb[120].mxu0 %v8029_v26  ;;  %v5568_v38 = vpop.f32.mrb[15].mxu1 }
 0x1b0   : > { %2624 = vmatprep.mubr.bf16.mxu0 %v8160_v4  ;;  %v2212_v31 = vadd.f32 %v5457_v21, %v8120_v58  ;;  %v5569_v26 = vadd.f32 %v5568_v38, %v5567_v5  ;;  %v8171_v45 = vadd.f32 %v5566_v53, %v2209_v48 }
 0x1b1   : > { %2778 = vmatmul.mubr.bf16.gmra.mrb[120].mxu1 %v8056_v12 }
 0x1b2   : > { %v5458_v49 = vpop.f32.mrb[16].mxu0  ;;  %2785 = vmatprep.mubr.bf16.mxu1 %v9430_v1  ;;  %v8176_v47 = vadd.f32 %v5569_v26, %v2212_v31 }
 0x1b3   : > { %v5459_v17 = vpop.f32.mrb[17].mxu0 }
 0x1b4   : > { %v5460_v9 = vadd.f32 %v5459_v17, %v5458_v49  ;;  %v5461_v7 = vpop.f32.mrb[18].mxu0  ;;  %v5570_v44 = vpop.f32.mrb[16].mxu1 }
 0x1b5   : > { %v5462_v6 = vpop.f32.mrb[19].mxu0  ;;  %v5571_v10 = vpop.f32.mrb[17].mxu1 }
 0x1b6   : > { %v5463_v62 = vadd.f32 %v5462_v6, %v5461_v7  ;;  %v2217_v8 = vadd.f32 %v5460_v9, %v8120_v58  ;;  %v5572_v16 = vadd.f32 %v5571_v10, %v5570_v44  ;;  %v5573_v37 = vpop.f32.mrb[18].mxu1 }
 0x1b7   : > { %2625 = vmatmul.mubr.bf16.gmra.mrb[124].mxu0 %v1138_v63  ;;  %v5574_v12 = vpop.f32.mrb[19].mxu1 }
 0x1b8   : > { %6378 = vmatprep.mubr.bf16.mxu0 %v7390_v23  ;;  %v2220_v42 = vadd.f32 %v5463_v62, %v8120_v58  ;;  %v5575_v33 = vadd.f32 %v5574_v12, %v5573_v37  ;;  %v8180_v41 = vadd.f32 %v5572_v16, %v2217_v8 }
 0x1b9   : > { %2786 = vmatmul.mubr.bf16.gmra.mrb[124].mxu1 %v9430_v1 }
 0x1ba   : > { %v5464_v32 = vpop.f32.mrb[20].mxu0  ;;  %v8185_v23 = vadd.f32 %v5575_v33, %v2220_v42  ;;  %4222 = vmatprep.mubr.bf16.mxu1 %v9430_v1 }
 0x1bb   : > { %v5465_v60 = vpop.f32.mrb[21].mxu0 }
 0x1bc   : > { %v5466_v55 = vadd.f32 %v5465_v60, %v5464_v32  ;;  %v5467_v50 = vpop.f32.mrb[22].mxu0  ;;  %v5576_v25 = vpop.f32.mrb[20].mxu1 }
 0x1bd   : > { %v5468_v63 = vpop.f32.mrb[23].mxu0  ;;  %v5577_v48 = vpop.f32.mrb[21].mxu1 }
 0x1be   : > { %v5469_v14 = vadd.f32 %v5468_v63, %v5467_v50  ;;  %v2225_v20 = vadd.f32 %v5466_v55, %v8120_v58  ;;  %v5578_v28 = vadd.f32 %v5577_v48, %v5576_v25  ;;  %v5579_v17 = vpop.f32.mrb[22].mxu1 }
 0x1bf   : > { %6379 = vmatmul.mubr.bf16.vlgmr.msra.gmra.mrb[128].mxu0 %v7452_v35  ;;  %v5580_v5 = vpop.f32.mrb[23].mxu1 }
 0x1c0   : > { %6382 = vmatprep.mubr.bf16.mxu0 %v7524_v18  ;;  %v2228_v49 = vadd.f32 %v5469_v14, %v8120_v58  ;;  %v5581_v9 = vadd.f32 %v5580_v5, %v5579_v17  ;;  %v8190_v7 = vadd.f32 %v5578_v28, %v2225_v20 }
 0x1c2   : > { %v5470_v21 = vpop.f32.mrb[24].mxu0  ;;  %v8194_v38 = vadd.f32 %v5581_v9, %v2228_v49 }
 0x1c3   : > { %v5471_v46 = vpop.f32.mrb[25].mxu0 }
 0x1c4   : > { %v5472_v31 = vadd.f32 %v5471_v46, %v5470_v21  ;;  %v5473_v53 = vpop.f32.mrb[26].mxu0  ;;  %v5582_v26 = vpop.f32.mrb[24].mxu1 }
 0x1c5   : > { %v5474_v35 = vpop.f32.mrb[27].mxu0  ;;  %v5583_v8 = vpop.f32.mrb[25].mxu1 }
 0x1c6   : > { %v5475_v18 = vadd.f32 %v5474_v35, %v5473_v53  ;;  %v2233_v6 = vadd.f32 %v5472_v31, %v8120_v58  ;;  %v5584_v10 = vadd.f32 %v5583_v8, %v5582_v26  ;;  %v5585_v60 = vpop.f32.mrb[26].mxu1  ;;  %v6626_v35 = vld [vmem:[#allocation9] sm:$0xff]  }
 0x1c7   : > { %6383 = vmatmul.mubr.bf16.gmra.mrb[132].mxu0 %v7582_v15  ;;  %v5586_v37 = vpop.f32.mrb[27].mxu1 }
 0x1c8   : > { %6386 = vmatprep.mubr.bf16.mxu0 %v7645_v0  ;;  %v2236_v32 = vadd.f32 %v5475_v18, %v8120_v58  ;;  %v5587_v50 = vadd.f32 %v5586_v37, %v5585_v60  ;;  %v8198_v12 = vadd.f32 %v5584_v10, %v2233_v6 }
 0x1ca   : > { %v5476_v62 = vpop.f32.mrb[28].mxu0  ;;  %v8202_v0 = vadd.f32 %v5587_v50, %v2236_v32 }
 0x1cb   : > { %v5477_v44 = vpop.f32.mrb[29].mxu0 }
 0x1cc   : > { %v5478_v42 = vadd.f32 %v5477_v44, %v5476_v62  ;;  %v5479_v16 = vpop.f32.mrb[30].mxu0  ;;  %v5588_v33 = vpop.f32.mrb[28].mxu1 }
 0x1cd   : > { %v5480_v55 = vpop.f32.mrb[31].mxu0  ;;  %v5589_v20 = vpop.f32.mrb[29].mxu1 }
 0x1ce   : > { %v5481_v15 = vadd.f32 %v5480_v55, %v5479_v16  ;;  %v2241_v63 = vadd.f32 %v5478_v42, %v8120_v58  ;;  %v5590_v48 = vadd.f32 %v5589_v20, %v5588_v33  ;;  %v5591_v46 = vpop.f32.mrb[30].mxu1 }
 0x1cf   : > { %6387 = vmatmul.mubr.bf16.gmra.mrb[136].mxu0 %v7762_v61  ;;  %v5592_v17 = vpop.f32.mrb[31].mxu1 }
 0x1d0   : > { %6390 = vmatprep.mubr.bf16.mxu0 %v7820_v51  ;;  %v2244_v21 = vadd.f32 %v5481_v15, %v8120_v58  ;;  %v5593_v53 = vadd.f32 %v5592_v17, %v5591_v46  ;;  %v8206_v5 = vadd.f32 %v5590_v48, %v2241_v63  ;;  %v6625_v51 = vld [vmem:[#allocation9 + $0x40] sm:$0xff]  }
 0x1d1   : > { %5890 = vmatprep.subr.bf16.mxu1 %v6625_v51 }
 0x1d2   : > { %v5482_v14 = vpop.f32.mrb[32].mxu0  ;;  %v8210_v9 = vadd.f32 %v5593_v53, %v2244_v21  ;;  %5891 = vmatpush3.bf16.msra.mxu1 %v6626_v35 }
 0x1d3   : > { %v5483_v25 = vpop.f32.mrb[33].mxu0 }
 0x1d4   : > { %v5484_v49 = vadd.f32 %v5483_v25, %v5482_v14  ;;  %v5485_v28 = vpop.f32.mrb[34].mxu0  ;;  %v5594_v6 = vpop.f32.mrb[32].mxu1 }
 0x1d5   : > { %v5486_v31 = vpop.f32.mrb[35].mxu0  ;;  %v5595_v62 = vpop.f32.mrb[33].mxu1 }
 0x1d6   : > { %v5487_v61 = vadd.f32 %v5486_v31, %v5485_v28  ;;  %v2249_v18 = vadd.f32 %v5484_v49, %v8120_v58  ;;  %v5596_v32 = vadd.f32 %v5595_v62, %v5594_v6  ;;  %v5597_v10 = vpop.f32.mrb[34].mxu1 }
 0x1d7   : > { %6391 = vmatmul.mubr.bf16.gmra.mrb[140].mxu0 %v7866_v22  ;;  %v5598_v16 = vpop.f32.mrb[35].mxu1 }
 0x1d8   : > { %6394 = vmatprep.mubr.bf16.mxu0 %v7906_v36  ;;  %v2252_v44 = vadd.f32 %v5487_v61, %v8120_v58  ;;  %v8214_v37 = vadd.f32 %v5596_v32, %v2249_v18  ;;  %v5599_v36 = vadd.f32 %v5598_v16, %v5597_v10  ;;  %v6627_v61 = vld [vmem:[#allocation9 + $0x48] sm:$0xff]  }
 0x1d9   : > { %5892 = vmatprep.subr.bf16.mxu1 %v6627_v61 }
 0x1da   : > { %v5488_v26 = vpop.f32.mrb[36].mxu0  ;;  %v8217_v50 = vadd.f32 %v5599_v36, %v2252_v44 }
 0x1db   : > { %v5489_v8 = vpop.f32.mrb[37].mxu0 }
 0x1dc   : > { %v5490_v60 = vadd.f32 %v5489_v8, %v5488_v26  ;;  %v5491_v42 = vpop.f32.mrb[38].mxu0  ;;  %v5600_v63 = vpop.f32.mrb[36].mxu1 }
 0x1dd   : > { %v5492_v22 = vpop.f32.mrb[39].mxu0  ;;  %v5601_v14 = vpop.f32.mrb[37].mxu1 }
 0x1de   : > { %v5493_v55 = vadd.f32 %v5492_v22, %v5491_v42  ;;  %v2257_v15 = vadd.f32 %v5490_v60, %v8120_v58  ;;  %v5602_v21 = vadd.f32 %v5601_v14, %v5600_v63  ;;  %v5603_v48 = vpop.f32.mrb[38].mxu1 }
 0x1df   : > { %6395 = vmatmul.mubr.bf16.gmra.mrb[144].mxu0 %v7941_v2  ;;  %v5604_v28 = vpop.f32.mrb[39].mxu1 }
 0x1e0   : > { %6398 = vmatprep.mubr.bf16.mxu0 %v7979_v54  ;;  %v2260_v25 = vadd.f32 %v5493_v55, %v8120_v58  ;;  %v8222_v31 = vadd.f32 %v5602_v21, %v2257_v15  ;;  %v5605_v2 = vadd.f32 %v5604_v28, %v5603_v48  ;;  %v6628_v54 = vld [vmem:[#allocation9 + $0x8] sm:$0xff]  }
 0x1e1   : > { %5893 = vmatpush3.bf16.msra.mxu1 %v6628_v54 }
 0x1e2   : > { %v5494_v33 = vpop.f32.mrb[40].mxu0  ;;  %v8225_v51 = vadd.f32 %v5605_v2, %v2260_v25 }
 0x1e3   : > { %v5495_v20 = vpop.f32.mrb[41].mxu0 }
 0x1e4   : > { %v5496_v46 = vadd.f32 %v5495_v20, %v5494_v33  ;;  %v5497_v49 = vpop.f32.mrb[42].mxu0  ;;  %v5606_v18 = vpop.f32.mrb[40].mxu1 }
 0x1e5   : > { %v5498_v17 = vpop.f32.mrb[43].mxu0  ;;  %v5607_v26 = vpop.f32.mrb[41].mxu1 }
 0x1e6   : > { %v5499_v53 = vadd.f32 %v5498_v17, %v5497_v49  ;;  %v2265_v35 = vadd.f32 %v5496_v46, %v8120_v58  ;;  %v5608_v44 = vadd.f32 %v5607_v26, %v5606_v18  ;;  %v5609_v32 = vpop.f32.mrb[42].mxu1 }
 0x1e7   : > { %6399 = vmatmul.mubr.bf16.gmra.mrb[148].mxu0 %v8018_v34  ;;  %v5610_v42 = vpop.f32.mrb[43].mxu1 }
 0x1e8   : > { %6402 = vmatprep.mubr.bf16.mxu0 %v8054_v43  ;;  %v2268_v8 = vadd.f32 %v5499_v53, %v8120_v58  ;;  %v8230_v16 = vadd.f32 %v5608_v44, %v2265_v35  ;;  %v5611_v22 = vadd.f32 %v5610_v42, %v5609_v32  ;;  %v6629_v53 = vld [vmem:[#allocation9 + $0x50] sm:$0xff]  }
 0x1e9   : > { %5894 = vmatprep.subr.bf16.mxu1 %v6629_v53 }
 0x1ea   : > { %v5500_v6 = vpop.f32.mrb[44].mxu0  ;;  %v8233_v36 = vadd.f32 %v5611_v22, %v2268_v8 }
 0x1eb   : > { %v5501_v62 = vpop.f32.mrb[45].mxu0 }
 0x1ec   : > { %v5502_v10 = vadd.f32 %v5501_v62, %v5500_v6  ;;  %v5503_v60 = vpop.f32.mrb[46].mxu0  ;;  %v5612_v15 = vpop.f32.mrb[44].mxu1 }
 0x1ed   : > { %v5504_v34 = vpop.f32.mrb[47].mxu0  ;;  %v5613_v33 = vpop.f32.mrb[45].mxu1 }
 0x1ee   : > { %v5505_v43 = vadd.f32 %v5504_v34, %v5503_v60  ;;  %v2273_v55 = vadd.f32 %v5502_v10, %v8120_v58  ;;  %v5614_v25 = vadd.f32 %v5613_v33, %v5612_v15  ;;  %v5615_v21 = vpop.f32.mrb[46].mxu1 }
 0x1ef   : > { %6403 = vmatmul.mubr.bf16.gmra.mrb[152].mxu0 %v8072_v11  ;;  %v5616_v49 = vpop.f32.mrb[47].mxu1 }
 0x1f0   : > { %6406 = vmatprep.mubr.bf16.mxu0 %v8160_v4  ;;  %v2276_v20 = vadd.f32 %v5505_v43, %v8120_v58  ;;  %v8238_v17 = vadd.f32 %v5614_v25, %v2273_v55  ;;  %v5617_v11 = vadd.f32 %v5616_v49, %v5615_v21  ;;  %v6630_v4 = vld [vmem:[#allocation9 + $0x10] sm:$0xff]  }
 0x1f1   : > { %5895 = vmatpush3.bf16.msra.mxu1 %v6630_v4 }
 0x1f2   : > { %v5506_v63 = vpop.f32.mrb[48].mxu0  ;;  %v8241_v61 = vadd.f32 %v5617_v11, %v2276_v20 }
 0x1f3   : > { %v5507_v14 = vpop.f32.mrb[49].mxu0 }
 0x1f4   : > { %v5508_v48 = vadd.f32 %v5507_v14, %v5506_v63  ;;  %v5509_v46 = vpop.f32.mrb[50].mxu0  ;;  %v5618_v35 = vpop.f32.mrb[48].mxu1 }
 0x1f5   : > { %v5510_v28 = vpop.f32.mrb[51].mxu0  ;;  %v5619_v6 = vpop.f32.mrb[49].mxu1 }
 0x1f6   : > { %v5511_v2 = vadd.f32 %v5510_v28, %v5509_v46  ;;  %v2281_v54 = vadd.f32 %v5508_v48, %v8120_v58  ;;  %v5620_v8 = vadd.f32 %v5619_v6, %v5618_v35  ;;  %v5621_v44 = vpop.f32.mrb[50].mxu1  ;;  %v6632_v35 = vld [vmem:[#allocation9 + $0x18] sm:$0xff]  }
 0x1f7   : > { %6407 = vmatmul.mubr.bf16.gmra.mrb[156].mxu0 %v9430_v1  ;;  %v5622_v60 = vpop.f32.mrb[51].mxu1 }
 0x1f8   : > { %v2284_v62 = vadd.f32 %v5511_v2, %v8120_v58  ;;  %v8245_v34 = vadd.f32 %v5620_v8, %v2281_v54  ;;  %v5623_v22 = vadd.f32 %v5622_v60, %v5621_v44  ;;  %v6631_v54 = vld [vmem:[#allocation9 + $0x58] sm:$0xff]  }
 0x1f9   : > { %5896 = vmatprep.subr.bf16.mxu1 %v6631_v54 }
 0x1fa   : > { %v5512_v18 = vpop.f32.mrb[52].mxu0  ;;  %v8247_v55 = vadd.f32 %v5623_v22, %v2284_v62  ;;  %5897 = vmatpush3.bf16.msra.mxu1 %v6632_v35 }
 0x1fb   : > { %v5513_v26 = vpop.f32.mrb[53].mxu0 }
 0x1fc   : > { %v5514_v32 = vadd.f32 %v5513_v26, %v5512_v18  ;;  %v5515_v10 = vpop.f32.mrb[54].mxu0  ;;  %v5624_v63 = vpop.f32.mrb[52].mxu1 }
 0x1fd   : > { %v5516_v42 = vpop.f32.mrb[55].mxu0  ;;  %v5625_v14 = vpop.f32.mrb[53].mxu1 }
 0x1fe   : > { %v5517_v43 = vadd.f32 %v5516_v42, %v5515_v10  ;;  %v2289_v15 = vadd.f32 %v5514_v32, %v8120_v58  ;;  %v5626_v21 = vadd.f32 %v5625_v14, %v5624_v63  ;;  %v5627_v48 = vpop.f32.mrb[54].mxu1 }
 0x1ff   : > { %v5628_v28 = vpop.f32.mrb[55].mxu1 }
 0x200   : > { %v2292_v25 = vadd.f32 %v5517_v43, %v8120_v58  ;;  %v8251_v2 = vadd.f32 %v5626_v21, %v2289_v15  ;;  %v5629_v53 = vadd.f32 %v5628_v28, %v5627_v48  ;;  %v6634_v21 = vld [vmem:[#allocation9 + $0x20] sm:$0xff]  }
 0x202   : > { %v5518_v33 = vpop.f32.mrb[56].mxu0  ;;  %v8253_v18 = vadd.f32 %v5629_v53, %v2292_v25  ;;  %v6635_v53 = vld [vmem:[#allocation9 + $0x68] sm:$0xff]  }
 0x203   : > { %v5519_v20 = vpop.f32.mrb[57].mxu0 }
 0x204   : > { %v5520_v46 = vadd.f32 %v5519_v20, %v5518_v33  ;;  %v5521_v49 = vpop.f32.mrb[58].mxu0  ;;  %v5630_v26 = vpop.f32.mrb[56].mxu1  ;;  %v6633_v20 = vld [vmem:[#allocation9 + $0x60] sm:$0xff]  }
 0x205   : > { %v5522_v11 = vpop.f32.mrb[59].mxu0  ;;  %v5631_v8 = vpop.f32.mrb[57].mxu1  ;;  %5898 = vmatprep.subr.bf16.mxu1 %v6633_v20  ;;  %v6639_v20 = vld [vmem:[#allocation9 + $0x78] sm:$0xff]  }
 0x206   : > { %v5523_v4 = vadd.f32 %v5522_v11, %v5521_v49  ;;  %v2297_v6 = vadd.f32 %v5520_v46, %v8120_v58  ;;  %v5632_v10 = vadd.f32 %v5631_v8, %v5630_v26  ;;  %v5633_v60 = vpop.f32.mrb[58].mxu1  ;;  %5899 = vmatpush3.bf16.msra.mxu1 %v6634_v21  ;;  %v6640_v21 = vld [vmem:[#allocation9 + $0x38] sm:$0xff]  }
 0x207   : > { %v5634_v43 = vpop.f32.mrb[59].mxu1  ;;  %5900 = vmatprep.subr.bf16.mxu1 %v6635_v53 }
 0x208   : > { %v2300_v32 = vadd.f32 %v5523_v4, %v8120_v58  ;;  %v8257_v63 = vadd.f32 %v5632_v10, %v2297_v6  ;;  %v5635_v33 = vadd.f32 %v5634_v43, %v5633_v60 }
 0x20a   : > { %v5524_v62 = vpop.f32.mrb[60].mxu0  ;;  %v8259_v25 = vadd.f32 %v5635_v33, %v2300_v32 }
 0x20b   : > { %v5525_v44 = vpop.f32.mrb[61].mxu0 }
 0x20c   : > { %v5526_v42 = vadd.f32 %v5525_v44, %v5524_v62  ;;  %v5527_v22 = vpop.f32.mrb[62].mxu0  ;;  %v5636_v46 = vpop.f32.mrb[60].mxu1  ;;  %v6636_v62 = vld [vmem:[#allocation9 + $0x28] sm:$0xff]  }
 0x20d   : > { %v5528_v15 = vpop.f32.mrb[63].mxu0  ;;  %v5637_v28 = vpop.f32.mrb[61].mxu1  ;;  %5901 = vmatpush3.bf16.msra.mxu1 %v6636_v62 }
 0x20e   : > { %v5529_v14 = vadd.f32 %v5528_v15, %v5527_v22  ;;  %v2305_v48 = vadd.f32 %v5526_v42, %v8120_v58  ;;  %v5638_v54 = vadd.f32 %v5637_v28, %v5636_v46  ;;  %v5639_v35 = vpop.f32.mrb[62].mxu1  ;;  %v6637_v22 = vld [vmem:[#allocation9 + $0x70] sm:$0xff]  }
 0x20f   : > { %v5640_v8 = vpop.f32.mrb[63].mxu1  ;;  %v6638_v15 = vld [vmem:[#allocation9 + $0x30] sm:$0xff]   ;;  %5902 = vmatprep.subr.bf16.mxu1 %v6637_v22 }
 0x210   : > { %v2308_v4 = vadd.f32 %v5529_v14, %v8120_v58  ;;  %v8263_v32 = vadd.f32 %v5638_v54, %v2305_v48  ;;  %v5641_v10 = vadd.f32 %v5640_v8, %v5639_v35 }
 0x211   : > { %5903 = vmatpush3.bf16.msra.mxu1 %v6638_v15 }
 0x212   : > { %v5658_v49 = vpop.f32.mrb[64].mxu0  ;;  %v8266_v43 = vadd.f32 %v5641_v10, %v2308_v4  ;;  %5904 = vmatprep.subr.bf16.mxu1 %v6639_v20 }
 0x213   : > { %v5659_v11 = vpop.f32.mrb[65].mxu0 }
 0x214   : > { %v5660_v6 = vadd.f32 %v5659_v11, %v5658_v49  ;;  %v5661_v26 = vpop.f32.mrb[66].mxu0  ;;  %v5770_v33 = vpop.f32.mrb[64].mxu1 }
 0x215   : > { %v5662_v44 = vpop.f32.mrb[67].mxu0  ;;  %v5771_v46 = vpop.f32.mrb[65].mxu1  ;;  %5905 = vmatpush3.bf16.msra.mxu1 %v6640_v21 }
 0x216   : > { %v2507_v60 = vadd.f32 %v5660_v6, %v8128_v30  ;;  %v5663_v42 = vadd.f32 %v5662_v44, %v5661_v26  ;;  %v5772_v49 = vadd.f32 %v5771_v46, %v5770_v33  ;;  %v5773_v28 = vpop.f32.mrb[66].mxu1 }
 0x217   : > { %v5774_v53 = vpop.f32.mrb[67].mxu1 }
 0x218   : > { %v2510_v58 = vadd.f32 %v5663_v42, %v8134_v19  ;;  %v5775_v4 = vadd.f32 %v5774_v53, %v5773_v28  ;;  %v8270_v6 = vadd.f32 %v5772_v49, %v2507_v60  ;;  %4223 = vmatmul.mubr.bf16.vlgmr.msra.gmra.mrb[128].mxu1 %v9430_v1 }
 0x21a   : > { %v5664_v14 = vpop.f32.mrb[68].mxu0  ;;  %v8273_v62 = vadd.f32 %v5775_v4, %v2510_v58 }
 0x21b   : > { %v5665_v48 = vpop.f32.mrb[69].mxu0 }
 0x21c   : > { %v5666_v11 = vadd.f32 %v5665_v48, %v5664_v14  ;;  %v5667_v30 = vpop.f32.mrb[70].mxu0  ;;  %v5776_v8 = vpop.f32.mrb[68].mxu1 }
 0x21d   : > { %v5668_v54 = vpop.f32.mrb[71].mxu0  ;;  %v5777_v10 = vpop.f32.mrb[69].mxu1 }
 0x21e   : > { %v2515_v35 = vadd.f32 %v5666_v11, %v8145_v13  ;;  %v5669_v19 = vadd.f32 %v5668_v54, %v5667_v30  ;;  %v5778_v22 = vadd.f32 %v5777_v10, %v5776_v8  ;;  %v5779_v15 = vpop.f32.mrb[70].mxu1 }
 0x21f   : > { %v5780_v20 = vpop.f32.mrb[71].mxu1 }
 0x220   : > { %v2518_v26 = vadd.f32 %v5669_v19, %v8152_v52  ;;  %v5781_v46 = vadd.f32 %v5780_v20, %v5779_v15  ;;  %v8277_v48 = vadd.f32 %v5778_v22, %v2515_v35 }
 0x222   : > { %v5670_v44 = vpop.f32.mrb[72].mxu0  ;;  %v8280_v58 = vadd.f32 %v5781_v46, %v2518_v26 }
 0x223   : > { %v5671_v42 = vpop.f32.mrb[73].mxu0 }
 0x224   : > { %v5672_v33 = vadd.f32 %v5671_v42, %v5670_v44  ;;  %v5673_v14 = vpop.f32.mrb[74].mxu0  ;;  %v5782_v49 = vpop.f32.mrb[72].mxu1 }
 0x225   : > { %v5674_v13 = vpop.f32.mrb[75].mxu0  ;;  %v5783_v11 = vpop.f32.mrb[73].mxu1 }
 0x226   : > { %v2523_v60 = vadd.f32 %v5672_v33, %v8162_v59  ;;  %v5675_v21 = vadd.f32 %v5674_v13, %v5673_v14  ;;  %v5784_v53 = vadd.f32 %v5783_v11, %v5782_v49  ;;  %v5785_v54 = vpop.f32.mrb[74].mxu1 }
 0x227   : > { %v5786_v8 = vpop.f32.mrb[75].mxu1 }
 0x228   : > { %v2526_v52 = vadd.f32 %v5675_v21, %v8167_v39  ;;  %v5787_v10 = vadd.f32 %v5786_v8, %v5785_v54  ;;  %v8283_v35 = vadd.f32 %v5784_v53, %v2523_v60 }
 0x22a   : > { %v5676_v28 = vpop.f32.mrb[76].mxu0  ;;  %v8286_v26 = vadd.f32 %v5787_v10, %v2526_v52 }
 0x22b   : > { %v5677_v30 = vpop.f32.mrb[77].mxu0 }
 0x22c   : > { %v5678_v4 = vadd.f32 %v5677_v30, %v5676_v28  ;;  %v5679_v19 = vpop.f32.mrb[78].mxu0  ;;  %v5788_v22 = vpop.f32.mrb[76].mxu1 }
 0x22d   : > { %v5680_v44 = vpop.f32.mrb[79].mxu0  ;;  %v5789_v33 = vpop.f32.mrb[77].mxu1 }
 0x22e   : > { %v2531_v59 = vadd.f32 %v5678_v4, %v8171_v45  ;;  %v5681_v42 = vadd.f32 %v5680_v44, %v5679_v19  ;;  %v5790_v20 = vadd.f32 %v5789_v33, %v5788_v22  ;;  %v5791_v13 = vpop.f32.mrb[78].mxu1  ;;  %v6641_v4 = vld [vmem:[#allocation9 + $0xc0] sm:$0xff]  }
 0x22f   : > { %v5792_v49 = vpop.f32.mrb[79].mxu1  ;;  %6002 = vmatprep.subr.bf16.mxu0 %v6641_v4 }
 0x230   : > { %v2534_v39 = vadd.f32 %v5681_v42, %v8176_v47  ;;  %v5793_v11 = vadd.f32 %v5792_v49, %v5791_v13  ;;  %v8289_v60 = vadd.f32 %v5790_v20, %v2531_v59 }
 0x232   : > { %v5682_v15 = vpop.f32.mrb[80].mxu0  ;;  %v8292_v52 = vadd.f32 %v5793_v11, %v2534_v39  ;;  %v6645_v11 = vld [vmem:[#allocation9 + $0xd0] sm:$0xff]  }
 0x233   : > { %v5683_v14 = vpop.f32.mrb[81].mxu0 }
 0x234   : > { %v5684_v46 = vadd.f32 %v5683_v14, %v5682_v15  ;;  %v5685_v21 = vpop.f32.mrb[82].mxu0  ;;  %v5794_v53 = vpop.f32.mrb[80].mxu1 }
 0x235   : > { %v5686_v28 = vpop.f32.mrb[83].mxu0  ;;  %v5795_v19 = vpop.f32.mrb[81].mxu1 }
 0x236   : > { %v2539_v45 = vadd.f32 %v5684_v46, %v8180_v41  ;;  %v5687_v30 = vadd.f32 %v5686_v28, %v5685_v21  ;;  %v5796_v44 = vadd.f32 %v5795_v19, %v5794_v53  ;;  %v5797_v10 = vpop.f32.mrb[82].mxu1  ;;  %v6643_v46 = vld [vmem:[#allocation9 + $0xc8] sm:$0xff]  }
 0x237   : > { %v5798_v15 = vpop.f32.mrb[83].mxu1  ;;  %v6644_v28 = vld [vmem:[#allocation9 + $0x88] sm:$0xff]  }
 0x238   : > { %v2542_v47 = vadd.f32 %v5687_v30, %v8185_v23  ;;  %v5799_v41 = vadd.f32 %v5798_v15, %v5797_v10  ;;  %v8295_v20 = vadd.f32 %v5796_v44, %v2539_v45  ;;  %v6642_v23 = vld [vmem:[#allocation9 + $0x80] sm:$0xff]  }
 0x239   : > { %6003 = vmatpush3.bf16.msra.mxu0 %v6642_v23  ;;  %v6648_v23 = vld [vmem:[#allocation9 + $0x98] sm:$0xff]  }
 0x23a   : > { %v5688_v54 = vpop.f32.mrb[84].mxu0  ;;  %v8298_v13 = vadd.f32 %v5799_v41, %v2542_v47  ;;  %6004 = vmatprep.subr.bf16.mxu0 %v6643_v46  ;;  %v6649_v46 = vld [vmem:[#allocation9 + $0xe0] sm:$0xff]  }
 0x23b   : > { %v5689_v8 = vpop.f32.mrb[85].mxu0 }
 0x23c   : > { %v5690_v42 = vadd.f32 %v5689_v8, %v5688_v54  ;;  %v5691_v22 = vpop.f32.mrb[86].mxu0  ;;  %v5800_v21 = vpop.f32.mrb[84].mxu1 }
 0x23d   : > { %v5692_v33 = vpop.f32.mrb[87].mxu0  ;;  %v5801_v30 = vpop.f32.mrb[85].mxu1  ;;  %6005 = vmatpush3.bf16.msra.mxu0 %v6644_v28 }
 0x23e   : > { %v2547_v59 = vadd.f32 %v5690_v42, %v8190_v7  ;;  %v5693_v14 = vadd.f32 %v5692_v33, %v5691_v22  ;;  %v5802_v54 = vadd.f32 %v5801_v30, %v5800_v21  ;;  %v5803_v4 = vpop.f32.mrb[86].mxu1  ;;  %6006 = vmatprep.subr.bf16.mxu0 %v6645_v11  ;;  %v6646_v42 = vld [vmem:[#allocation9 + $0x90] sm:$0xff]   ;;  %v6647_v33 = vld [vmem:[#allocation9 + $0xd8] sm:$0xff]  }
 0x23f   : > { %v5804_v45 = vpop.f32.mrb[87].mxu1 }
 0x240   : > { %v2550_v39 = vadd.f32 %v5693_v14, %v8194_v38  ;;  %v5805_v38 = vadd.f32 %v5804_v45, %v5803_v4  ;;  %v8301_v10 = vadd.f32 %v5802_v54, %v2547_v59 }
 0x241   : > { %6007 = vmatpush3.bf16.msra.mxu0 %v6646_v42  ;;  %v6652_v42 = vld [vmem:[#allocation9 + $0xa8] sm:$0xff]  }
 0x242   : > { %v5694_v49 = vpop.f32.mrb[88].mxu0  ;;  %v8304_v15 = vadd.f32 %v5805_v38, %v2550_v39  ;;  %6008 = vmatprep.subr.bf16.mxu0 %v6647_v33  ;;  %v6653_v33 = vld [vmem:[#allocation9 + $0x140] sm:$0xff]  }
 0x243   : > { %v5695_v53 = vpop.f32.mrb[89].mxu0  ;;  %6114 = vmatprep.subr.bf16.mxu1 %v6653_v33 }
 0x244   : > { %v5696_v7 = vadd.f32 %v5695_v53, %v5694_v49  ;;  %v5697_v19 = vpop.f32.mrb[90].mxu0  ;;  %v5806_v41 = vpop.f32.mrb[88].mxu1 }
 0x245   : > { %v5698_v8 = vpop.f32.mrb[91].mxu0  ;;  %v5807_v21 = vpop.f32.mrb[89].mxu1  ;;  %6009 = vmatpush3.bf16.msra.mxu0 %v6648_v23 }
 0x246   : > { %v2555_v47 = vadd.f32 %v5696_v7, %v8198_v12  ;;  %v5699_v44 = vadd.f32 %v5698_v8, %v5697_v19  ;;  %v5808_v28 = vadd.f32 %v5807_v21, %v5806_v41  ;;  %v5809_v11 = vpop.f32.mrb[90].mxu1  ;;  %6010 = vmatprep.subr.bf16.mxu0 %v6649_v46  ;;  %v6650_v7 = vld [vmem:[#allocation9 + $0xa0] sm:$0xff]   ;;  %v6651_v8 = vld [vmem:[#allocation9 + $0xe8] sm:$0xff]   ;;  %v6654_v41 = vld [vmem:[#allocation9 + $0xf0] sm:$0xff]  }
 0x247   : > { %v5810_v59 = vpop.f32.mrb[91].mxu1  ;;  %v6655_v46 = vld [vmem:[#allocation9 + $0x100] sm:$0xff]  }
 0x248   : > { %v2558_v22 = vadd.f32 %v5699_v44, %v8202_v0  ;;  %v5811_v0 = vadd.f32 %v5810_v59, %v5809_v11  ;;  %v8307_v4 = vadd.f32 %v5808_v28, %v2555_v47  ;;  %6115 = vmatpush3.bf16.msra.mxu1 %v6655_v46  ;;  %v6657_v11 = vld [vmem:[#allocation9 + $0xf8] sm:$0xff]  }
 0x249   : > { %6011 = vmatpush3.bf16.msra.mxu0 %v6650_v7  ;;  %v6658_v7 = vld [vmem:[#allocation9 + $0xb8] sm:$0xff]  }
 0x24a   : > { %v5700_v14 = vpop.f32.mrb[92].mxu0  ;;  %v8310_v45 = vadd.f32 %v5811_v0, %v2558_v22  ;;  %6012 = vmatprep.subr.bf16.mxu0 %v6651_v8 }
 0x24b   : > { %v5701_v49 = vpop.f32.mrb[93].mxu0 }
 0x24c   : > { %v5702_v12 = vadd.f32 %v5701_v49, %v5700_v14  ;;  %v5703_v30 = vpop.f32.mrb[94].mxu0  ;;  %v5812_v38 = vpop.f32.mrb[92].mxu1 }
 0x24d   : > { %v5704_v53 = vpop.f32.mrb[95].mxu0  ;;  %v5813_v14 = vpop.f32.mrb[93].mxu1  ;;  %6013 = vmatpush3.bf16.msra.mxu0 %v6652_v42 }
 0x24e   : > { %v2563_v39 = vadd.f32 %v5702_v12, %v8206_v5  ;;  %v5705_v54 = vadd.f32 %v5704_v53, %v5703_v30  ;;  %v5814_v5 = vadd.f32 %v5813_v14, %v5812_v38  ;;  %v5815_v21 = vpop.f32.mrb[94].mxu1  ;;  %6014 = vmatprep.subr.bf16.mxu0 %v6654_v41 }
 0x24f   : > { %v5816_v22 = vpop.f32.mrb[95].mxu1 }
 0x250   : > { %v2566_v19 = vadd.f32 %v5705_v54, %v8210_v9  ;;  %v6656_v9 = vld [vmem:[#allocation9 + $0xb0] sm:$0xff]   ;;  %v5817_v12 = vadd.f32 %v5816_v22, %v5815_v21  ;;  %v8313_v53 = vadd.f32 %v5814_v5, %v2563_v39 }
 0x251   : > { %6015 = vmatpush3.bf16.msra.mxu0 %v6656_v9  ;;  %v6660_v9 = vld [vmem:[#allocation9 + $0x108] sm:$0xff]  }
 0x252   : > { %v5706_v44 = vpop.f32.mrb[96].mxu0  ;;  %v8316_v54 = vadd.f32 %v5817_v12, %v2566_v19  ;;  %6016 = vmatprep.subr.bf16.mxu0 %v6657_v11 }
 0x253   : > { %v5707_v23 = vpop.f32.mrb[97].mxu0 }
 0x254   : > { %v5708_v47 = vadd.f32 %v5707_v23, %v5706_v44  ;;  %v5709_v49 = vpop.f32.mrb[98].mxu0  ;;  %v5818_v8 = vpop.f32.mrb[96].mxu1 }
 0x255   : > { %v5710_v28 = vpop.f32.mrb[99].mxu0  ;;  %v5819_v44 = vpop.f32.mrb[97].mxu1  ;;  %6017 = vmatpush3.bf16.msra.mxu0 %v6658_v7 }
 0x256   : > { %v2571_v30 = vadd.f32 %v5708_v47, %v8214_v37  ;;  %v5711_v59 = vadd.f32 %v5710_v28, %v5709_v49  ;;  %v5820_v33 = vadd.f32 %v5819_v44, %v5818_v8  ;;  %v5821_v41 = vpop.f32.mrb[98].mxu1  ;;  %v6659_v49 = vld [vmem:[#allocation9 + $0x148] sm:$0xff]  }
 0x257   : > { %v5822_v37 = vpop.f32.mrb[99].mxu1  ;;  %6116 = vmatprep.subr.bf16.mxu1 %v6659_v49 }
 0x258   : > { %v2574_v0 = vadd.f32 %v5711_v59, %v8217_v50  ;;  %v5823_v39 = vadd.f32 %v5822_v37, %v5821_v41  ;;  %v8319_v19 = vadd.f32 %v5820_v33, %v2571_v30  ;;  %6117 = vmatpush3.bf16.msra.mxu1 %v6660_v9 }
 0x25a   : > { %v5712_v38 = vpop.f32.mrb[100].mxu0  ;;  %v8322_v47 = vadd.f32 %v5823_v39, %v2574_v0 }
 0x25b   : > { %v5713_v42 = vpop.f32.mrb[101].mxu0 }
 0x25c   : > { %v5714_v14 = vadd.f32 %v5713_v42, %v5712_v38  ;;  %v5715_v23 = vpop.f32.mrb[102].mxu0  ;;  %v5824_v22 = vpop.f32.mrb[100].mxu1 }
 0x25d   : > { %v5716_v46 = vpop.f32.mrb[103].mxu0  ;;  %v5825_v11 = vpop.f32.mrb[101].mxu1 }
 0x25e   : > { %v2579_v5 = vadd.f32 %v5714_v14, %v8222_v31  ;;  %v5717_v50 = vadd.f32 %v5716_v46, %v5715_v23  ;;  %v5826_v59 = vadd.f32 %v5825_v11, %v5824_v22  ;;  %v5827_v7 = vpop.f32.mrb[102].mxu1 }
 0x25f   : > { %v5828_v31 = vpop.f32.mrb[103].mxu1 }
 0x260   : > { %v2582_v21 = vadd.f32 %v5717_v50, %v8225_v51  ;;  %v5829_v30 = vadd.f32 %v5828_v31, %v5827_v7  ;;  %v8325_v0 = vadd.f32 %v5826_v59, %v2579_v5  ;;  %v6661_v59 = vld [vmem:[#allocation9 + $0x150] sm:$0xff]  }
 0x261   : > { %v6662_v7 = vld [vmem:[#allocation9 + $0x110] sm:$0xff]   ;;  %6118 = vmatprep.subr.bf16.mxu1 %v6661_v59 }
 0x262   : > { %v5718_v28 = vpop.f32.mrb[104].mxu0  ;;  %v8328_v41 = vadd.f32 %v5829_v30, %v2582_v21  ;;  %6119 = vmatpush3.bf16.msra.mxu1 %v6662_v7 }
 0x263   : > { %v5719_v12 = vpop.f32.mrb[105].mxu0 }
 0x264   : > { %v5720_v8 = vadd.f32 %v5719_v12, %v5718_v28  ;;  %v5721_v38 = vpop.f32.mrb[106].mxu0  ;;  %v5830_v14 = vpop.f32.mrb[104].mxu1 }
 0x265   : > { %v5722_v44 = vpop.f32.mrb[107].mxu0  ;;  %v5831_v37 = vpop.f32.mrb[105].mxu1 }
 0x266   : > { %v2587_v42 = vadd.f32 %v5720_v8, %v8230_v16  ;;  %v5723_v51 = vadd.f32 %v5722_v44, %v5721_v38  ;;  %v5832_v39 = vadd.f32 %v5831_v37, %v5830_v14  ;;  %v5833_v50 = vpop.f32.mrb[106].mxu1 }
 0x267   : > { %v5834_v22 = vpop.f32.mrb[107].mxu1 }
 0x268   : > { %v2590_v33 = vadd.f32 %v5723_v51, %v8233_v36  ;;  %v5835_v11 = vadd.f32 %v5834_v22, %v5833_v50  ;;  %v8331_v5 = vadd.f32 %v5832_v39, %v2587_v42 }
 0x26a   : > { %v5724_v23 = vpop.f32.mrb[108].mxu0  ;;  %v8334_v21 = vadd.f32 %v5835_v11, %v2590_v33 }
 0x26b   : > { %v5725_v46 = vpop.f32.mrb[109].mxu0 }
 0x26c   : > { %v5726_v49 = vadd.f32 %v5725_v46, %v5724_v23  ;;  %v5727_v9 = vpop.f32.mrb[110].mxu0  ;;  %v5836_v8 = vpop.f32.mrb[108].mxu1 }
 0x26d   : > { %v5728_v28 = vpop.f32.mrb[111].mxu0  ;;  %v5837_v31 = vpop.f32.mrb[109].mxu1 }
 0x26e   : > { %v2595_v16 = vadd.f32 %v5726_v49, %v8238_v17  ;;  %v5729_v12 = vadd.f32 %v5728_v28, %v5727_v9  ;;  %v5838_v30 = vadd.f32 %v5837_v31, %v5836_v8  ;;  %v5839_v51 = vpop.f32.mrb[110].mxu1 }
 0x26f   : > { %v5840_v17 = vpop.f32.mrb[111].mxu1 }
 0x270   : > { %v2598_v36 = vadd.f32 %v5729_v12, %v8241_v61  ;;  %v5841_v42 = vadd.f32 %v5840_v17, %v5839_v51  ;;  %v8337_v33 = vadd.f32 %v5838_v30, %v2595_v16  ;;  %v6663_v30 = vld [vmem:[#allocation9 + $0x158] sm:$0xff]  }
 0x271   : > { %v6664_v51 = vld [vmem:[#allocation9 + $0x118] sm:$0xff]   ;;  %6120 = vmatprep.subr.bf16.mxu1 %v6663_v30 }
 0x272   : > { %v5730_v38 = vpop.f32.mrb[112].mxu0  ;;  %v8340_v50 = vadd.f32 %v5841_v42, %v2598_v36  ;;  %6121 = vmatpush3.bf16.msra.mxu1 %v6664_v51 }
 0x273   : > { %v5731_v44 = vpop.f32.mrb[113].mxu0 }
 0x274   : > { %v5732_v14 = vadd.f32 %v5731_v44, %v5730_v38  ;;  %v5733_v23 = vpop.f32.mrb[114].mxu0  ;;  %v5842_v49 = vpop.f32.mrb[112].mxu1 }
 0x275   : > { %v5734_v37 = vpop.f32.mrb[115].mxu0  ;;  %v5843_v22 = vpop.f32.mrb[113].mxu1 }
 0x276   : > { %v2603_v46 = vadd.f32 %v5732_v14, %v8245_v34  ;;  %v5735_v61 = vadd.f32 %v5734_v37, %v5733_v23  ;;  %v5844_v11 = vadd.f32 %v5843_v22, %v5842_v49  ;;  %v5845_v12 = vpop.f32.mrb[114].mxu1 }
 0x277   : > { %v5846_v8 = vpop.f32.mrb[115].mxu1 }
 0x278   : > { %v2606_v39 = vadd.f32 %v5735_v61, %v8247_v55  ;;  %v5847_v31 = vadd.f32 %v5846_v8, %v5845_v12  ;;  %v8343_v16 = vadd.f32 %v5844_v11, %v2603_v46  ;;  %v6665_v8 = vld [vmem:[#allocation9 + $0x1c0] sm:$0xff]  }
 0x279   : > { %6226 = vmatprep.subr.bf16.mxu0 %v6665_v8 }
 0x27a   : > { %v5736_v9 = vpop.f32.mrb[116].mxu0  ;;  %v8346_v36 = vadd.f32 %v5847_v31, %v2606_v39 }
 0x27b   : > { %v5737_v28 = vpop.f32.mrb[117].mxu0 }
 0x27c   : > { %v5738_v59 = vadd.f32 %v5737_v28, %v5736_v9  ;;  %v5739_v7 = vpop.f32.mrb[118].mxu0  ;;  %v5848_v14 = vpop.f32.mrb[116].mxu1 }
 0x27d   : > { %v5740_v38 = vpop.f32.mrb[119].mxu0  ;;  %v5849_v17 = vpop.f32.mrb[117].mxu1 }
 0x27e   : > { %v2611_v34 = vadd.f32 %v5738_v59, %v8251_v2  ;;  %v5741_v44 = vadd.f32 %v5740_v38, %v5739_v7  ;;  %v5850_v42 = vadd.f32 %v5849_v17, %v5848_v14  ;;  %v5851_v61 = vpop.f32.mrb[118].mxu1 }
 0x27f   : > { %v5852_v2 = vpop.f32.mrb[119].mxu1 }
 0x280   : > { %v2614_v55 = vadd.f32 %v5741_v44, %v8253_v18  ;;  %v5853_v46 = vadd.f32 %v5852_v2, %v5851_v61  ;;  %v8349_v39 = vadd.f32 %v5850_v42, %v2611_v34  ;;  %v6667_v61 = vld [vmem:[#allocation9 + $0x160] sm:$0xff]  }
 0x281   : > { %6122 = vmatprep.subr.bf16.mxu1 %v6667_v61 }
 0x282   : > { %v5742_v23 = vpop.f32.mrb[120].mxu0  ;;  %v8352_v12 = vadd.f32 %v5853_v46, %v2614_v55 }
 0x283   : > { %v5743_v37 = vpop.f32.mrb[121].mxu0 }
 0x284   : > { %v5744_v49 = vadd.f32 %v5743_v37, %v5742_v23  ;;  %v5745_v9 = vpop.f32.mrb[122].mxu0  ;;  %v5854_v59 = vpop.f32.mrb[120].mxu1 }
 0x285   : > { %v5746_v22 = vpop.f32.mrb[123].mxu0  ;;  %v5855_v38 = vpop.f32.mrb[121].mxu1 }
 0x286   : > { %v2619_v28 = vadd.f32 %v5744_v49, %v8257_v63  ;;  %v5747_v18 = vadd.f32 %v5746_v22, %v5745_v9  ;;  %v5856_v44 = vadd.f32 %v5855_v38, %v5854_v59  ;;  %v5857_v30 = vpop.f32.mrb[122].mxu1  ;;  %v6668_v49 = vld [vmem:[#allocation9 + $0x120] sm:$0xff]  }
 0x287   : > { %v5858_v23 = vpop.f32.mrb[123].mxu1  ;;  %6123 = vmatpush3.bf16.msra.mxu1 %v6668_v49 }
 0x288   : > { %v2622_v11 = vadd.f32 %v5747_v18, %v8259_v25  ;;  %v5859_v63 = vadd.f32 %v5858_v23, %v5857_v30  ;;  %v8355_v42 = vadd.f32 %v5856_v44, %v2619_v28 }
 0x28a   : > { %v5748_v7 = vpop.f32.mrb[124].mxu0  ;;  %v8358_v55 = vadd.f32 %v5859_v63, %v2622_v11 }
 0x28b   : > { %v5749_v31 = vpop.f32.mrb[125].mxu0 }
 0x28c   : > { %v5750_v51 = vadd.f32 %v5749_v31, %v5748_v7  ;;  %v5751_v14 = vpop.f32.mrb[126].mxu0  ;;  %v5860_v9 = vpop.f32.mrb[124].mxu1 }
 0x28d   : > { %v5752_v17 = vpop.f32.mrb[127].mxu0  ;;  %v5861_v22 = vpop.f32.mrb[125].mxu1 }
 0x28e   : > { %v2627_v34 = vadd.f32 %v5750_v51, %v8263_v32  ;;  %v5753_v37 = vadd.f32 %v5752_v17, %v5751_v14  ;;  %v5862_v59 = vadd.f32 %v5861_v22, %v5860_v9  ;;  %v5863_v7 = vpop.f32.mrb[126].mxu1 }
 0x28f   : > { %v5864_v8 = vpop.f32.mrb[127].mxu1 }
 0x290   : > { %v2630_v25 = vadd.f32 %v5753_v37, %v8266_v43  ;;  %v5865_v31 = vadd.f32 %v5864_v8, %v5863_v7  ;;  %v8366_v51 = vadd.f32 %v5862_v59, %v2627_v34 }
 0x292   : > { %v6380_v2 = vpop.f32.mrb[128].mxu0  ;;  %v8368_v63 = vadd.f32 %v5865_v31, %v2630_v25 }
 0x293   : > { %v2837_v46 = vadd.f32 %v6380_v2, %v8277_v48  ;;  %v2828_v18 = vpop.f32.mrb[129].mxu0 }
 0x294   : > { %v2829_v32 = vadd.f32 %v2828_v18, %v8270_v6  ;;  %v6381_v28 = vpop.f32.mrb[130].mxu0 }
 0x295   : > { %v2957_v38 = vmax.f32 %v2837_v46, 0.0  ;;  %v2840_v43 = vadd.f32 %v6381_v28, %v8280_v58  ;;  %v2831_v11 = vpop.f32.mrb[131].mxu0 }
 0x296   : > { %v8363_v44 = vmax.f32 %v2829_v32, 0.0  ;;  %v2832_v30 = vadd.f32 %v2831_v11, %v8273_v62 }
 0x297   : > { %v2958_v48 = vmax.f32 %v2840_v43, 0.0  ;;  %v3024_v14 = vrot.slane %v2957_v38, 7  ;;  %v3183_v23 = vrot.slane %v2957_v38, 1 }
 0x298   : > { %v2956_v17 = vmax.f32 %v2832_v30, 0.0  ;;  %v9255_v6 = vrot.slane %v8363_v44, 7  ;;  %v9254_v58 = vrot.slane %v8363_v44, 1 }
 0x299   : > { %v3026_v37 = vrot.slane %v2958_v48, 7  ;;  %v3185_v61 = vrot.slane %v2958_v48, 1  ;;  %v8371_v49 = vpack.c.bf16 %v2958_v48, %v2957_v38 }
 0x29a   : > { %v3022_v9 = vrot.slane %v2956_v17, 7  ;;  %v3181_v2 = vrot.slane %v2956_v17, 1  ;;  %v6384_v22 = vpop.f32.mrb[132].mxu0  ;;  %v8375_v62 = vpack.c.bf16 %v2956_v17, %v8363_v44  ;;  %v9433_v17 = vld [vmem:[#allocation20_spill] sm:$0xff] }
 0x29b   : > { %v2853_v34 = vadd.f32 %v6384_v22, %v8289_v60  ;;  %v2844_v46 = vpop.f32.mrb[133].mxu0  ;;  %v3027_v25 = vsel %vm979_vm0, %v3024_v14, %v3026_v37  ;;  %v3186_v18 = vsel %vm1139_vm2, %v3183_v23, %v3185_v61 }
 0x29c   : > { %9431 = vst [vmem:[#allocation37_spill] sm:$0xff] %v8375_v62  ;;  %v2845_v59 = vadd.f32 %v2844_v46, %v8283_v35  ;;  %v6385_v7 = vpop.f32.mrb[134].mxu0  ;;  %4230 = vmatprep.mubr.bf16.mxu1 %v8375_v62  ;;  %v8385_v32 = vsel %vm979_vm0, %v9255_v6, %v3022_v9  ;;  %v3025_v28 = vsel %vm979_vm0, %v3022_v9, %v3024_v14  ;;  %v9432_v35 = vld [vmem:[#allocation19_spill] sm:$0xff] }
 0x29d   : > { %v3182_v60 = vsel %vm1139_vm2, %v9254_v58, %v3181_v2  ;;  %v8391_v8 = vmax.f32 %v2853_v34, 0.0  ;;  %v2856_v38 = vadd.f32 %v6385_v7, %v8292_v52  ;;  %v2847_v43 = vpop.f32.mrb[135].mxu0  ;;  %v3118_v11 = vmul.f32 %v9432_v35, %v3025_v28  ;;  %v6671_v7 = vld [vmem:[#allocation9 + $0x168] sm:$0xff]  }
 0x29e   : > { %v3184_v31 = vsel %vm1139_vm2, %v3181_v2, %v3183_v23  ;;  %v2959_v30 = vmax.f32 %v2845_v59, 0.0  ;;  %v2848_v48 = vadd.f32 %v2847_v43, %v8286_v26  ;;  %v6672_v59 = vld [vmem:[#allocation9 + $0x128] sm:$0xff]   ;;  %6124 = vmatprep.subr.bf16.mxu1 %v6671_v7 }
 0x29f   : > { %v3278_v22 = vmul.f32 %v9433_v17, %v3184_v31  ;;  %v3032_v14 = vrot.slane %v8391_v8, 7  ;;  %v8399_v9 = vmax.f32 %v2856_v38, 0.0  ;;  %v8401_v46 = vpack.c.bf16 %v3027_v25, %v3118_v11  ;;  %6125 = vmatpush3.bf16.msra.mxu1 %v6672_v59 }
 0x2a0   : > { %v3028_v34 = vrot.slane %v2959_v30, 7  ;;  %v3187_v58 = vrot.slane %v2959_v30, 1  ;;  %v2960_v6 = vmax.f32 %v2848_v48, 0.0  ;;  %v3191_v28 = vrot.slane %v8391_v8, 1  ;;  %v9436_v48 = vld [vmem:[#allocation21_spill] sm:$0xff] }
 0x2a1   : > { %v8403_v52 = vpack.c.bf16 %v3278_v22, %v3182_v60  ;;  %v3034_v23 = vrot.slane %v8399_v9, 7  ;;  %v3193_v26 = vrot.slane %v8399_v9, 1  ;;  %v8410_v2 = vpack.c.bf16 %v8399_v9, %v8391_v8 }
 0x2a2   : > { %v3030_v38 = vrot.slane %v2960_v6, 7  ;;  %v3189_v25 = vrot.slane %v2960_v6, 1  ;;  %v6388_v43 = vpop.f32.mrb[136].mxu0  ;;  %v8412_v35 = vpack.c.bf16 %v2960_v6, %v2959_v30  ;;  %v3029_v60 = vsel %vm979_vm0, %v3026_v37, %v3028_v34  ;;  %v9437_v6 = vld [vmem:[#allocation22_spill] sm:$0xff] }
 0x2a3   : > { %9434 = vst [vmem:[#allocation36_spill] sm:$0xff] %v8403_v52  ;;  %9435 = vst [vmem:[#allocation40_spill] sm:$0xff] %v8410_v2  ;;  %v2869_v11 = vadd.f32 %v6388_v43, %v8301_v10  ;;  %v2860_v31 = vpop.f32.mrb[137].mxu0  ;;  %v3120_v17 = vmul.f32 %v9436_v48, %v3029_v60  ;;  %v3188_v22 = vsel %vm1139_vm2, %v3185_v61, %v3187_v58  ;;  %v9438_v61 = vld [vmem:[#allocation23_spill] sm:$0xff] }
 0x2a4   : > { %v3035_v62 = vsel %vm979_vm0, %v3032_v14, %v3034_v23  ;;  %v2861_v8 = vadd.f32 %v2860_v31, %v8295_v20  ;;  %v6389_v9 = vpop.f32.mrb[138].mxu0  ;;  %v3031_v2 = vsel %vm979_vm0, %v3028_v34, %v3030_v38  ;;  %v3280_v30 = vmul.f32 %v9437_v6, %v3188_v22 }
 0x2a5   : > { %v3033_v37 = vsel %vm979_vm0, %v3030_v38, %v3032_v14  ;;  %v8423_v7 = vmax.f32 %v2869_v11, 0.0  ;;  %v2872_v10 = vadd.f32 %v6389_v9, %v8304_v15  ;;  %v2863_v43 = vpop.f32.mrb[139].mxu0  ;;  %v8426_v60 = vpack.c.bf16 %v3031_v2, %v3120_v17 }
 0x2a6   : > { %v3122_v48 = vmul.f32 %v9438_v61, %v3033_v37  ;;  %v2963_v52 = vmax.f32 %v2861_v8, 0.0  ;;  %v2864_v59 = vadd.f32 %v2863_v43, %v8298_v13  ;;  %v8430_v20 = vpack.c.bf16 %v3280_v30, %v3186_v18  ;;  %v9439_v18 = vld [vmem:[#allocation24_spill] sm:$0xff] }
 0x2a7   : > { %v3190_v34 = vsel %vm1139_vm2, %v3187_v58, %v3189_v25  ;;  %v3040_v31 = vrot.slane %v8423_v7, 7  ;;  %v3199_v14 = vrot.slane %v8423_v7, 1  ;;  %v8435_v38 = vmax.f32 %v2872_v10, 0.0 }
 0x2a8   : > { %v8437_v11 = vpack.c.bf16 %v3035_v62, %v3122_v48  ;;  %v3036_v15 = vrot.slane %v2963_v52, 7  ;;  %v3195_v2 = vrot.slane %v2963_v52, 1  ;;  %v2964_v17 = vmax.f32 %v2864_v59, 0.0  ;;  %v9441_v48 = vld [vmem:[#allocation25_spill] sm:$0xff] }
 0x2a9   : > { %v3192_v22 = vsel %vm1139_vm2, %v3189_v25, %v3191_v28  ;;  %v3042_v8 = vrot.slane %v8435_v38, 7  ;;  %v3201_v13 = vrot.slane %v8435_v38, 1  ;;  %v8445_v58 = vpack.c.bf16 %v8435_v38, %v8423_v7 }
 0x2aa   : > { %v3282_v9 = vmul.f32 %v9439_v18, %v3192_v22  ;;  %v3038_v6 = vrot.slane %v2964_v17, 7  ;;  %v3197_v30 = vrot.slane %v2964_v17, 1  ;;  %v6392_v37 = vpop.f32.mrb[140].mxu0  ;;  %v8447_v62 = vpack.c.bf16 %v2964_v17, %v2963_v52 }
 0x2ab   : > { %9440 = vst [vmem:[#allocation42_spill] sm:$0xff] %v8445_v58  ;;  %v3037_v10 = vsel %vm979_vm0, %v3034_v23, %v3036_v15  ;;  %v2885_v43 = vadd.f32 %v6392_v37, %v8313_v53  ;;  %v2876_v25 = vpop.f32.mrb[141].mxu0  ;;  %v3194_v22 = vsel %vm1139_vm2, %v3191_v28, %v3193_v26  ;;  %v3196_v58 = vsel %vm1139_vm2, %v3193_v26, %v3195_v2 }
 0x2ac   : > { %v8451_v61 = vpack.c.bf16 %v3282_v9, %v3190_v34  ;;  %v3124_v59 = vmul.f32 %v9441_v48, %v3037_v10  ;;  %v2877_v18 = vadd.f32 %v2876_v25, %v8307_v4  ;;  %v6393_v7 = vpop.f32.mrb[142].mxu0  ;;  %v3039_v38 = vsel %vm979_vm0, %v3036_v15, %v3038_v6  ;;  %v9442_v9 = vld [vmem:[#allocation26_spill] sm:$0xff]  ;;  %v9443_v25 = vld [vmem:[#allocation27_spill] sm:$0xff] }
 0x2ad   : > { %v3041_v52 = vsel %vm979_vm0, %v3038_v6, %v3040_v31  ;;  %v8459_v17 = vmax.f32 %v2885_v43, 0.0  ;;  %v2888_v53 = vadd.f32 %v6393_v7, %v8316_v54  ;;  %v2879_v23 = vpop.f32.mrb[143].mxu0  ;;  %v3284_v37 = vmul.f32 %v9442_v9, %v3196_v58  ;;  %v6675_v58 = vld [vmem:[#allocation9 + $0x170] sm:$0xff]  }
 0x2ae   : > { %v8462_v34 = vpack.c.bf16 %v3039_v38, %v3124_v59  ;;  %v2967_v10 = vmax.f32 %v2877_v18, 0.0  ;;  %v2880_v28 = vadd.f32 %v2879_v23, %v8310_v45  ;;  %v3043_v4 = vsel %vm979_vm0, %v3040_v31, %v3042_v8  ;;  %v6676_v23 = vld [vmem:[#allocation9 + $0x130] sm:$0xff]   ;;  %6126 = vmatprep.subr.bf16.mxu1 %v6675_v58  ;;  %v9447_v58 = vld [vmem:[#allocation29_spill] sm:$0xff] }
 0x2af   : > { %v3126_v15 = vmul.f32 %v9443_v25, %v3041_v52  ;;  %v3048_v26 = vrot.slane %v8459_v17, 7  ;;  %v8470_v43 = vmax.f32 %v2888_v53, 0.0  ;;  %v8472_v48 = vpack.c.bf16 %v3284_v37, %v3194_v22  ;;  %v9445_v37 = vld [vmem:[#allocation28_spill] sm:$0xff]  ;;  %6127 = vmatpush3.bf16.msra.mxu1 %v6676_v23 }
 0x2b0   : > { %v3044_v54 = vrot.slane %v2967_v10, 7  ;;  %v3203_v59 = vrot.slane %v2967_v10, 1  ;;  %v2968_v7 = vmax.f32 %v2880_v28, 0.0  ;;  %v3198_v18 = vsel %vm1139_vm2, %v3195_v2, %v3197_v30 }
 0x2b1   : > { %v8474_v38 = vpack.c.bf16 %v3043_v4, %v3126_v15  ;;  %v3050_v45 = vrot.slane %v8470_v43, 7  ;;  %v3200_v52 = vsel %vm1139_vm2, %v3197_v30, %v3199_v14  ;;  %v8487_v31 = vpack.c.bf16 %v8470_v43, %v8459_v17 }
 0x2b2   : > { %v3046_v9 = vrot.slane %v2968_v7, 7  ;;  %v3205_v53 = vrot.slane %v2968_v7, 1  ;;  %v6396_v25 = vpop.f32.mrb[144].mxu0  ;;  %v8480_v22 = vpack.c.bf16 %v2968_v7, %v2967_v10  ;;  %v3286_v6 = vmul.f32 %v9445_v37, %v3200_v52 }
 0x2b3   : > { %9444 = vst [vmem:[#allocation17_spill] sm:$0xff] %v8474_v38  ;;  %v2901_v28 = vadd.f32 %v6396_v25, %v8325_v0  ;;  %v2892_v4 = vpop.f32.mrb[145].mxu0  ;;  %v3045_v15 = vsel %vm979_vm0, %v3042_v8, %v3044_v54  ;;  %9446 = vst [vmem:[#allocation19_spill] sm:$0xff] %v8487_v31  ;;  %v3202_v2 = vsel %vm1139_vm2, %v3199_v14, %v3201_v13 }
 0x2b4   : > { %v2893_v30 = vadd.f32 %v2892_v4, %v8319_v19  ;;  %v6397_v38 = vpop.f32.mrb[146].mxu0  ;;  %v8491_v10 = vpack.c.bf16 %v3286_v6, %v3198_v18  ;;  %v3047_v7 = vsel %vm979_vm0, %v3044_v54, %v3046_v9  ;;  %v3128_v52 = vmul.f32 %v9447_v58, %v3045_v15  ;;  %v9449_v6 = vld [vmem:[#allocation30_spill] sm:$0xff] }
 0x2b5   : > { %v8495_v0 = vmax.f32 %v2901_v28, 0.0  ;;  %v2904_v8 = vadd.f32 %v6397_v38, %v8328_v41  ;;  %v2895_v25 = vpop.f32.mrb[147].mxu0  ;;  %v3204_v37 = vsel %vm1139_vm2, %v3201_v13, %v3203_v59  ;;  %v3049_v31 = vsel %vm979_vm0, %v3046_v9, %v3048_v26 }
 0x2b6   : > { %v8500_v14 = vmax.f32 %v2893_v30, 0.0  ;;  %v2896_v19 = vadd.f32 %v2895_v25, %v8322_v47  ;;  %v8503_v23 = vpack.c.bf16 %v3047_v7, %v3128_v52  ;;  %v3288_v18 = vmul.f32 %v9449_v6, %v3204_v37  ;;  %v9451_v7 = vld [vmem:[#allocation31_spill] sm:$0xff]  ;;  %v9454_v30 = vld [vmem:[#allocation32_spill] sm:$0xff] }
 0x2b7   : > { %v3056_v54 = vrot.slane %v8495_v0, 7  ;;  %v8508_v4 = vmax.f32 %v2904_v8, 0.0  ;;  %v3051_v41 = vsel %vm979_vm0, %v3048_v26, %v3050_v45  ;;  %v3130_v58 = vmul.f32 %v9451_v7, %v3049_v31 }
 0x2b8   : > { %9448 = vst [vmem:[#allocation20_spill] sm:$0xff] %v8503_v23  ;;  %v3052_v13 = vrot.slane %v8500_v14, 7  ;;  %v3211_v38 = vrot.slane %v8500_v14, 1  ;;  %v2972_v9 = vmax.f32 %v2896_v19, 0.0  ;;  %v8513_v15 = vpack.c.bf16 %v3288_v18, %v3202_v2 }
 0x2b9   : > { %v3058_v47 = vrot.slane %v8508_v4, 7  ;;  %v3206_v52 = vsel %vm1139_vm2, %v3203_v59, %v3205_v53  ;;  %v9453_v6 = vrot.slane %v8459_v17, 1  ;;  %v8526_v28 = vpack.c.bf16 %v3051_v41, %v3130_v58 }
 0x2ba   : > { %9450 = vst [vmem:[#allocation21_spill] sm:$0xff] %v8513_v15  ;;  %v3054_v25 = vrot.slane %v2972_v9, 7  ;;  %v3213_v8 = vrot.slane %v2972_v9, 1  ;;  %v6400_v37 = vpop.f32.mrb[148].mxu0  ;;  %v8520_v26 = vpack.c.bf16 %v2972_v9, %v8500_v14  ;;  %v3053_v31 = vsel %vm979_vm0, %v3050_v45, %v3052_v13  ;;  %v9455_v14 = vld [vmem:[#allocation33_spill] sm:$0xff] }
 0x2bb   : > { %v3208_v19 = vsel %vm1139_vm2, %v3205_v53, %v9453_v6  ;;  %v2917_v2 = vadd.f32 %v6400_v37, %v8337_v33  ;;  %v2908_v18 = vpop.f32.mrb[149].mxu0  ;;  %v3132_v9 = vmul.f32 %v9455_v14, %v3053_v31  ;;  %v9457_v45 = vrot.slane %v8470_v43, 1 }
 0x2bc   : > { %9452 = vst [vmem:[#allocation22_spill] sm:$0xff] %v8520_v26  ;;  %v3290_v15 = vmul.f32 %v9454_v30, %v3208_v19  ;;  %v2909_v59 = vadd.f32 %v2908_v18, %v8331_v5  ;;  %v6401_v7 = vpop.f32.mrb[150].mxu0  ;;  %v3055_v23 = vsel %vm979_vm0, %v3052_v13, %v3054_v25  ;;  %v8535_v26 = vpack.c.bf16 %v8508_v4, %v8495_v0  ;;  %v9460_v18 = vld [vmem:[#allocation34_spill] sm:$0xff] }
 0x2bd   : > { %v8537_v53 = vmax.f32 %v2917_v2, 0.0  ;;  %v2920_v33 = vadd.f32 %v6401_v7, %v8340_v50  ;;  %v2911_v41 = vpop.f32.mrb[151].mxu0  ;;  %v9458_v5 = vmov %v9453_v6  ;;  %v8550_v6 = vpack.c.bf16 %v3055_v23, %v3132_v9  ;;  %v6679_v23 = vld [vmem:[#allocation9 + $0x178] sm:$0xff]  }
 0x2be   : > { %9456 = vst [vmem:[#allocation23_spill] sm:$0xff] %v8535_v26  ;;  %v8540_v58 = vpack.c.bf16 %v3290_v15, %v3206_v52  ;;  %v3210_v30 = vsel %vm1139_vm2, %v9458_v5, %v9457_v45  ;;  %v8547_v13 = vmax.f32 %v2909_v59, 0.0  ;;  %v2912_v37 = vadd.f32 %v2911_v41, %v8334_v21  ;;  %6128 = vmatprep.subr.bf16.mxu1 %v6679_v23 }
 0x2bf   : > { %v9459_v19 = vmov %v9457_v45  ;;  %v3064_v50 = vrot.slane %v8537_v53, 7  ;;  %v8557_v52 = vmax.f32 %v2920_v33, 0.0  ;;  %v3057_v21 = vsel %vm979_vm0, %v3054_v25, %v3056_v54  ;;  %v6680_v33 = vld [vmem:[#allocation9 + $0x138] sm:$0xff]  }
 0x2c0   : > { %v3212_v2 = vsel %vm1139_vm2, %v9459_v19, %v3211_v38  ;;  %v3060_v31 = vrot.slane %v8547_v13, 7  ;;  %v3219_v59 = vrot.slane %v8547_v13, 1  ;;  %v2976_v7 = vmax.f32 %v2912_v37, 0.0  ;;  %6129 = vmatpush3.bf16.msra.mxu1 %v6680_v33 }
 0x2c1   : > { %v3292_v17 = vmul.f32 %v9460_v18, %v3212_v2  ;;  %v3066_v43 = vrot.slane %v8557_v52, 7  ;;  %v3059_v41 = vsel %vm979_vm0, %v3056_v54, %v3058_v47  ;;  %v9462_v2 = vld [vmem:[#allocation35_spill] sm:$0xff]  ;;  %v3214_v26 = vsel %vm1139_vm2, %v3211_v38, %v3213_v8 }
 0x2c2   : > { %v3062_v45 = vrot.slane %v2976_v7, 7  ;;  %v3221_v5 = vrot.slane %v2976_v7, 1  ;;  %v6404_v19 = vpop.f32.mrb[152].mxu0  ;;  %v3134_v18 = vmul.f32 %v9462_v2, %v3057_v21  ;;  %v8570_v15 = vpack.c.bf16 %v2976_v7, %v8547_v13  ;;  %v9464_v13 = vld [vmem:[#allocation38_spill] sm:$0xff] }
 0x2c3   : > { %v8565_v9 = vpack.c.bf16 %v3292_v17, %v3210_v30  ;;  %v2933_v25 = vadd.f32 %v6404_v19, %v8349_v39  ;;  %v2924_v37 = vpop.f32.mrb[153].mxu0  ;;  %v9463_v30 = vrot.slane %v8495_v0, 1  ;;  %v3061_v54 = vsel %vm979_vm0, %v3058_v47, %v3060_v31 }
 0x2c4   : > { %v2925_v14 = vadd.f32 %v2924_v37, %v8343_v16  ;;  %v8579_v21 = vpack.c.bf16 %v3059_v41, %v3134_v18  ;;  %v3063_v23 = vsel %vm979_vm0, %v3060_v31, %v3062_v45  ;;  %v3136_v2 = vmul.f32 %v7692_v56, %v3061_v54  ;;  %v9470_v54 = vld [vmem:[#allocation39_spill] sm:$0xff] }
 0x2c5   : > { %9461 = vst [vmem:[#allocation24_spill] sm:$0xff] %v8565_v9  ;;  %v3216_v17 = vsel %vm1139_vm2, %v3213_v8, %v9463_v30  ;;  %v6405_v9 = vpop.f32.mrb[154].mxu0  ;;  %v8583_v39 = vmax.f32 %v2933_v25, 0.0  ;;  %v8589_v47 = vpack.c.bf16 %v8557_v52, %v8537_v53  ;;  %v9466_v33 = vrot.slane %v8508_v4, 1 }
 0x2c6   : > { %v3294_v7 = vmul.f32 %v9464_v13, %v3216_v17  ;;  %v2936_v38 = vadd.f32 %v6405_v9, %v8352_v12  ;;  %v2927_v19 = vpop.f32.mrb[155].mxu0  ;;  %v8591_v8 = vmax.f32 %v2925_v14, 0.0  ;;  %v9467_v31 = vmov %v9463_v30 }
 0x2c7   : > { %9465 = vst [vmem:[#allocation25_spill] sm:$0xff] %v8589_v47  ;;  %v2928_v16 = vadd.f32 %v2927_v19, %v8346_v36  ;;  %v3218_v18 = vsel %vm1139_vm2, %v9467_v31, %v9466_v33  ;;  %v3072_v12 = vrot.slane %v8583_v39, 7  ;;  %v8605_v25 = vpack.c.bf16 %v3063_v23, %v3136_v2 }
 0x2c8   : > { %v8594_v41 = vpack.c.bf16 %v3294_v7, %v3214_v26  ;;  %v8603_v9 = vmax.f32 %v2936_v38, 0.0  ;;  %v3068_v14 = vrot.slane %v8591_v8, 7  ;;  %v3227_v36 = vrot.slane %v8591_v8, 1 }
 0x2c9   : > { %9468 = vst [vmem:[#allocation26_spill] sm:$0xff] %v8605_v25  ;;  %v2980_v26 = vmax.f32 %v2928_v16, 0.0  ;;  %v9469_v37 = vmov %v9466_v33  ;;  %v3065_v7 = vsel %vm979_vm0, %v3062_v45, %v3064_v50  ;;  %v3067_v2 = vsel %vm979_vm0, %v3064_v50, %v3066_v43  ;;  %v9471_v33 = vld [vmem:[#allocation41_spill] sm:$0xff] }
 0x2ca   : > { %v3220_v30 = vsel %vm1139_vm2, %v9469_v37, %v3219_v59  ;;  %v3074_v0 = vrot.slane %v8603_v9, 7  ;;  %v3233_v17 = vrot.slane %v8603_v9, 1  ;;  %v6408_v19 = vpop.f32.mrb[156].mxu0  ;;  %v3138_v31 = vmul.f32 %v9471_v33, %v3065_v7 }
 0x2cb   : > { %v3296_v13 = vmul.f32 %v9470_v54, %v3220_v30  ;;  %v3070_v38 = vrot.slane %v2980_v26, 7  ;;  %v3229_v23 = vrot.slane %v2980_v26, 1  ;;  %v2949_v16 = vadd.f32 %v6408_v19, %v8366_v51  ;;  %v2940_v4 = vpop.f32.mrb[157].mxu0 }
 0x2cc   : > { %v8622_v37 = vpack.c.bf16 %v2980_v26, %v8591_v8  ;;  %v3222_v47 = vsel %vm1139_vm2, %v3219_v59, %v3221_v5  ;;  %v2941_v30 = vadd.f32 %v2940_v4, %v8355_v42  ;;  %v6409_v45 = vpop.f32.mrb[158].mxu0  ;;  %v8626_v54 = vpack.c.bf16 %v3067_v2, %v3138_v31  ;;  %v9473_v8 = vld [vmem:[#allocation43_spill] sm:$0xff]  ;;  %v9474_v2 = vld [vmem:[#allocation44_spill] sm:$0xff] }
 0x2cd   : > { %v8619_v56 = vpack.c.bf16 %v3296_v13, %v3218_v18  ;;  %v9472_v25 = vrot.slane %v8537_v53, 1  ;;  %v3069_v7 = vsel %vm979_vm0, %v3066_v43, %v3068_v14  ;;  %v8632_v51 = vmax.f32 %v2949_v16, 0.0  ;;  %v2943_v13 = vpop.f32.mrb[159].mxu0 }
 0x2ce   : > { %v2952_v18 = vadd.f32 %v6409_v45, %v8368_v63  ;;  %v3071_v59 = vsel %vm979_vm0, %v3068_v14, %v3070_v38  ;;  %v2983_v19 = vmax.f32 %v2941_v30, 0.0  ;;  %v2944_v42 = vadd.f32 %v2943_v13, %v8358_v55  ;;  %v8649_v30 = vld [vmem:[#allocation9 + $0x200] sm:$0xff]  }
 0x2cf   : > { %v3224_v50 = vsel %vm1139_vm2, %v3221_v5, %v9472_v25  ;;  %v3140_v33 = vmul.f32 %v9474_v2, %v3069_v7  ;;  %v8641_v31 = vpack.c.bf16 %v8603_v9, %v8583_v39  ;;  %v3080_v43 = vrot.slane %v8632_v51, 7  ;;  %9477 = vst [vmem:[#allocation29_spill] sm:$0xff] %v8649_v30  ;;  %6410 = vmatprep.subr.bf16.mxu1 %v8649_v30 }
 0x2d0   : > { %v3298_v26 = vmul.f32 %v9473_v8, %v3224_v50  ;;  %v3239_v5 = vrot.slane %v8632_v51, 1  ;;  %v2986_v25 = vmax.f32 %v2952_v18, 0.0  ;;  %v3076_v16 = vrot.slane %v2983_v19, 7 }
 0x2d1   : > { %9475 = vst [vmem:[#allocation27_spill] sm:$0xff] %v8641_v31  ;;  %v3235_v4 = vrot.slane %v2983_v19, 1  ;;  %v2984_v45 = vmax.f32 %v2944_v42, 0.0  ;;  %v8647_v14 = vpack.c.bf16 %v3071_v59, %v3140_v33  ;;  %v9478_v7 = vrot.slane %v8557_v52, 1  ;;  %v9482_v31 = vld [vmem:[#allocation45_spill] sm:$0xff]  ;;  %v9483_v52 = vld [vmem:[#allocation18_spill] sm:$0xff] }
 0x2d2   : > { %v8645_v63 = vpack.c.bf16 %v3298_v26, %v3222_v47  ;;  %v2988_v55 = vrot.slane %v2986_v25, 7  ;;  %v3241_v50 = vrot.slane %v2986_v25, 1  ;;  %v9479_v9 = vrot.slane %v8537_v53, 1 }
 0x2d3   : > { %9476 = vst [vmem:[#allocation28_spill] sm:$0xff] %v8647_v14  ;;  %v9480_v8 = vmov %v9478_v7  ;;  %v3078_v18 = vrot.slane %v2984_v45, 7  ;;  %v3237_v26 = vrot.slane %v2984_v45, 1  ;;  %v3073_v59 = vsel %vm979_vm0, %v3070_v38, %v3072_v12 }
 0x2d4   : > { %v3226_v13 = vsel %vm1139_vm2, %v9479_v9, %v9478_v7  ;;  %v3228_v47 = vsel %vm1139_vm2, %v9480_v8, %v3227_v36  ;;  %v9481_v2 = vrot.slane %v8363_v44, 7  ;;  %v3075_v53 = vsel %vm979_vm0, %v3072_v12, %v3074_v0 }
 0x2d5   : > { %v3300_v42 = vmul.f32 %v7796_v24, %v3228_v47  ;;  %v3142_v7 = vmul.f32 %v9482_v31, %v3073_v59  ;;  %v8667_v9 = vpack.c.bf16 %v2984_v45, %v2983_v19  ;;  %v3230_v24 = vsel %vm1139_vm2, %v3227_v36, %v3229_v23  ;;  %v6666_v45 = vld [vmem:[#allocation9 + $0x180] sm:$0xff]   ;;  %v9485_v59 = vld [vmem:[#allocation46_spill] sm:$0xff] }
 0x2d6   : > { %v3115_v33 = vsel %vm979_vm0, %v2988_v55, %v9481_v2  ;;  %v9484_v38 = vrot.slane %v8583_v39, 1  ;;  %v3077_v12 = vsel %vm979_vm0, %v3074_v0, %v3076_v16  ;;  %v3079_v31 = vsel %vm979_vm0, %v3076_v16, %v3078_v18 }
 0x2d7   : > { %v3116_v8 = vmul.f32 %v9483_v52, %v3115_v33  ;;  %v8670_v14 = vpack.c.bf16 %v3300_v42, %v3226_v13  ;;  %v8676_v30 = vpack.c.bf16 %v3075_v53, %v3142_v7  ;;  %v3144_v13 = vmul.f32 %v9485_v59, %v3077_v12  ;;  %v6684_v12 = vld [vmem:[#allocation9 + $0x1a8] sm:$0xff]   ;;  %v6689_v59 = vld [vmem:[#allocation9 + $0x1b8] sm:$0xff]  }
 0x2d8   : > { %v3232_v47 = vsel %vm1139_vm2, %v3229_v23, %v9484_v38  ;;  %v9486_v42 = vmov %v9484_v38  ;;  %v3236_v33 = vsel %vm1139_vm2, %v3233_v17, %v3235_v4  ;;  %v6669_v23 = vld [vmem:[#allocation9 + $0x1c8] sm:$0xff]   ;;  %v3081_v0 = vsel %vm979_vm0, %v3078_v18, %v3080_v43 }
 0x2d9   : > { %v3302_v2 = vmul.f32 %v7818_v3, %v3232_v47  ;;  %v3148_v19 = vpack.c.bf16 %v8385_v32, %v3116_v8  ;;  %v3234_v36 = vsel %vm1139_vm2, %v9486_v42, %v3233_v17  ;;  %v3304_v3 = vmul.f32 %v7890_v29, %v3236_v33  ;;  %v6673_v8 = vld [vmem:[#allocation9 + $0x1d0] sm:$0xff]   ;;  %v9491_v42 = vld [vmem:[#allocation17_spill] sm:$0xff] }
 0x2da   : > { %v3082_v16 = vsel %vm979_vm0, %v3080_v43, %v2988_v55  ;;  %v8692_v32 = vpack.c.bf16 %v3079_v31, %v3144_v13  ;;  %v3146_v7 = vmul.f32 %v8000_v57, %v3081_v0  ;;  %v3238_v39 = vsel %vm1139_vm2, %v3235_v4, %v3237_v26  ;;  %v6670_v43 = vld [vmem:[#allocation9 + $0x188] sm:$0xff]   ;;  %v6674_v47 = vld [vmem:[#allocation9 + $0x190] sm:$0xff]  }
 0x2db   : > { %v8687_v53 = vpack.c.bf16 %v3302_v2, %v3230_v24  ;;  %4231 = vmatmul.mubr.bf16.gmra.mrb[132].mxu1 %v3148_v19  ;;  %4383 = vmatprep.mubr.bf16.mxu0 %v3148_v19  ;;  %v8698_v17 = vpack.c.bf16 %v3304_v3, %v3234_v36  ;;  %v3240_v29 = vsel %vm1139_vm2, %v3237_v26, %v3239_v5  ;;  %v9487_v4 = vrot.slane %v8363_v44, 1  ;;  %v6677_v2 = vld [vmem:[#allocation9 + $0x1d8] sm:$0xff]   ;;  %v6681_v44 = vld [vmem:[#allocation9 + $0x1e0] sm:$0xff]   ;;  %v6686_v31 = vld [vmem:[#allocation9 + $0x1f0] sm:$0xff]  }
 0x2dc   : > { %4238 = vmatprep.mubr.bf16.mxu1 %v8371_v49  ;;  %4384 = vmatmul.mubr.bf16.vlgmr.msra.gmra.mrb[160].mxu0 %v9430_v1  ;;  %v3242_v18 = vsel %vm1139_vm2, %v3239_v5, %v3241_v50  ;;  %v8703_v55 = vpack.c.bf16 %v3082_v16, %v3146_v7  ;;  %v3306_v57 = vmul.f32 %v8059_v40, %v3240_v29  ;;  %v9488_v40 = vld [vmem:[#allocation36_spill] sm:$0xff]  ;;  %v6687_v19 = vld [vmem:[#allocation9 + $0x1b0] sm:$0xff]  }
 0x2dd   : > { %4391 = vmatprep.mubr.bf16.mxu0 %v8401_v46  ;;  %6227 = vmatpush3.bf16.msra.mxu0 %v6666_v45  ;;  %v3276_v52 = vsel %vm1139_vm2, %v3241_v50, %v9487_v4  ;;  %v8711_v26 = vpack.c.bf16 %v2986_v25, %v8632_v51  ;;  %v6682_v51 = vld [vmem:[#allocation9 + $0x1a0] sm:$0xff]   ;;  %v6683_v25 = vld [vmem:[#allocation9 + $0x1e8] sm:$0xff]   ;;  %v6688_v45 = vld [vmem:[#allocation9 + $0x1f8] sm:$0xff]  }
 0x2de   : > { %6228 = vmatprep.subr.bf16.mxu0 %v6669_v23  ;;  %v3308_v24 = vmul.f32 %v8140_v27, %v3276_v52  ;;  %v8713_v5 = vpack.c.bf16 %v3306_v57, %v3238_v39  ;;  %v6678_v27 = vld [vmem:[#allocation9 + $0x198] sm:$0xff]   ;;  %v9490_v13 = vld [vmem:[#allocation42_spill] sm:$0xff]  ;;  %v9494_v23 = vld [vmem:[#allocation21_spill] sm:$0xff] }
 0x2df   : > { %v9489_v50 = vld [vmem:[#allocation40_spill] sm:$0xff]  ;;  %v9493_v33 = vld [vmem:[#allocation19_spill] sm:$0xff]  ;;  %v9495_v3 = vld [vmem:[#allocation22_spill] sm:$0xff] }
 0x2e0   : > { %v8715_v38 = vpack.c.bf16 %v3308_v24, %v3242_v18  ;;  %v9492_v36 = vld [vmem:[#allocation20_spill] sm:$0xff]  ;;  %v9496_v0 = vld [vmem:[#allocation23_spill] sm:$0xff]  ;;  %v9498_v29 = vld [vmem:[#allocation26_spill] sm:$0xff] }
 0x2e1   : > { %6229 = vmatpush3.bf16.msra.mxu0 %v6670_v43  ;;  %v9497_v16 = vld [vmem:[#allocation24_spill] sm:$0xff]  ;;  %v9499_v52 = vld [vmem:[#allocation25_spill] sm:$0xff]  ;;  %v9501_v24 = vld [vmem:[#allocation27_spill] sm:$0xff] }
 0x2e2   : > { %6230 = vmatprep.subr.bf16.mxu0 %v6673_v8  ;;  %v9500_v8 = vld [vmem:[#allocation28_spill] sm:$0xff] }
 0x2e3   : > { %4239 = vmatmul.mubr.bf16.gmra.mrb[136].mxu1 %v8401_v46 }
 0x2e4   : > { %4246 = vmatprep.mubr.bf16.mxu1 %v8412_v35  ;;  %4392 = vmatmul.mubr.bf16.gmra.mrb[164].mxu0 %v9488_v40 }
 0x2e5   : > { %4399 = vmatprep.mubr.bf16.mxu0 %v8426_v60  ;;  %6231 = vmatpush3.bf16.msra.mxu0 %v6674_v47  ;;  %v6690_v47 = vld [vmem:[#allocation9 + $0x208] sm:$0xff]  }
 0x2e6   : > { %6232 = vmatprep.subr.bf16.mxu0 %v6677_v2  ;;  %v9502_v2 = vld [vmem:[#allocation37_spill] sm:$0xff] }
 0x2e9   : > { %6233 = vmatpush3.bf16.msra.mxu0 %v6678_v27  ;;  %v9503_v27 = vld [vmem:[#allocation29_spill] sm:$0xff] }
 0x2ea   : > { %6234 = vmatprep.subr.bf16.mxu0 %v6681_v44  ;;  %v6691_v44 = vld [vmem:[#allocation9 + $0x210] sm:$0xff]  }
 0x2eb   : > { %4247 = vmatmul.mubr.bf16.gmra.mrb[140].mxu1 %v8426_v60  ;;  %v5906_v7 = vpop.f32.mrb[128].mxu1 }
 0x2ec   : > { %4254 = vmatprep.mubr.bf16.mxu1 %v9489_v50  ;;  %4400 = vmatmul.mubr.bf16.gmra.mrb[168].mxu0 %v8430_v20  ;;  %v5907_v39 = vpop.f32.mrb[129].mxu1 }
 0x2ed   : > { %4407 = vmatprep.mubr.bf16.mxu0 %v8437_v11  ;;  %6235 = vmatpush3.bf16.msra.mxu0 %v6682_v51  ;;  %v8753_v18 = vadd.f32 %v5907_v39, %v5906_v7  ;;  %v5909_v43 = vpop.f32.mrb[130].mxu1  ;;  %v6692_v51 = vld [vmem:[#allocation9 + $0x218] sm:$0xff]  }
 0x2ee   : > { %6236 = vmatprep.subr.bf16.mxu0 %v6683_v25  ;;  %v5910_v57 = vpop.f32.mrb[131].mxu1  ;;  %v6694_v25 = vld [vmem:[#allocation9 + $0x228] sm:$0xff]  }
 0x2ef   : > { %v8755_v4 = vadd.f32 %v5910_v57, %v5909_v43 }
 0x2f1   : > { %6237 = vmatpush3.bf16.msra.mxu0 %v6684_v12 }
 0x2f2   : > { %6238 = vmatprep.subr.bf16.mxu0 %v6686_v31 }
 0x2f3   : > { %4255 = vmatmul.mubr.bf16.gmra.mrb[144].mxu1 %v8437_v11 }
 0x2f4   : > { %4262 = vmatprep.mubr.bf16.mxu1 %v8447_v62  ;;  %4408 = vmatmul.mubr.bf16.gmra.mrb[172].mxu0 %v8451_v61 }
 0x2f5   : > { %4415 = vmatprep.mubr.bf16.mxu0 %v8462_v34  ;;  %6239 = vmatpush3.bf16.msra.mxu0 %v6687_v19 }
 0x2f6   : > { %6240 = vmatprep.subr.bf16.mxu0 %v6688_v45 }
 0x2f9   : > { %6241 = vmatpush3.bf16.msra.mxu0 %v6689_v59 }
 0x2fb   : > { %4263 = vmatmul.mubr.bf16.gmra.mrb[148].mxu1 %v8462_v34 }
 0x2fc   : > { %4270 = vmatprep.mubr.bf16.mxu1 %v9490_v13  ;;  %4416 = vmatmul.mubr.bf16.gmra.mrb[176].mxu0 %v8472_v48 }
 0x2fd   : > { %4423 = vmatprep.mubr.bf16.mxu0 %v9491_v42 }
 0x303   : > { %4271 = vmatmul.mubr.bf16.gmra.mrb[152].mxu1 %v9491_v42 }
 0x304   : > { %4278 = vmatprep.mubr.bf16.mxu1 %v8480_v22  ;;  %4424 = vmatmul.mubr.bf16.gmra.mrb[180].mxu0 %v8491_v10 }
 0x305   : > { %4431 = vmatprep.mubr.bf16.mxu0 %v9492_v36 }
 0x30b   : > { %4279 = vmatmul.mubr.bf16.gmra.mrb[156].mxu1 %v9492_v36 }
 0x30c   : > { %4286 = vmatprep.mubr.bf16.mxu1 %v9493_v33  ;;  %4432 = vmatmul.mubr.bf16.gmra.mrb[184].mxu0 %v9494_v23 }
 0x30d   : > { %4439 = vmatprep.mubr.bf16.mxu0 %v8526_v28 }
 0x313   : > { %4287 = vmatmul.mubr.bf16.gmra.mrb[160].mxu1 %v8526_v28 }
 0x314   : > { %4294 = vmatprep.mubr.bf16.mxu1 %v9495_v3  ;;  %4440 = vmatmul.mubr.bf16.gmra.mrb[188].mxu0 %v8540_v58 }
 0x315   : > { %4447 = vmatprep.mubr.bf16.mxu0 %v8550_v6 }
 0x31b   : > { %4295 = vmatmul.mubr.bf16.gmra.mrb[164].mxu1 %v8550_v6 }
 0x31c   : > { %4302 = vmatprep.mubr.bf16.mxu1 %v9496_v0  ;;  %4448 = vmatmul.mubr.bf16.gmra.mrb[192].mxu0 %v9497_v16 }
 0x31d   : > { %4455 = vmatprep.mubr.bf16.mxu0 %v8579_v21 }
 0x323   : > { %4303 = vmatmul.mubr.bf16.gmra.mrb[168].mxu1 %v8579_v21 }
 0x324   : > { %4310 = vmatprep.mubr.bf16.mxu1 %v8570_v15  ;;  %4456 = vmatmul.mubr.bf16.gmra.mrb[196].mxu0 %v8594_v41 }
 0x325   : > { %4463 = vmatprep.mubr.bf16.mxu0 %v9498_v29 }
 0x32b   : > { %4311 = vmatmul.mubr.bf16.gmra.mrb[172].mxu1 %v9498_v29 }
 0x32c   : > { %4318 = vmatprep.mubr.bf16.mxu1 %v9499_v52  ;;  %4464 = vmatmul.mubr.bf16.gmra.mrb[200].mxu0 %v8619_v56 }
 0x32d   : > { %4471 = vmatprep.mubr.bf16.mxu0 %v8626_v54 }
 0x333   : > { %4319 = vmatmul.mubr.bf16.gmra.mrb[176].mxu1 %v8626_v54 }
 0x334   : > { %4326 = vmatprep.mubr.bf16.mxu1 %v8622_v37  ;;  %4472 = vmatmul.mubr.bf16.gmra.mrb[204].mxu0 %v8645_v63 }
 0x335   : > { %4479 = vmatprep.mubr.bf16.mxu0 %v9500_v8 }
 0x33b   : > { %4327 = vmatmul.mubr.bf16.gmra.mrb[180].mxu1 %v9500_v8 }
 0x33c   : > { %4334 = vmatprep.mubr.bf16.mxu1 %v9501_v24  ;;  %4480 = vmatmul.mubr.bf16.gmra.mrb[208].mxu0 %v8670_v14 }
 0x33d   : > { %4487 = vmatprep.mubr.bf16.mxu0 %v8676_v30 }
 0x343   : > { %4335 = vmatmul.mubr.bf16.gmra.mrb[184].mxu1 %v8676_v30 }
 0x344   : > { %4342 = vmatprep.mubr.bf16.mxu1 %v8667_v9  ;;  %4488 = vmatmul.mubr.bf16.gmra.mrb[212].mxu0 %v8687_v53 }
 0x345   : > { %4495 = vmatprep.mubr.bf16.mxu0 %v8692_v32 }
 0x34b   : > { %4343 = vmatmul.mubr.bf16.gmra.mrb[188].mxu1 %v8692_v32 }
 0x34c   : > { %4496 = vmatmul.mubr.bf16.gmra.mrb[216].mxu0 %v8698_v17  ;;  %4544 = vmatprep.mubr.bf16.mxu1 %v9488_v40  ;;  %v6693_v40 = vld [vmem:[#allocation9 + $0x220] sm:$0xff]  }
 0x34d   : > { %4503 = vmatprep.mubr.bf16.mxu0 %v8703_v55 }
 0x353   : > { %4545 = vmatmul.mubr.bf16.vlgmr.msra.gmra.mrb[192].mxu1 %v9502_v2 }
 0x354   : > { %4504 = vmatmul.mubr.bf16.gmra.mrb[220].mxu0 %v8713_v5  ;;  %4552 = vmatprep.mubr.bf16.mxu1 %v8430_v20 }
 0x355   : > { %6411 = vmatpush3.bf16.msra.mxu1 %v9503_v27  ;;  %4705 = vmatprep.mubr.bf16.mxu0 %v8371_v49 }
 0x356   : > { %6412 = vmatprep.subr.bf16.mxu1 %v6690_v47 }
 0x359   : > { %6413 = vmatpush3.bf16.msra.mxu1 %v6690_v47 }
 0x35a   : > { %6414 = vmatprep.subr.bf16.mxu1 %v6691_v44 }
 0x35b   : > { %4553 = vmatmul.mubr.bf16.gmra.mrb[196].mxu1 %v8371_v49  ;;  %v6695_v49 = vld [vmem:[#allocation9 + $0x230] sm:$0xff]  }
 0x35c   : > { %4560 = vmatprep.mubr.bf16.mxu1 %v8451_v61  ;;  %4706 = vmatmul.mubr.bf16.vlgmr.msra.gmra.mrb[224].mxu0 %v8401_v46  ;;  %v6696_v46 = vld [vmem:[#allocation9 + $0x238] sm:$0xff]  }
 0x35d   : > { %4713 = vmatprep.mubr.bf16.mxu0 %v8412_v35  ;;  %6415 = vmatpush3.bf16.msra.mxu1 %v6691_v44 }
 0x35e   : > { %6416 = vmatprep.subr.bf16.mxu1 %v6692_v51 }
 0x361   : > { %6417 = vmatpush3.bf16.msra.mxu1 %v6692_v51 }
 0x362   : > { %6418 = vmatprep.subr.bf16.mxu1 %v6693_v40 }
 0x363   : > { %4561 = vmatmul.mubr.bf16.gmra.mrb[200].mxu1 %v8412_v35  ;;  %v8826_v35 = vld [vmem:[#allocation11] ss:$0 sm:$0xff] }
 0x364   : > { %4568 = vmatprep.mubr.bf16.mxu1 %v8472_v48  ;;  %4714 = vmatmul.mubr.bf16.gmra.mrb[228].mxu0 %v8426_v60 }
 0x365   : > { %4721 = vmatprep.mubr.bf16.mxu0 %v9489_v50  ;;  %6419 = vmatpush3.bf16.msra.mxu1 %v6693_v40 }
 0x366   : > { %6420 = vmatprep.subr.bf16.mxu1 %v6694_v25 }
 0x369   : > { %6421 = vmatpush3.bf16.msra.mxu1 %v6694_v25 }
 0x36a   : > { %6422 = vmatprep.subr.bf16.mxu1 %v6695_v49 }
 0x36b   : > { %4569 = vmatmul.mubr.bf16.gmra.mrb[204].mxu1 %v9489_v50 }
 0x36c   : > { %4576 = vmatprep.mubr.bf16.mxu1 %v8491_v10  ;;  %4722 = vmatmul.mubr.bf16.gmra.mrb[232].mxu0 %v8437_v11 }
 0x36d   : > { %4729 = vmatprep.mubr.bf16.mxu0 %v8447_v62  ;;  %6423 = vmatpush3.bf16.msra.mxu1 %v6695_v49 }
 0x36e   : > { %6424 = vmatprep.subr.bf16.mxu1 %v6696_v46 }
 0x371   : > { %6425 = vmatpush3.bf16.msra.mxu1 %v6696_v46 }
 0x373   : > { %4577 = vmatmul.mubr.bf16.gmra.mrb[208].mxu1 %v8447_v62 }
 0x374   : > { %4584 = vmatprep.mubr.bf16.mxu1 %v9494_v23  ;;  %4730 = vmatmul.mubr.bf16.gmra.mrb[236].mxu0 %v8462_v34 }
 0x375   : > { %4737 = vmatprep.mubr.bf16.mxu0 %v9490_v13 }
 0x37b   : > { %4585 = vmatmul.mubr.bf16.gmra.mrb[212].mxu1 %v9490_v13 }
 0x37c   : > { %4592 = vmatprep.mubr.bf16.mxu1 %v8540_v58  ;;  %4738 = vmatmul.mubr.bf16.gmra.mrb[240].mxu0 %v9491_v42 }
 0x37d   : > { %4745 = vmatprep.mubr.bf16.mxu0 %v8480_v22 }
 0x383   : > { %4593 = vmatmul.mubr.bf16.gmra.mrb[216].mxu1 %v8480_v22 }
 0x384   : > { %4600 = vmatprep.mubr.bf16.mxu1 %v9497_v16  ;;  %4746 = vmatmul.mubr.bf16.gmra.mrb[244].mxu0 %v9492_v36 }
 0x385   : > { %4753 = vmatprep.mubr.bf16.mxu0 %v9493_v33 }
 0x38b   : > { %4601 = vmatmul.mubr.bf16.gmra.mrb[220].mxu1 %v9493_v33 }
 0x38c   : > { %4608 = vmatprep.mubr.bf16.mxu1 %v8594_v41  ;;  %4754 = vmatmul.mubr.bf16.gmra.mrb[248].mxu0 %v8526_v28 }
 0x38d   : > { %4761 = vmatprep.mubr.bf16.mxu0 %v9495_v3 }
 0x393   : > { %4609 = vmatmul.mubr.bf16.gmra.mrb[224].mxu1 %v9495_v3 }
 0x394   : > { %4616 = vmatprep.mubr.bf16.mxu1 %v8619_v56  ;;  %4762 = vmatmul.mubr.bf16.gmra.mrb[252].mxu0 %v8550_v6  ;;  %v4225_v6 = vadd.f32 %v8753_v18, %v8826_v35 }
 0x395   : > { %4769 = vmatprep.mubr.bf16.mxu0 %v9496_v0 }
 0x39b   : > { %4617 = vmatmul.mubr.bf16.gmra.mrb[228].mxu1 %v9496_v0 }
 0x39c   : > { %4624 = vmatprep.mubr.bf16.mxu1 %v8645_v63  ;;  %4770 = vmatmul.mubr.bf16.gmra.mrb[0].mxu0 %v8579_v21 }
 0x39d   : > { %4777 = vmatprep.mubr.bf16.mxu0 %v8570_v15 }
 0x3a3   : > { %4625 = vmatmul.mubr.bf16.gmra.mrb[232].mxu1 %v8570_v15 }
 0x3a4   : > { %4632 = vmatprep.mubr.bf16.mxu1 %v8670_v14  ;;  %4778 = vmatmul.mubr.bf16.gmra.mrb[4].mxu0 %v9498_v29 }
 0x3a5   : > { %4785 = vmatprep.mubr.bf16.mxu0 %v9499_v52 }
 0x3ab   : > { %4633 = vmatmul.mubr.bf16.gmra.mrb[236].mxu1 %v9499_v52 }
 0x3ac   : > { %4640 = vmatprep.mubr.bf16.mxu1 %v8687_v53  ;;  %4786 = vmatmul.mubr.bf16.gmra.mrb[8].mxu0 %v8626_v54  ;;  %v4228_v54 = vadd.f32 %v8755_v4, %v8826_v35 }
 0x3ad   : > { %4793 = vmatprep.mubr.bf16.mxu0 %v8622_v37 }
 0x3ae   : > { %v5912_v60 = vpop.f32.mrb[132].mxu1 }
 0x3af   : > { %v5913_v11 = vpop.f32.mrb[133].mxu1  ;;  %v6018_v62 = vpop.f32.mrb[160].mxu0 }
 0x3b0   : > { %v5914_v34 = vadd.f32 %v5913_v11, %v5912_v60  ;;  %v5915_v22 = vpop.f32.mrb[134].mxu1  ;;  %v6019_v28 = vpop.f32.mrb[161].mxu0 }
 0x3b1   : > { %v6020_v15 = vadd.f32 %v6019_v28, %v6018_v62  ;;  %v5916_v21 = vpop.f32.mrb[135].mxu1  ;;  %v6021_v50 = vpop.f32.mrb[162].mxu0 }
 0x3b2   : > { %v5917_v12 = vadd.f32 %v5916_v21, %v5915_v22  ;;  %v6022_v31 = vpop.f32.mrb[163].mxu0  ;;  %v4233_v7 = vadd.f32 %v5914_v34, %v8826_v35 }
 0x3b3   : > { %v8832_v19 = vadd.f32 %v6020_v15, %v4225_v6  ;;  %v6023_v45 = vadd.f32 %v6022_v31, %v6021_v50  ;;  %4641 = vmatmul.mubr.bf16.gmra.mrb[240].mxu1 %v8622_v37 }
 0x3b4   : > { %4648 = vmatprep.mubr.bf16.mxu1 %v8698_v17  ;;  %4794 = vmatmul.mubr.bf16.gmra.mrb[12].mxu0 %v9500_v8  ;;  %v4236_v57 = vadd.f32 %v5917_v12, %v8826_v35 }
 0x3b5   : > { %v8837_v59 = vadd.f32 %v6023_v45, %v4228_v54  ;;  %4801 = vmatprep.mubr.bf16.mxu0 %v9501_v24 }
 0x3b6   : > { %v5918_v13 = vpop.f32.mrb[136].mxu1 }
 0x3b7   : > { %v5919_v42 = vpop.f32.mrb[137].mxu1  ;;  %v6024_v36 = vpop.f32.mrb[164].mxu0 }
 0x3b8   : > { %v5920_v33 = vadd.f32 %v5919_v42, %v5918_v13  ;;  %v5921_v3 = vpop.f32.mrb[138].mxu1  ;;  %v6025_v0 = vpop.f32.mrb[165].mxu0 }
 0x3b9   : > { %v6026_v39 = vadd.f32 %v6025_v0, %v6024_v36  ;;  %v5922_v29 = vpop.f32.mrb[139].mxu1  ;;  %v6027_v18 = vpop.f32.mrb[166].mxu0 }
 0x3ba   : > { %v5923_v37 = vadd.f32 %v5922_v29, %v5921_v3  ;;  %v6028_v43 = vpop.f32.mrb[167].mxu0  ;;  %v4241_v25 = vadd.f32 %v5920_v33, %v8826_v35 }
 0x3bb   : > { %v8842_v4 = vadd.f32 %v6026_v39, %v4233_v7  ;;  %v6029_v52 = vadd.f32 %v6028_v43, %v6027_v18  ;;  %4649 = vmatmul.mubr.bf16.gmra.mrb[244].mxu1 %v9501_v24 }
 0x3bc   : > { %4656 = vmatprep.mubr.bf16.mxu1 %v8713_v5  ;;  %4802 = vmatmul.mubr.bf16.gmra.mrb[16].mxu0 %v8676_v30  ;;  %v4244_v62 = vadd.f32 %v5923_v37, %v8826_v35 }
 0x3bd   : > { %v8847_v8 = vadd.f32 %v6029_v52, %v4236_v57  ;;  %4809 = vmatprep.mubr.bf16.mxu0 %v8667_v9 }
 0x3be   : > { %v5924_v47 = vpop.f32.mrb[140].mxu1 }
 0x3bf   : > { %v5925_v2 = vpop.f32.mrb[141].mxu1  ;;  %v6030_v27 = vpop.f32.mrb[168].mxu0 }
 0x3c0   : > { %v5926_v44 = vadd.f32 %v5925_v2, %v5924_v47  ;;  %v5927_v51 = vpop.f32.mrb[142].mxu1  ;;  %v6031_v40 = vpop.f32.mrb[169].mxu0 }
 0x3c1   : > { %v6032_v49 = vadd.f32 %v6031_v40, %v6030_v27  ;;  %v5928_v46 = vpop.f32.mrb[143].mxu1  ;;  %v6033_v60 = vpop.f32.mrb[170].mxu0 }
 0x3c2   : > { %v5929_v24 = vadd.f32 %v5928_v46, %v5927_v51  ;;  %v6034_v11 = vpop.f32.mrb[171].mxu0  ;;  %v4249_v31 = vadd.f32 %v5926_v44, %v8826_v35 }
 0x3c3   : > { %v8852_v30 = vadd.f32 %v6032_v49, %v4241_v25  ;;  %v6035_v34 = vadd.f32 %v6034_v11, %v6033_v60  ;;  %4657 = vmatmul.mubr.bf16.gmra.mrb[248].mxu1 %v8667_v9 }
 0x3c4   : > { %4664 = vmatprep.mubr.bf16.mxu1 %v8715_v38  ;;  %4810 = vmatmul.mubr.bf16.gmra.mrb[20].mxu0 %v8692_v32  ;;  %v4252_v36 = vadd.f32 %v5929_v24, %v8826_v35 }
 0x3c5   : > { %v8857_v22 = vadd.f32 %v6035_v34, %v4244_v62  ;;  %4817 = vmatprep.mubr.bf16.mxu0 %v8711_v26 }
 0x3c6   : > { %v5930_v28 = vpop.f32.mrb[144].mxu1 }
 0x3c7   : > { %v5931_v6 = vpop.f32.mrb[145].mxu1  ;;  %v6036_v15 = vpop.f32.mrb[172].mxu0 }
 0x3c8   : > { %v5932_v21 = vadd.f32 %v5931_v6, %v5930_v28  ;;  %v5933_v50 = vpop.f32.mrb[146].mxu1  ;;  %v6037_v12 = vpop.f32.mrb[173].mxu0 }
 0x3c9   : > { %v6038_v54 = vadd.f32 %v6037_v12, %v6036_v15  ;;  %v5934_v45 = vpop.f32.mrb[147].mxu1  ;;  %v6039_v13 = vpop.f32.mrb[174].mxu0 }
 0x3ca   : > { %v5935_v9 = vadd.f32 %v5934_v45, %v5933_v50  ;;  %v6040_v42 = vpop.f32.mrb[175].mxu0  ;;  %v4257_v43 = vadd.f32 %v5932_v21, %v8826_v35 }
 0x3cb   : > { %v8862_v32 = vadd.f32 %v6038_v54, %v4249_v31  ;;  %v6041_v33 = vadd.f32 %v6040_v42, %v6039_v13  ;;  %4665 = vmatmul.mubr.bf16.gmra.mrb[252].mxu1 %v8711_v26 }
 0x3cc   : > { %4818 = vmatmul.mubr.bf16.gmra.mrb[24].mxu0 %v8703_v55  ;;  %6426 = vmatprep.mubr.bf16.mxu1 %v8430_v20  ;;  %v4260_v55 = vadd.f32 %v5935_v9, %v8826_v35 }
 0x3cd   : > { %v8867_v3 = vadd.f32 %v6041_v33, %v4252_v36  ;;  %4825 = vmatprep.mubr.bf16.mxu0 %v9430_v1 }
 0x3ce   : > { %v5936_v0 = vpop.f32.mrb[148].mxu1 }
 0x3cf   : > { %v5937_v7 = vpop.f32.mrb[149].mxu1  ;;  %v6042_v39 = vpop.f32.mrb[176].mxu0 }
 0x3d0   : > { %v5938_v29 = vadd.f32 %v5937_v7, %v5936_v0  ;;  %v5939_v18 = vpop.f32.mrb[150].mxu1  ;;  %v6043_v37 = vpop.f32.mrb[177].mxu0 }
 0x3d1   : > { %v6044_v57 = vadd.f32 %v6043_v37, %v6042_v39  ;;  %v5940_v52 = vpop.f32.mrb[151].mxu1  ;;  %v6045_v47 = vpop.f32.mrb[178].mxu0 }
 0x3d2   : > { %v5941_v26 = vadd.f32 %v5940_v52, %v5939_v18  ;;  %v6046_v2 = vpop.f32.mrb[179].mxu0  ;;  %v4265_v24 = vadd.f32 %v5938_v29, %v8826_v35 }
 0x3d3   : > { %v8872_v20 = vadd.f32 %v6044_v57, %v4257_v43  ;;  %v6047_v27 = vadd.f32 %v6046_v2, %v6045_v47  ;;  %6427 = vmatmul.mubr.bf16.vlgmr.msra.gmra.mrb[0].mxu1 %v8451_v61 }
 0x3d4   : > { %4826 = vmatmul.mubr.bf16.gmra.mrb[28].mxu0 %v9430_v1  ;;  %6430 = vmatprep.mubr.bf16.mxu1 %v8472_v48  ;;  %v4268_v61 = vadd.f32 %v5941_v26, %v8826_v35 }
 0x3d5   : > { %v8877_v44 = vadd.f32 %v6047_v27, %v4260_v55 }
 0x3d6   : > { %v5942_v51 = vpop.f32.mrb[152].mxu1 }
 0x3d7   : > { %v5943_v40 = vpop.f32.mrb[153].mxu1  ;;  %v6048_v25 = vpop.f32.mrb[180].mxu0 }
 0x3d8   : > { %v5944_v49 = vadd.f32 %v5943_v40, %v5942_v51  ;;  %v5945_v46 = vpop.f32.mrb[154].mxu1  ;;  %v6049_v60 = vpop.f32.mrb[181].mxu0 }
 0x3d9   : > { %v6050_v11 = vadd.f32 %v6049_v60, %v6048_v25  ;;  %v5946_v62 = vpop.f32.mrb[155].mxu1  ;;  %v6051_v34 = vpop.f32.mrb[182].mxu0 }
 0x3da   : > { %v5947_v28 = vadd.f32 %v5946_v62, %v5945_v46  ;;  %v6052_v6 = vpop.f32.mrb[183].mxu0  ;;  %v4273_v9 = vadd.f32 %v5944_v49, %v8826_v35 }
 0x3db   : > { %v8881_v15 = vadd.f32 %v6050_v11, %v4265_v24  ;;  %v6053_v48 = vadd.f32 %v6052_v6, %v6051_v34  ;;  %6431 = vmatmul.mubr.bf16.gmra.mrb[4].mxu1 %v8491_v10 }
 0x3dc   : > { %6434 = vmatprep.mubr.bf16.mxu1 %v9494_v23  ;;  %v4276_v39 = vadd.f32 %v5947_v28, %v8826_v35 }
 0x3dd   : > { %v8885_v21 = vadd.f32 %v6053_v48, %v4268_v61 }
 0x3de   : > { %v5948_v50 = vpop.f32.mrb[156].mxu1 }
 0x3df   : > { %v5949_v12 = vpop.f32.mrb[157].mxu1  ;;  %v6054_v31 = vpop.f32.mrb[184].mxu0 }
 0x3e0   : > { %v5950_v54 = vadd.f32 %v5949_v12, %v5948_v50  ;;  %v5951_v45 = vpop.f32.mrb[158].mxu1  ;;  %v6055_v13 = vpop.f32.mrb[185].mxu0 }
 0x3e1   : > { %v6056_v42 = vadd.f32 %v6055_v13, %v6054_v31  ;;  %v5952_v36 = vpop.f32.mrb[159].mxu1  ;;  %v6057_v33 = vpop.f32.mrb[186].mxu0 }
 0x3e2   : > { %v5953_v0 = vadd.f32 %v5952_v36, %v5951_v45  ;;  %v6058_v7 = vpop.f32.mrb[187].mxu0  ;;  %v4281_v26 = vadd.f32 %v5950_v54, %v8826_v35 }
 0x3e3   : > { %v8889_v10 = vadd.f32 %v6056_v42, %v4273_v9  ;;  %v6059_v23 = vadd.f32 %v6058_v7, %v6057_v33  ;;  %6435 = vmatmul.mubr.bf16.gmra.mrb[8].mxu1 %v8540_v58 }
 0x3e4   : > { %6438 = vmatprep.mubr.bf16.mxu1 %v9497_v16  ;;  %v4284_v25 = vadd.f32 %v5953_v0, %v8826_v35 }
 0x3e5   : > { %v8893_v29 = vadd.f32 %v6059_v23, %v4276_v39 }
 0x3e6   : > { %v5954_v18 = vpop.f32.mrb[160].mxu1 }
 0x3e7   : > { %v5955_v37 = vpop.f32.mrb[161].mxu1  ;;  %v6060_v43 = vpop.f32.mrb[188].mxu0 }
 0x3e8   : > { %v5956_v57 = vadd.f32 %v5955_v37, %v5954_v18  ;;  %v5957_v52 = vpop.f32.mrb[162].mxu1  ;;  %v6061_v47 = vpop.f32.mrb[189].mxu0 }
 0x3e9   : > { %v6062_v2 = vadd.f32 %v6061_v47, %v6060_v43  ;;  %v5958_v55 = vpop.f32.mrb[163].mxu1  ;;  %v6063_v27 = vpop.f32.mrb[190].mxu0 }
 0x3ea   : > { %v5959_v51 = vadd.f32 %v5958_v55, %v5957_v52  ;;  %v6064_v40 = vpop.f32.mrb[191].mxu0  ;;  %v4289_v28 = vadd.f32 %v5956_v57, %v8826_v35 }
 0x3eb   : > { %v8897_v58 = vadd.f32 %v6062_v2, %v4281_v26  ;;  %v6065_v16 = vadd.f32 %v6064_v40, %v6063_v27  ;;  %6439 = vmatmul.mubr.bf16.gmra.mrb[12].mxu1 %v8594_v41 }
 0x3ec   : > { %6442 = vmatprep.mubr.bf16.mxu1 %v8619_v56  ;;  %v4292_v31 = vadd.f32 %v5959_v51, %v8826_v35 }
 0x3ed   : > { %v8901_v49 = vadd.f32 %v6065_v16, %v4284_v25 }
 0x3ee   : > { %v5960_v46 = vpop.f32.mrb[164].mxu1 }
 0x3ef   : > { %v5961_v60 = vpop.f32.mrb[165].mxu1  ;;  %v6066_v24 = vpop.f32.mrb[192].mxu0 }
 0x3f0   : > { %v5962_v11 = vadd.f32 %v5961_v60, %v5960_v46  ;;  %v5963_v62 = vpop.f32.mrb[166].mxu1  ;;  %v6067_v34 = vpop.f32.mrb[193].mxu0 }
 0x3f1   : > { %v6068_v6 = vadd.f32 %v6067_v34, %v6066_v24  ;;  %v5964_v61 = vpop.f32.mrb[167].mxu1  ;;  %v6069_v48 = vpop.f32.mrb[194].mxu0 }
 0x3f2   : > { %v5965_v50 = vadd.f32 %v5964_v61, %v5963_v62  ;;  %v6070_v12 = vpop.f32.mrb[195].mxu0  ;;  %v4297_v0 = vadd.f32 %v5962_v11, %v8826_v35 }
 0x3f3   : > { %v8905_v41 = vadd.f32 %v6068_v6, %v4289_v28  ;;  %v6071_v56 = vadd.f32 %v6070_v12, %v6069_v48  ;;  %6443 = vmatmul.mubr.bf16.gmra.mrb[16].mxu1 %v8645_v63 }
 0x3f4   : > { %6446 = vmatprep.mubr.bf16.mxu1 %v8670_v14  ;;  %v4300_v43 = vadd.f32 %v5965_v50, %v8826_v35 }
 0x3f5   : > { %v8909_v54 = vadd.f32 %v6071_v56, %v4292_v31 }
 0x3f6   : > { %v5966_v45 = vpop.f32.mrb[168].mxu1 }
 0x3f7   : > { %v5967_v13 = vpop.f32.mrb[169].mxu1  ;;  %v6072_v9 = vpop.f32.mrb[196].mxu0 }
 0x3f8   : > { %v5968_v42 = vadd.f32 %v5967_v13, %v5966_v45  ;;  %v5969_v36 = vpop.f32.mrb[170].mxu1  ;;  %v6073_v33 = vpop.f32.mrb[197].mxu0 }
 0x3f9   : > { %v6074_v7 = vadd.f32 %v6073_v33, %v6072_v9  ;;  %v5970_v39 = vpop.f32.mrb[171].mxu1  ;;  %v6075_v23 = vpop.f32.mrb[198].mxu0 }
 0x3fa   : > { %v5971_v18 = vadd.f32 %v5970_v39, %v5969_v36  ;;  %v6076_v37 = vpop.f32.mrb[199].mxu0  ;;  %v4305_v51 = vadd.f32 %v5968_v42, %v8826_v35 }
 0x3fb   : > { %v8913_v63 = vadd.f32 %v6074_v7, %v4297_v0  ;;  %v6077_v14 = vadd.f32 %v6076_v37, %v6075_v23  ;;  %6447 = vmatmul.mubr.bf16.gmra.mrb[20].mxu1 %v8687_v53 }
 0x3fc   : > { %6450 = vmatprep.mubr.bf16.mxu1 %v8698_v17  ;;  %v4308_v24 = vadd.f32 %v5971_v18, %v8826_v35 }
 0x3fd   : > { %v8917_v57 = vadd.f32 %v6077_v14, %v4300_v43 }
 0x3fe   : > { %v5972_v52 = vpop.f32.mrb[172].mxu1 }
 0x3ff   : > { %v5973_v47 = vpop.f32.mrb[173].mxu1  ;;  %v6078_v26 = vpop.f32.mrb[200].mxu0 }
 0x400   : > { %v5974_v2 = vadd.f32 %v5973_v47, %v5972_v52  ;;  %v5975_v55 = vpop.f32.mrb[174].mxu1  ;;  %v6079_v27 = vpop.f32.mrb[201].mxu0 }
 0x401   : > { %v6080_v40 = vadd.f32 %v6079_v27, %v6078_v26  ;;  %v5976_v25 = vpop.f32.mrb[175].mxu1  ;;  %v6081_v16 = vpop.f32.mrb[202].mxu0 }
 0x402   : > { %v5977_v46 = vadd.f32 %v5976_v25, %v5975_v55  ;;  %v6082_v60 = vpop.f32.mrb[203].mxu0  ;;  %v4313_v50 = vadd.f32 %v5974_v2, %v8826_v35 }
 0x403   : > { %v8921_v53 = vadd.f32 %v6080_v40, %v4305_v51  ;;  %v6083_v17 = vadd.f32 %v6082_v60, %v6081_v16  ;;  %6451 = vmatmul.mubr.bf16.gmra.mrb[24].mxu1 %v8713_v5 }
 0x404   : > { %6454 = vmatprep.mubr.bf16.mxu1 %v8715_v38  ;;  %v4316_v9 = vadd.f32 %v5977_v46, %v8826_v35 }
 0x405   : > { %v8925_v11 = vadd.f32 %v6083_v17, %v4308_v24 }
 0x406   : > { %v5978_v62 = vpop.f32.mrb[176].mxu1 }
 0x407   : > { %v5979_v34 = vpop.f32.mrb[177].mxu1  ;;  %v6084_v28 = vpop.f32.mrb[204].mxu0 }
 0x408   : > { %v5980_v6 = vadd.f32 %v5979_v34, %v5978_v62  ;;  %v5981_v61 = vpop.f32.mrb[178].mxu1  ;;  %v6085_v48 = vpop.f32.mrb[205].mxu0 }
 0x409   : > { %v6086_v12 = vadd.f32 %v6085_v48, %v6084_v28  ;;  %v5982_v31 = vpop.f32.mrb[179].mxu1  ;;  %v6087_v56 = vpop.f32.mrb[206].mxu0 }
 0x40a   : > { %v5983_v45 = vadd.f32 %v5982_v31, %v5981_v61  ;;  %v6088_v13 = vpop.f32.mrb[207].mxu0  ;;  %v4321_v18 = vadd.f32 %v5980_v6, %v8826_v35 }
 0x40b   : > { %v8929_v5 = vadd.f32 %v6086_v12, %v4313_v50  ;;  %v6089_v38 = vadd.f32 %v6088_v13, %v6087_v56  ;;  %6455 = vmatmul.mubr.bf16.gmra.mrb[28].mxu1 %v9430_v1 }
 0x40c   : > { %v4324_v26 = vadd.f32 %v5983_v45, %v8826_v35 }
 0x40d   : > { %v8932_v42 = vadd.f32 %v6089_v38, %v4316_v9 }
 0x40e   : > { %v5984_v36 = vpop.f32.mrb[180].mxu1 }
 0x40f   : > { %v5985_v33 = vpop.f32.mrb[181].mxu1  ;;  %v6090_v0 = vpop.f32.mrb[208].mxu0 }
 0x410   : > { %v5986_v7 = vadd.f32 %v5985_v33, %v5984_v36  ;;  %v5987_v39 = vpop.f32.mrb[182].mxu1  ;;  %v6091_v23 = vpop.f32.mrb[209].mxu0 }
 0x411   : > { %v6092_v37 = vadd.f32 %v6091_v23, %v6090_v0  ;;  %v5988_v43 = vpop.f32.mrb[183].mxu1  ;;  %v6093_v14 = vpop.f32.mrb[210].mxu0 }
 0x412   : > { %v5989_v52 = vadd.f32 %v5988_v43, %v5987_v39  ;;  %v6094_v47 = vpop.f32.mrb[211].mxu0  ;;  %v4329_v60 = vadd.f32 %v5986_v7, %v8826_v35 }
 0x413   : > { %v8936_v2 = vadd.f32 %v6092_v37, %v4321_v18  ;;  %v6095_v1 = vadd.f32 %v6094_v47, %v6093_v14 }
 0x414   : > { %v4332_v6 = vadd.f32 %v5989_v52, %v8826_v35 }
 0x415   : > { %v8938_v55 = vadd.f32 %v6095_v1, %v4324_v26 }
 0x416   : > { %v5990_v27 = vpop.f32.mrb[184].mxu1 }
 0x417   : > { %v5991_v51 = vpop.f32.mrb[185].mxu1  ;;  %v6096_v40 = vpop.f32.mrb[212].mxu0 }
 0x418   : > { %v5992_v25 = vadd.f32 %v5991_v51, %v5990_v27  ;;  %v5993_v16 = vpop.f32.mrb[186].mxu1  ;;  %v6097_v46 = vpop.f32.mrb[213].mxu0 }
 0x419   : > { %v6098_v24 = vadd.f32 %v6097_v46, %v6096_v40  ;;  %v5994_v17 = vpop.f32.mrb[187].mxu1  ;;  %v6099_v62 = vpop.f32.mrb[214].mxu0 }
 0x41a   : > { %v5995_v34 = vadd.f32 %v5994_v17, %v5993_v16  ;;  %v6100_v28 = vpop.f32.mrb[215].mxu0  ;;  %v4337_v38 = vadd.f32 %v5992_v25, %v8826_v35 }
 0x41b   : > { %v8942_v61 = vadd.f32 %v6098_v24, %v4329_v60  ;;  %v6101_v48 = vadd.f32 %v6100_v28, %v6099_v62 }
 0x41c   : > { %v4340_v23 = vadd.f32 %v5995_v34, %v8826_v35 }
 0x41d   : > { %v8944_v50 = vadd.f32 %v6101_v48, %v4332_v6 }
 0x41e   : > { %v5996_v12 = vpop.f32.mrb[188].mxu1 }
 0x41f   : > { %v5997_v31 = vpop.f32.mrb[189].mxu1  ;;  %v6102_v56 = vpop.f32.mrb[216].mxu0 }
 0x420   : > { %v5998_v45 = vadd.f32 %v5997_v31, %v5996_v12  ;;  %v5999_v13 = vpop.f32.mrb[190].mxu1  ;;  %v6103_v9 = vpop.f32.mrb[217].mxu0 }
 0x421   : > { %v6104_v36 = vadd.f32 %v6103_v9, %v6102_v56  ;;  %v6000_v33 = vpop.f32.mrb[191].mxu1  ;;  %v6105_v0 = vpop.f32.mrb[218].mxu0 }
 0x422   : > { %v6001_v7 = vadd.f32 %v6000_v33, %v5999_v13  ;;  %v6106_v39 = vpop.f32.mrb[219].mxu0  ;;  %v4345_v51 = vadd.f32 %v5998_v45, %v8826_v35 }
 0x423   : > { %v8948_v18 = vadd.f32 %v6104_v36, %v4337_v38  ;;  %v6107_v37 = vadd.f32 %v6106_v39, %v6105_v0 }
 0x424   : > { %v4348_v17 = vadd.f32 %v6001_v7, %v8826_v35 }
 0x425   : > { %v8950_v43 = vadd.f32 %v6107_v37, %v4340_v23 }
 0x426   : > { %v6130_v14 = vpop.f32.mrb[192].mxu1 }
 0x427   : > { %v6108_v52 = vpop.f32.mrb[220].mxu0  ;;  %v6131_v47 = vpop.f32.mrb[193].mxu1 }
 0x428   : > { %v6132_v26 = vadd.f32 %v6131_v47, %v6130_v14  ;;  %v6109_v1 = vpop.f32.mrb[221].mxu0  ;;  %v6133_v27 = vpop.f32.mrb[194].mxu1 }
 0x429   : > { %v6110_v40 = vadd.f32 %v6109_v1, %v6108_v52  ;;  %v6111_v25 = vpop.f32.mrb[222].mxu0  ;;  %v6134_v16 = vpop.f32.mrb[195].mxu1 }
 0x42a   : > { %v4547_v46 = vadd.f32 %v6132_v26, %v8832_v19  ;;  %v6135_v60 = vadd.f32 %v6134_v16, %v6133_v27  ;;  %v6112_v24 = vpop.f32.mrb[223].mxu0 }
 0x42b   : > { %v8955_v62 = vadd.f32 %v6110_v40, %v4345_v51  ;;  %v6113_v34 = vadd.f32 %v6112_v24, %v6111_v25 }
 0x42c   : > { %v4550_v28 = vadd.f32 %v6135_v60, %v8837_v59 }
 0x42d   : > { %v8958_v6 = vadd.f32 %v6113_v34, %v4348_v17 }
 0x42e   : > { %v6136_v48 = vpop.f32.mrb[196].mxu1 }
 0x42f   : > { %v6137_v12 = vpop.f32.mrb[197].mxu1  ;;  %v6242_v31 = vpop.f32.mrb[224].mxu0 }
 0x430   : > { %v6138_v56 = vadd.f32 %v6137_v12, %v6136_v48  ;;  %v6139_v45 = vpop.f32.mrb[198].mxu1  ;;  %v6243_v13 = vpop.f32.mrb[225].mxu0 }
 0x431   : > { %v6244_v9 = vadd.f32 %v6243_v13, %v6242_v31  ;;  %v6140_v38 = vpop.f32.mrb[199].mxu1  ;;  %v6245_v19 = vpop.f32.mrb[226].mxu0 }
 0x432   : > { %v4555_v36 = vadd.f32 %v6138_v56, %v8842_v4  ;;  %v6141_v33 = vadd.f32 %v6140_v38, %v6139_v45  ;;  %v6246_v35 = vpop.f32.mrb[227].mxu0 }
 0x433   : > { %v6247_v0 = vadd.f32 %v6246_v35, %v6245_v19  ;;  %v8961_v7 = vadd.f32 %v6244_v9, %v4547_v46 }
 0x434   : > { %v4558_v59 = vadd.f32 %v6141_v33, %v8847_v8 }
 0x435   : > { %v8964_v39 = vadd.f32 %v6247_v0, %v4550_v28 }
 0x436   : > { %v6142_v23 = vpop.f32.mrb[200].mxu1 }
 0x437   : > { %v6143_v37 = vpop.f32.mrb[201].mxu1  ;;  %v6248_v14 = vpop.f32.mrb[228].mxu0 }
 0x438   : > { %v6144_v52 = vadd.f32 %v6143_v37, %v6142_v23  ;;  %v6145_v47 = vpop.f32.mrb[202].mxu1  ;;  %v6249_v26 = vpop.f32.mrb[229].mxu0 }
 0x439   : > { %v6250_v1 = vadd.f32 %v6249_v26, %v6248_v14  ;;  %v6146_v27 = vpop.f32.mrb[203].mxu1  ;;  %v6251_v51 = vpop.f32.mrb[230].mxu0 }
 0x43a   : > { %v4563_v4 = vadd.f32 %v6144_v52, %v8852_v30  ;;  %v6147_v40 = vadd.f32 %v6146_v27, %v6145_v47  ;;  %v6252_v25 = vpop.f32.mrb[231].mxu0 }
 0x43b   : > { %v6253_v16 = vadd.f32 %v6252_v25, %v6251_v51  ;;  %v8967_v46 = vadd.f32 %v6250_v1, %v4555_v36 }
 0x43c   : > { %v4566_v8 = vadd.f32 %v6147_v40, %v8857_v22 }
 0x43d   : > { %v8970_v60 = vadd.f32 %v6253_v16, %v4558_v59 }
 0x43e   : > { %v6148_v24 = vpop.f32.mrb[204].mxu1 }
 0x43f   : > { %v6149_v17 = vpop.f32.mrb[205].mxu1  ;;  %v6254_v34 = vpop.f32.mrb[232].mxu0 }
 0x440   : > { %v6150_v28 = vadd.f32 %v6149_v17, %v6148_v24  ;;  %v6151_v48 = vpop.f32.mrb[206].mxu1  ;;  %v6255_v12 = vpop.f32.mrb[233].mxu0 }
 0x441   : > { %v6256_v31 = vadd.f32 %v6255_v12, %v6254_v34  ;;  %v6152_v56 = vpop.f32.mrb[207].mxu1  ;;  %v6257_v45 = vpop.f32.mrb[234].mxu0 }
 0x442   : > { %v4571_v30 = vadd.f32 %v6150_v28, %v8862_v32  ;;  %v6153_v13 = vadd.f32 %v6152_v56, %v6151_v48  ;;  %v6258_v9 = vpop.f32.mrb[235].mxu0 }
 0x443   : > { %v6259_v38 = vadd.f32 %v6258_v9, %v6257_v45  ;;  %v8973_v19 = vadd.f32 %v6256_v31, %v4563_v4 }
 0x444   : > { %v4574_v22 = vadd.f32 %v6153_v13, %v8867_v3 }
 0x445   : > { %v8976_v36 = vadd.f32 %v6259_v38, %v4566_v8 }
 0x446   : > { %v6154_v33 = vpop.f32.mrb[208].mxu1 }
 0x447   : > { %v6155_v35 = vpop.f32.mrb[209].mxu1  ;;  %v6260_v0 = vpop.f32.mrb[236].mxu0 }
 0x448   : > { %v6156_v59 = vadd.f32 %v6155_v35, %v6154_v33  ;;  %v6157_v23 = vpop.f32.mrb[210].mxu1  ;;  %v6261_v37 = vpop.f32.mrb[237].mxu0 }
 0x449   : > { %v6262_v14 = vadd.f32 %v6261_v37, %v6260_v0  ;;  %v6158_v52 = vpop.f32.mrb[211].mxu1  ;;  %v6263_v47 = vpop.f32.mrb[238].mxu0 }
 0x44a   : > { %v4579_v32 = vadd.f32 %v6156_v59, %v8872_v20  ;;  %v6159_v26 = vadd.f32 %v6158_v52, %v6157_v23  ;;  %v6264_v1 = vpop.f32.mrb[239].mxu0 }
 0x44b   : > { %v6265_v27 = vadd.f32 %v6264_v1, %v6263_v47  ;;  %v8979_v51 = vadd.f32 %v6262_v14, %v4571_v30 }
 0x44c   : > { %v4582_v3 = vadd.f32 %v6159_v26, %v8877_v44 }
 0x44d   : > { %v8982_v4 = vadd.f32 %v6265_v27, %v4574_v22 }
 0x44e   : > { %v6160_v40 = vpop.f32.mrb[212].mxu1 }
 0x44f   : > { %v6161_v25 = vpop.f32.mrb[213].mxu1  ;;  %v6266_v16 = vpop.f32.mrb[240].mxu0 }
 0x450   : > { %v6162_v8 = vadd.f32 %v6161_v25, %v6160_v40  ;;  %v6163_v24 = vpop.f32.mrb[214].mxu1  ;;  %v6267_v17 = vpop.f32.mrb[241].mxu0 }
 0x451   : > { %v6268_v34 = vadd.f32 %v6267_v17, %v6266_v16  ;;  %v6164_v28 = vpop.f32.mrb[215].mxu1  ;;  %v6269_v48 = vpop.f32.mrb[242].mxu0 }
 0x452   : > { %v4587_v20 = vadd.f32 %v6162_v8, %v8881_v15  ;;  %v6165_v12 = vadd.f32 %v6164_v28, %v6163_v24  ;;  %v6270_v31 = vpop.f32.mrb[243].mxu0 }
 0x453   : > { %v6271_v56 = vadd.f32 %v6270_v31, %v6269_v48  ;;  %v8985_v45 = vadd.f32 %v6268_v34, %v4579_v32 }
 0x454   : > { %v4590_v44 = vadd.f32 %v6165_v12, %v8885_v21 }
 0x455   : > { %v8988_v30 = vadd.f32 %v6271_v56, %v4582_v3 }
 0x456   : > { %v6166_v13 = vpop.f32.mrb[216].mxu1 }
 0x457   : > { %v6167_v9 = vpop.f32.mrb[217].mxu1  ;;  %v6272_v38 = vpop.f32.mrb[244].mxu0 }
 0x458   : > { %v6168_v22 = vadd.f32 %v6167_v9, %v6166_v13  ;;  %v6169_v33 = vpop.f32.mrb[218].mxu1  ;;  %v6273_v35 = vpop.f32.mrb[245].mxu0 }
 0x459   : > { %v6274_v0 = vadd.f32 %v6273_v35, %v6272_v38  ;;  %v6170_v59 = vpop.f32.mrb[219].mxu1  ;;  %v6275_v23 = vpop.f32.mrb[246].mxu0 }
 0x45a   : > { %v4595_v15 = vadd.f32 %v6168_v22, %v8889_v10  ;;  %v6171_v37 = vadd.f32 %v6170_v59, %v6169_v33  ;;  %v6276_v14 = vpop.f32.mrb[247].mxu0 }
 0x45b   : > { %v6277_v52 = vadd.f32 %v6276_v14, %v6275_v23  ;;  %v8991_v47 = vadd.f32 %v6274_v0, %v4587_v20 }
 0x45c   : > { %v4598_v21 = vadd.f32 %v6171_v37, %v8893_v29 }
 0x45d   : > { %v8994_v32 = vadd.f32 %v6277_v52, %v4590_v44 }
 0x45e   : > { %v6172_v26 = vpop.f32.mrb[220].mxu1 }
 0x45f   : > { %v6173_v1 = vpop.f32.mrb[221].mxu1  ;;  %v6278_v27 = vpop.f32.mrb[248].mxu0 }
 0x460   : > { %v6174_v3 = vadd.f32 %v6173_v1, %v6172_v26  ;;  %v6175_v40 = vpop.f32.mrb[222].mxu1  ;;  %v6279_v25 = vpop.f32.mrb[249].mxu0 }
 0x461   : > { %v6280_v16 = vadd.f32 %v6279_v25, %v6278_v27  ;;  %v6176_v8 = vpop.f32.mrb[223].mxu1  ;;  %v6281_v24 = vpop.f32.mrb[250].mxu0 }
 0x462   : > { %v4603_v10 = vadd.f32 %v6174_v3, %v8897_v58  ;;  %v6177_v17 = vadd.f32 %v6176_v8, %v6175_v40  ;;  %v6282_v34 = vpop.f32.mrb[251].mxu0 }
 0x463   : > { %v6283_v28 = vadd.f32 %v6282_v34, %v6281_v24  ;;  %v8997_v48 = vadd.f32 %v6280_v16, %v4595_v15 }
 0x464   : > { %v4606_v29 = vadd.f32 %v6177_v17, %v8901_v49 }
 0x465   : > { %v9000_v20 = vadd.f32 %v6283_v28, %v4598_v21 }
 0x466   : > { %v6178_v12 = vpop.f32.mrb[224].mxu1 }
 0x467   : > { %v6179_v31 = vpop.f32.mrb[225].mxu1  ;;  %v6284_v56 = vpop.f32.mrb[252].mxu0 }
 0x468   : > { %v6180_v44 = vadd.f32 %v6179_v31, %v6178_v12  ;;  %v6181_v13 = vpop.f32.mrb[226].mxu1  ;;  %v6285_v9 = vpop.f32.mrb[253].mxu0 }
 0x469   : > { %v6286_v38 = vadd.f32 %v6285_v9, %v6284_v56  ;;  %v6182_v22 = vpop.f32.mrb[227].mxu1  ;;  %v6287_v33 = vpop.f32.mrb[254].mxu0 }
 0x46a   : > { %v4611_v58 = vadd.f32 %v6180_v44, %v8905_v41  ;;  %v6183_v35 = vadd.f32 %v6182_v22, %v6181_v13  ;;  %v6288_v0 = vpop.f32.mrb[255].mxu0 }
 0x46b   : > { %v6289_v59 = vadd.f32 %v6288_v0, %v6287_v33  ;;  %v9003_v23 = vadd.f32 %v6286_v38, %v4603_v10 }
 0x46c   : > { %v4614_v49 = vadd.f32 %v6183_v35, %v8909_v54 }
 0x46d   : > { %v9006_v15 = vadd.f32 %v6289_v59, %v4606_v29 }
 0x46e   : > { %v6184_v37 = vpop.f32.mrb[228].mxu1 }
 0x46f   : > { %v6185_v14 = vpop.f32.mrb[229].mxu1  ;;  %v6290_v52 = vpop.f32.mrb[0].mxu0 }
 0x470   : > { %v6186_v21 = vadd.f32 %v6185_v14, %v6184_v37  ;;  %v6187_v26 = vpop.f32.mrb[230].mxu1  ;;  %v6291_v1 = vpop.f32.mrb[1].mxu0 }
 0x471   : > { %v6292_v27 = vadd.f32 %v6291_v1, %v6290_v52  ;;  %v6188_v3 = vpop.f32.mrb[231].mxu1  ;;  %v6293_v40 = vpop.f32.mrb[2].mxu0 }
 0x472   : > { %v4619_v41 = vadd.f32 %v6186_v21, %v8913_v63  ;;  %v6189_v25 = vadd.f32 %v6188_v3, %v6187_v26  ;;  %v6294_v16 = vpop.f32.mrb[3].mxu0 }
 0x473   : > { %v6295_v8 = vadd.f32 %v6294_v16, %v6293_v40  ;;  %v9009_v24 = vadd.f32 %v6292_v27, %v4611_v58 }
 0x474   : > { %v4622_v54 = vadd.f32 %v6189_v25, %v8917_v57 }
 0x475   : > { %v9012_v10 = vadd.f32 %v6295_v8, %v4614_v49 }
 0x476   : > { %v6190_v17 = vpop.f32.mrb[232].mxu1 }
 0x477   : > { %v6191_v34 = vpop.f32.mrb[233].mxu1  ;;  %v6296_v28 = vpop.f32.mrb[4].mxu0 }
 0x478   : > { %v6192_v29 = vadd.f32 %v6191_v34, %v6190_v17  ;;  %v6193_v12 = vpop.f32.mrb[234].mxu1  ;;  %v6297_v31 = vpop.f32.mrb[5].mxu0 }
 0x479   : > { %v6298_v56 = vadd.f32 %v6297_v31, %v6296_v28  ;;  %v6194_v44 = vpop.f32.mrb[235].mxu1  ;;  %v6299_v13 = vpop.f32.mrb[6].mxu0 }
 0x47a   : > { %v4627_v63 = vadd.f32 %v6192_v29, %v8921_v53  ;;  %v6195_v9 = vadd.f32 %v6194_v44, %v6193_v12  ;;  %v6300_v38 = vpop.f32.mrb[7].mxu0 }
 0x47b   : > { %v6301_v22 = vadd.f32 %v6300_v38, %v6299_v13  ;;  %v9015_v33 = vadd.f32 %v6298_v56, %v4619_v41 }
 0x47c   : > { %v4630_v57 = vadd.f32 %v6195_v9, %v8925_v11 }
 0x47d   : > { %v9018_v58 = vadd.f32 %v6301_v22, %v4622_v54 }
 0x47e   : > { %v6196_v35 = vpop.f32.mrb[236].mxu1 }
 0x47f   : > { %v6197_v0 = vpop.f32.mrb[237].mxu1  ;;  %v6302_v59 = vpop.f32.mrb[8].mxu0 }
 0x480   : > { %v6198_v49 = vadd.f32 %v6197_v0, %v6196_v35  ;;  %v6199_v37 = vpop.f32.mrb[238].mxu1  ;;  %v6303_v14 = vpop.f32.mrb[9].mxu0 }
 0x481   : > { %v6304_v52 = vadd.f32 %v6303_v14, %v6302_v59  ;;  %v6200_v21 = vpop.f32.mrb[239].mxu1  ;;  %v6305_v26 = vpop.f32.mrb[10].mxu0 }
 0x482   : > { %v4635_v53 = vadd.f32 %v6198_v49, %v8929_v5  ;;  %v6201_v1 = vadd.f32 %v6200_v21, %v6199_v37  ;;  %v6306_v27 = vpop.f32.mrb[11].mxu0 }
 0x483   : > { %v6307_v3 = vadd.f32 %v6306_v27, %v6305_v26  ;;  %v9021_v40 = vadd.f32 %v6304_v52, %v4627_v63 }
 0x484   : > { %v4638_v11 = vadd.f32 %v6201_v1, %v8932_v42 }
 0x485   : > { %v9024_v41 = vadd.f32 %v6307_v3, %v4630_v57 }
 0x486   : > { %v6202_v25 = vpop.f32.mrb[240].mxu1 }
 0x487   : > { %v6203_v16 = vpop.f32.mrb[241].mxu1  ;;  %v6308_v8 = vpop.f32.mrb[12].mxu0 }
 0x488   : > { %v6204_v54 = vadd.f32 %v6203_v16, %v6202_v25  ;;  %v6205_v17 = vpop.f32.mrb[242].mxu1  ;;  %v6309_v34 = vpop.f32.mrb[13].mxu0 }
 0x489   : > { %v6310_v28 = vadd.f32 %v6309_v34, %v6308_v8  ;;  %v6206_v29 = vpop.f32.mrb[243].mxu1  ;;  %v6311_v12 = vpop.f32.mrb[14].mxu0 }
 0x48a   : > { %v4643_v5 = vadd.f32 %v6204_v54, %v8936_v2  ;;  %v6207_v31 = vadd.f32 %v6206_v29, %v6205_v17  ;;  %v6312_v56 = vpop.f32.mrb[15].mxu0 }
 0x48b   : > { %v6313_v44 = vadd.f32 %v6312_v56, %v6311_v12  ;;  %v9027_v13 = vadd.f32 %v6310_v28, %v4635_v53 }
 0x48c   : > { %v4646_v42 = vadd.f32 %v6207_v31, %v8938_v55 }
 0x48d   : > { %v9030_v63 = vadd.f32 %v6313_v44, %v4638_v11 }
 0x48e   : > { %v6208_v9 = vpop.f32.mrb[244].mxu1 }
 0x48f   : > { %v6209_v38 = vpop.f32.mrb[245].mxu1  ;;  %v6314_v22 = vpop.f32.mrb[16].mxu0 }
 0x490   : > { %v6210_v57 = vadd.f32 %v6209_v38, %v6208_v9  ;;  %v6211_v35 = vpop.f32.mrb[246].mxu1  ;;  %v6315_v0 = vpop.f32.mrb[17].mxu0 }
 0x491   : > { %v6316_v59 = vadd.f32 %v6315_v0, %v6314_v22  ;;  %v6212_v49 = vpop.f32.mrb[247].mxu1  ;;  %v6317_v37 = vpop.f32.mrb[18].mxu0 }
 0x492   : > { %v4651_v2 = vadd.f32 %v6210_v57, %v8942_v61  ;;  %v6213_v14 = vadd.f32 %v6212_v49, %v6211_v35  ;;  %v6318_v52 = vpop.f32.mrb[19].mxu0 }
 0x493   : > { %v6319_v21 = vadd.f32 %v6318_v52, %v6317_v37  ;;  %v9033_v26 = vadd.f32 %v6316_v59, %v4643_v5 }
 0x494   : > { %v4654_v55 = vadd.f32 %v6213_v14, %v8944_v50 }
 0x495   : > { %v9036_v53 = vadd.f32 %v6319_v21, %v4646_v42 }
 0x496   : > { %v6214_v1 = vpop.f32.mrb[248].mxu1 }
 0x497   : > { %v6215_v27 = vpop.f32.mrb[249].mxu1  ;;  %v6320_v3 = vpop.f32.mrb[20].mxu0 }
 0x498   : > { %v6216_v11 = vadd.f32 %v6215_v27, %v6214_v1  ;;  %v6217_v25 = vpop.f32.mrb[250].mxu1  ;;  %v6321_v16 = vpop.f32.mrb[21].mxu0 }
 0x499   : > { %v6322_v8 = vadd.f32 %v6321_v16, %v6320_v3  ;;  %v6218_v54 = vpop.f32.mrb[251].mxu1  ;;  %v6323_v17 = vpop.f32.mrb[22].mxu0  ;;  %v6698_v3 = vld [vmem:[%s7209_s17 + $0x10] sm:$0xff] }
 0x49a   : > { %v4659_v61 = vadd.f32 %v6216_v11, %v8948_v18  ;;  %v6219_v34 = vadd.f32 %v6218_v54, %v6217_v25  ;;  %v6324_v28 = vpop.f32.mrb[23].mxu0  ;;  %v6699_v54 = vld [vmem:[%s7209_s17] sm:$0xff] }
 0x49b   : > { %v6325_v29 = vadd.f32 %v6324_v28, %v6323_v17  ;;  %v9039_v12 = vadd.f32 %v6322_v8, %v4651_v2  ;;  %v6700_v28 = vld [vmem:[%s7209_s17 + $0x18] sm:$0xff] }
 0x49c   : > { %v4662_v50 = vadd.f32 %v6219_v34, %v8950_v43 }
 0x49d   : > { %v9042_v5 = vadd.f32 %v6325_v29, %v4654_v55 }
 0x49e   : > { %v6220_v31 = vpop.f32.mrb[252].mxu1 }
 0x49f   : > { %v6221_v56 = vpop.f32.mrb[253].mxu1  ;;  %v6326_v44 = vpop.f32.mrb[24].mxu0 }
 0x4a0   : > { %v6222_v42 = vadd.f32 %v6221_v56, %v6220_v31  ;;  %v6223_v9 = vpop.f32.mrb[254].mxu1  ;;  %v6327_v38 = vpop.f32.mrb[25].mxu0  ;;  %v6701_v56 = vld [vmem:[%s7209_s17 + $0x8] sm:$0xff] }
 0x4a1   : > { %v6328_v22 = vadd.f32 %v6327_v38, %v6326_v44  ;;  %v6224_v57 = vpop.f32.mrb[255].mxu1  ;;  %v6329_v35 = vpop.f32.mrb[26].mxu0 }
 0x4a2   : > { %v4667_v18 = vadd.f32 %v6222_v42, %v8955_v62  ;;  %v6225_v0 = vadd.f32 %v6224_v57, %v6223_v9  ;;  %v6330_v59 = vpop.f32.mrb[27].mxu0 }
 0x4a3   : > { %v6331_v49 = vadd.f32 %v6330_v59, %v6329_v35  ;;  %v9045_v37 = vadd.f32 %v6328_v22, %v4659_v61 }
 0x4a4   : > { %v4670_v43 = vadd.f32 %v6225_v0, %v8958_v6 }
 0x4a5   : > { %v9048_v2 = vadd.f32 %v6331_v49, %v4662_v50 }
 0x4a6   : > { %v6428_v14 = vpop.f32.mrb[0].mxu1 }
 0x4a7   : > { %v4877_v52 = vadd.f32 %v6428_v14, %v8967_v46  ;;  %v6332_v21 = vpop.f32.mrb[28].mxu0  ;;  %v4868_v55 = vpop.f32.mrb[1].mxu1 }
 0x4a8   : > { %v4869_v1 = vadd.f32 %v4868_v55, %v8961_v7  ;;  %v6333_v27 = vpop.f32.mrb[29].mxu0  ;;  %v6429_v62 = vpop.f32.mrb[2].mxu1 }
 0x4a9   : > { %v4997_v11 = vadd.f32 %v6698_v3, %v4877_v52  ;;  %v6334_v25 = vadd.f32 %v6333_v27, %v6332_v21  ;;  %v4880_v16 = vadd.f32 %v6429_v62, %v8970_v60  ;;  %v6335_v6 = vpop.f32.mrb[30].mxu0  ;;  %v4871_v8 = vpop.f32.mrb[3].mxu1  ;;  %v6704_v21 = vld [vmem:[%s7209_s17 + $0x38] sm:$0xff]  ;;  %v6705_v27 = vld [vmem:[%s7209_s17 + $0x28] sm:$0xff] }
 0x4aa   : > { %v4995_v17 = vadd.f32 %v6699_v54, %v4869_v1  ;;  %v4872_v46 = vadd.f32 %v4871_v8, %v8964_v39  ;;  %v6336_v61 = vpop.f32.mrb[31].mxu0 }
 0x4ab   : > { %v5029_v34 = vmax.f32 %v4997_v11, 0.0  ;;  %v4998_v29 = vadd.f32 %v6700_v28, %v4880_v16  ;;  %v6337_v7 = vadd.f32 %v6336_v61, %v6335_v6  ;;  %v9057_v50 = vadd.f32 %v6334_v25, %v4667_v18  ;;  %v6702_v18 = vld [vmem:[%s7209_s17 + $0x30] sm:$0xff]  ;;  %v6708_v28 = vld [vmem:[%s7209_s17 + $0x58] sm:$0xff] }
 0x4ac   : > { %v5027_v31 = vmax.f32 %v4995_v17, 0.0  ;;  %v4996_v44 = vadd.f32 %v6701_v56, %v4872_v46  ;;  %v6706_v6 = vld [vmem:[%s7209_s17 + $0x50] sm:$0xff]  ;;  %v6707_v46 = vld [vmem:[%s7209_s17 + $0x40] sm:$0xff] }
 0x4ad   : > { %5061 = vst [vmem:[%s9062_s24 + $0x10] sm:$0xff] %v5029_v34  ;;  %v5030_v39 = vmax.f32 %v4998_v29, 0.0  ;;  %v9065_v60 = vadd.f32 %v6337_v7, %v4670_v43  ;;  %v6703_v43 = vld [vmem:[%s7209_s17 + $0x20] sm:$0xff] }
 0x4ae   : > { %5059 = vst [vmem:[%s9062_s24] sm:$0xff] %v5027_v31  ;;  %v5028_v42 = vmax.f32 %v4996_v44, 0.0  ;;  %v6432_v9 = vpop.f32.mrb[4].mxu1  ;;  %v6709_v31 = vld [vmem:[%s7209_s17 + $0x48] sm:$0xff] }
 0x4af   : > { %5062 = vst [vmem:[%s9062_s24 + $0x18] sm:$0xff] %v5030_v39  ;;  %v4893_v38 = vadd.f32 %v6432_v9, %v8979_v51  ;;  %v4884_v22 = vpop.f32.mrb[5].mxu1 }
 0x4b0   : > { %5060 = vst [vmem:[%s9062_s24 + $0x8] sm:$0xff] %v5028_v42  ;;  %v4885_v57 = vadd.f32 %v4884_v22, %v8973_v19  ;;  %v6433_v35 = vpop.f32.mrb[6].mxu1 }
 0x4b1   : > { %v5001_v0 = vadd.f32 %v6702_v18, %v4893_v38  ;;  %v4896_v59 = vadd.f32 %v6433_v35, %v8982_v4  ;;  %v4887_v49 = vpop.f32.mrb[7].mxu1  ;;  %v6710_v38 = vld [vmem:[%s7209_s17 + $0x70] sm:$0xff]  ;;  %v6711_v18 = vld [vmem:[%s7209_s17 + $0x60] sm:$0xff] }
 0x4b2   : > { %v4999_v14 = vadd.f32 %v6703_v43, %v4885_v57  ;;  %v4888_v52 = vadd.f32 %v4887_v49, %v8976_v36  ;;  %v6712_v49 = vld [vmem:[%s7209_s17 + $0x78] sm:$0xff] }
 0x4b3   : > { %v5033_v51 = vmax.f32 %v5001_v0, 0.0  ;;  %v5002_v55 = vadd.f32 %v6704_v21, %v4896_v59 }
 0x4b4   : > { %v5031_v1 = vmax.f32 %v4999_v14, 0.0  ;;  %v5000_v19 = vadd.f32 %v6705_v27, %v4888_v52  ;;  %v6713_v52 = vld [vmem:[%s7209_s17 + $0x68] sm:$0xff] }
 0x4b5   : > { %5065 = vst [vmem:[%s9062_s24 + $0x30] sm:$0xff] %v5033_v51  ;;  %v5034_v62 = vmax.f32 %v5002_v55, 0.0 }
 0x4b6   : > { %5063 = vst [vmem:[%s9062_s24 + $0x20] sm:$0xff] %v5031_v1  ;;  %v5032_v3 = vmax.f32 %v5000_v19, 0.0  ;;  %v6436_v4 = vpop.f32.mrb[8].mxu1  ;;  %v6714_v19 = vld [vmem:[%s7209_s17 + $0x90] sm:$0xff] }
 0x4b7   : > { %5066 = vst [vmem:[%s9062_s24 + $0x38] sm:$0xff] %v5034_v62  ;;  %v4909_v11 = vadd.f32 %v6436_v4, %v8991_v47  ;;  %v4900_v25 = vpop.f32.mrb[9].mxu1 }
 0x4b8   : > { %5064 = vst [vmem:[%s9062_s24 + $0x28] sm:$0xff] %v5032_v3  ;;  %v4901_v36 = vadd.f32 %v4900_v25, %v8985_v45  ;;  %v6437_v16 = vpop.f32.mrb[10].mxu1 }
 0x4b9   : > { %v5005_v8 = vadd.f32 %v6706_v6, %v4909_v11  ;;  %v4912_v54 = vadd.f32 %v6437_v16, %v8994_v32  ;;  %v4903_v17 = vpop.f32.mrb[11].mxu1  ;;  %v6715_v11 = vld [vmem:[%s7209_s17 + $0x80] sm:$0xff]  ;;  %v6716_v16 = vld [vmem:[%s7209_s17 + $0x98] sm:$0xff] }
 0x4ba   : > { %v5003_v61 = vadd.f32 %v6707_v46, %v4901_v36  ;;  %v4904_v34 = vadd.f32 %v4903_v17, %v8988_v30 }
 0x4bb   : > { %v5037_v47 = vmax.f32 %v5005_v8, 0.0  ;;  %v5006_v29 = vadd.f32 %v6708_v28, %v4912_v54  ;;  %v6717_v54 = vld [vmem:[%s7209_s17 + $0x88] sm:$0xff]  ;;  %v6718_v28 = vld [vmem:[%s7209_s17 + $0xb0] sm:$0xff] }
 0x4bc   : > { %v5035_v7 = vmax.f32 %v5003_v61, 0.0  ;;  %v5004_v45 = vadd.f32 %v6709_v31, %v4904_v34 }
 0x4bd   : > { %5069 = vst [vmem:[%s9062_s24 + $0x50] sm:$0xff] %v5037_v47  ;;  %v5038_v56 = vmax.f32 %v5006_v29, 0.0 }
 0x4be   : > { %5067 = vst [vmem:[%s9062_s24 + $0x40] sm:$0xff] %v5035_v7  ;;  %v5036_v44 = vmax.f32 %v5004_v45, 0.0  ;;  %v6440_v32 = vpop.f32.mrb[12].mxu1  ;;  %v6719_v45 = vld [vmem:[%s7209_s17 + $0xa0] sm:$0xff] }
 0x4bf   : > { %5070 = vst [vmem:[%s9062_s24 + $0x58] sm:$0xff] %v5038_v56  ;;  %v4925_v39 = vadd.f32 %v6440_v32, %v9003_v23  ;;  %v4916_v42 = vpop.f32.mrb[13].mxu1  ;;  %v6720_v32 = vld [vmem:[%s7209_s17 + $0xb8] sm:$0xff] }
 0x4c0   : > { %5068 = vst [vmem:[%s9062_s24 + $0x48] sm:$0xff] %v5036_v44  ;;  %v4917_v30 = vadd.f32 %v4916_v42, %v8997_v48  ;;  %v6441_v9 = vpop.f32.mrb[14].mxu1 }
 0x4c1   : > { %v5009_v22 = vadd.f32 %v6710_v38, %v4925_v39  ;;  %v4928_v57 = vadd.f32 %v6441_v9, %v9006_v15  ;;  %v4919_v35 = vpop.f32.mrb[15].mxu1 }
 0x4c2   : > { %v5007_v0 = vadd.f32 %v6711_v18, %v4917_v30  ;;  %v4920_v59 = vadd.f32 %v4919_v35, %v9000_v20  ;;  %v6721_v30 = vld [vmem:[%s7209_s17 + $0xa8] sm:$0xff]  ;;  %v6722_v18 = vld [vmem:[%s7209_s17 + $0xd0] sm:$0xff] }
 0x4c3   : > { %v5041_v23 = vmax.f32 %v5009_v22, 0.0  ;;  %v5010_v43 = vadd.f32 %v6712_v49, %v4928_v57  ;;  %v6723_v49 = vld [vmem:[%s7209_s17 + $0xc0] sm:$0xff] }
 0x4c4   : > { %v5039_v14 = vmax.f32 %v5007_v0, 0.0  ;;  %v5008_v48 = vadd.f32 %v6713_v52, %v4920_v59  ;;  %v6724_v52 = vld [vmem:[%s7209_s17 + $0xd8] sm:$0xff] }
 0x4c5   : > { %5073 = vst [vmem:[%s9062_s24 + $0x70] sm:$0xff] %v5041_v23  ;;  %v5042_v51 = vmax.f32 %v5010_v43, 0.0 }
 0x4c6   : > { %5071 = vst [vmem:[%s9062_s24 + $0x60] sm:$0xff] %v5039_v14  ;;  %v5040_v21 = vmax.f32 %v5008_v48, 0.0  ;;  %v6444_v15 = vpop.f32.mrb[16].mxu1 }
 0x4c7   : > { %5074 = vst [vmem:[%s9062_s24 + $0x78] sm:$0xff] %v5042_v51  ;;  %v4941_v55 = vadd.f32 %v6444_v15, %v9015_v33  ;;  %v4932_v1 = vpop.f32.mrb[17].mxu1 }
 0x4c8   : > { %5072 = vst [vmem:[%s9062_s24 + $0x68] sm:$0xff] %v5040_v21  ;;  %v4933_v20 = vadd.f32 %v4932_v1, %v9009_v24  ;;  %v6445_v27 = vpop.f32.mrb[18].mxu1  ;;  %v6725_v21 = vld [vmem:[%s7209_s17 + $0xc8] sm:$0xff] }
 0x4c9   : > { %v5013_v62 = vadd.f32 %v6714_v19, %v4941_v55  ;;  %v4944_v3 = vadd.f32 %v6445_v27, %v9018_v58  ;;  %v4935_v4 = vpop.f32.mrb[19].mxu1  ;;  %v6726_v19 = vld [vmem:[%s7209_s17 + $0xf0] sm:$0xff] }
 0x4ca   : > { %v5011_v25 = vadd.f32 %v6715_v11, %v4933_v20  ;;  %v4936_v36 = vadd.f32 %v4935_v4, %v9012_v10  ;;  %v6727_v11 = vld [vmem:[%s7209_s17 + $0xe0] sm:$0xff] }
 0x4cb   : > { %v5045_v33 = vmax.f32 %v5013_v62, 0.0  ;;  %v5014_v6 = vadd.f32 %v6716_v16, %v4944_v3 }
 0x4cc   : > { %v5043_v8 = vmax.f32 %v5011_v25, 0.0  ;;  %v5012_v24 = vadd.f32 %v6717_v54, %v4936_v36 }
 0x4cd   : > { %5077 = vst [vmem:[%s9062_s24 + $0x90] sm:$0xff] %v5045_v33  ;;  %v5046_v17 = vmax.f32 %v5014_v6, 0.0  ;;  %v6728_v33 = vld [vmem:[%s7209_s17 + $0xf8] sm:$0xff]  ;;  %v6729_v6 = vld [vmem:[%s7209_s17 + $0xe8] sm:$0xff] }
 0x4ce   : > { %5075 = vst [vmem:[%s9062_s24 + $0x80] sm:$0xff] %v5043_v8  ;;  %v5044_v46 = vmax.f32 %v5012_v24, 0.0  ;;  %v6448_v58 = vpop.f32.mrb[20].mxu1 }
 0x4cf   : > { %5078 = vst [vmem:[%s9062_s24 + $0x98] sm:$0xff] %v5046_v17  ;;  %v4957_v61 = vadd.f32 %v6448_v58, %v9027_v13  ;;  %v4948_v34 = vpop.f32.mrb[21].mxu1 }
 0x4d0   : > { %5076 = vst [vmem:[%s9062_s24 + $0x88] sm:$0xff] %v5044_v46  ;;  %v4949_v10 = vadd.f32 %v4948_v34, %v9021_v40  ;;  %v6449_v47 = vpop.f32.mrb[22].mxu1 }
 0x4d1   : > { %v5017_v29 = vadd.f32 %v6718_v28, %v4957_v61  ;;  %v4960_v7 = vadd.f32 %v6449_v47, %v9030_v63  ;;  %v4951_v31 = vpop.f32.mrb[23].mxu1 }
 0x4d2   : > { %v5015_v56 = vadd.f32 %v6719_v45, %v4949_v10  ;;  %v4952_v44 = vadd.f32 %v4951_v31, %v9024_v41 }
 0x4d3   : > { %v5049_v13 = vmax.f32 %v5017_v29, 0.0  ;;  %v5018_v39 = vadd.f32 %v6720_v32, %v4960_v7 }
 0x4d4   : > { %v5047_v42 = vmax.f32 %v5015_v56, 0.0  ;;  %v5016_v40 = vadd.f32 %v6721_v30, %v4952_v44 }
 0x4d5   : > { %5081 = vst [vmem:[%s9062_s24 + $0xb0] sm:$0xff] %v5049_v13  ;;  %v5050_v9 = vmax.f32 %v5018_v39, 0.0 }
 0x4d6   : > { %5079 = vst [vmem:[%s9062_s24 + $0xa0] sm:$0xff] %v5047_v42  ;;  %v5048_v38 = vmax.f32 %v5016_v40, 0.0  ;;  %v6452_v63 = vpop.f32.mrb[24].mxu1 }
 0x4d7   : > { %5082 = vst [vmem:[%s9062_s24 + $0xb8] sm:$0xff] %v5050_v9  ;;  %v4973_v22 = vadd.f32 %v6452_v63, %v9039_v12  ;;  %v4964_v57 = vpop.f32.mrb[25].mxu1 }
 0x4d8   : > { %5080 = vst [vmem:[%s9062_s24 + $0xa8] sm:$0xff] %v5048_v38  ;;  %v4965_v41 = vadd.f32 %v4964_v57, %v9033_v26  ;;  %v6453_v35 = vpop.f32.mrb[26].mxu1 }
 0x4d9   : > { %v5021_v0 = vadd.f32 %v6722_v18, %v4973_v22  ;;  %v4976_v59 = vadd.f32 %v6453_v35, %v9042_v5  ;;  %v4967_v23 = vpop.f32.mrb[27].mxu1 }
 0x4da   : > { %v5019_v43 = vadd.f32 %v6723_v49, %v4965_v41  ;;  %v4968_v14 = vadd.f32 %v4967_v23, %v9036_v53 }
 0x4db   : > { %v5053_v12 = vmax.f32 %v5021_v0, 0.0  ;;  %v5022_v48 = vadd.f32 %v6724_v52, %v4976_v59 }
 0x4dc   : > { %v5051_v51 = vmax.f32 %v5019_v43, 0.0  ;;  %v5020_v26 = vadd.f32 %v6725_v21, %v4968_v14 }
 0x4dd   : > { %5085 = vst [vmem:[%s9062_s24 + $0xd0] sm:$0xff] %v5053_v12  ;;  %v5054_v15 = vmax.f32 %v5022_v48, 0.0 }
 0x4de   : > { %5083 = vst [vmem:[%s9062_s24 + $0xc0] sm:$0xff] %v5051_v51  ;;  %v5052_v5 = vmax.f32 %v5020_v26, 0.0  ;;  %v6456_v55 = vpop.f32.mrb[28].mxu1 }
 0x4df   : > { %5086 = vst [vmem:[%s9062_s24 + $0xd8] sm:$0xff] %v5054_v15  ;;  %v4989_v1 = vadd.f32 %v6456_v55, %v9057_v50  ;;  %v4980_v53 = vpop.f32.mrb[29].mxu1 }
 0x4e0   : > { %5084 = vst [vmem:[%s9062_s24 + $0xc8] sm:$0xff] %v5052_v5  ;;  %v4981_v20 = vadd.f32 %v4980_v53, %v9045_v37  ;;  %v6457_v27 = vpop.f32.mrb[30].mxu1 }
 0x4e1   : > { %v5025_v62 = vadd.f32 %v6726_v19, %v4989_v1  ;;  %v4992_v3 = vadd.f32 %v6457_v27, %v9065_v60  ;;  %v4983_v4 = vpop.f32.mrb[31].mxu1 }
 0x4e2   : > { %v5023_v25 = vadd.f32 %v6727_v11, %v4981_v20  ;;  %v4984_v36 = vadd.f32 %v4983_v4, %v9048_v2 }
 0x4e3   : > { %v5057_v50 = vmax.f32 %v5025_v62, 0.0  ;;  %v5026_v37 = vadd.f32 %v6728_v33, %v4992_v3 }
 0x4e4   : > { %v5055_v16 = vmax.f32 %v5023_v25, 0.0  ;;  %v5024_v8 = vadd.f32 %v6729_v6, %v4984_v36 }
 0x4e5   : > { %5089 = vst [vmem:[%s9062_s24 + $0xf0] sm:$0xff] %v5057_v50  ;;  %v5058_v60 = vmax.f32 %v5026_v37, 0.0 }
 0x4e6   : > { %5087 = vst [vmem:[%s9062_s24 + $0xe0] sm:$0xff] %v5055_v16  ;;  %v5056_v2 = vmax.f32 %v5024_v8, 0.0 }
 0x4e7   : > { %5090 = vst [vmem:[%s9062_s24 + $0xf8] sm:$0xff] %v5058_v60 }
 0x4e8   : > { %5088 = vst [vmem:[%s9062_s24 + $0xe8] sm:$0xff] %v5056_v2 }
 0x4e9   : > { %6885 = shalt.err (!%p6882_p13)
}
 0x4ea   : > { %s6886_s16 = scalar_lea.hbm %s9156_s15, 4096  ;;  %s6890_s7 = scalar_lea.hbm %s9210_s5, 8192 }
 0x4eb   : > { %p6887_p9 = scmp.ne.s32.totalorder %s9156_s15, %s6886_s16  ;;  %p6891_p6 = scmp.lt.u32.totalorder %s9156_s15, %s9210_s5 }
 0x4ec   : > { %p6892_p4 = scmp.lt.u32.totalorder %s6890_s7, %s6886_s16  ;;  %p6894_p3 = scmp.lt.u32.totalorder %s6886_s16, %s9156_s15 }
 0x4ed   : > { %p6888_p0 = pnand %p6887_p9, %p7151_p10 }
 0x4ee   : > { %p6893_p8 = por %p6892_p4, %p6891_p6 }
 0x4ef   : > { %p6889_p11 = pneg %p6888_p0 }
 0x4f0   : > { %p6895_p5 = por %p6894_p3, %p6893_p8 }
 0x4f2   : > { %p6896_p7 = pnand %p6895_p5, %p6889_p11 }
 0x4f4   : > { %6899 = shalt.err (!%p6896_p7)
}
 0x4f5   : > { %s6960_s26 = smov 128   ;;  %s6961_s13 = smov 8  }
 0x4f6   : > { %6476 = dma.vmem_to_hbm [thread:$0]  (%p7151_p10), %s9158_s11, 4096, %s9156_s15, %s5092_s22, %s6960_s26, %s6960_s26, %s6961_s13  }
 0x4f7 PF: > { %s5120_s8 = sand.u32 1, %s6934_s18   ;;  %p9504_p12 = scmp.ne.s32.totalorder %s9273_s25, 0 }
 0x4f8   : > { %p9505_p2 = scmp.ge.s32.totalorder %s6946_s21, 2  ;;  %s5121_s30 = scalar_lea.sflag [#allocation5], %s5120_s8 }
 0x4fa   : > { %p6496_p1 = pnand %p9505_p2, %p9504_p12 }
 0x4fc   : > { %6929 = dma.done.wait (!%p6496_p1), %s5121_s30, 4096  }
 0x4fd   : > { %6931 = vsyncadd (!%p6496_p1), %s5121_s30, 4294963200  ;;  %p20_p13 = scmp.ge.s32.totalorder %s7141_s14, 4   ;;  %s9506_s18 = smov %s6938_s19 }
 0x4fe   : > { %s9507_s19 = smov %s6942_s20  ;;  %s9508_s20 = smov %s7157_s28 }
 0x4ff   : > { %s9509_s21 = smov %s7141_s14  ;;  %22 = sbr.rel (!%p20_p13) target bundleno = 7 (0x7), region = 101 }
 0x506   :  { %5126 = vsyncpa [#allocation4], 1 }
 0x507   :  { %5128 = vsyncpa [#allocation4 + $0x1], 1 }
 0x508   :  { %5129 = vsyncpa [#allocation7], 1 }
 0x509   :  { %5130 = vsyncpa [#allocation10], 1 }
 0x50a   :  { %5131 = vsyncpa [#allocation5], 1 }
 0x50b   :  { %5133 = vsyncpa [#allocation5 + $0x1], 1 }

</bundles_post_ra>
